<compile_context>
chip_gen: v5e
topology: v5e:2x2
jax: 0.10.0
libtpu: 0.0.40
codegen_flags: <defaults>
</compile_context>

<pallas_src>
import functools
import math

import jax
import jax.numpy as jnp
import numpy as np
from jax.experimental import pallas as pl
from jax.experimental.pallas import tpu as pltpu


# ------------------------------ fused kernel --------------------------------

def _fused_fno_kernel(n_layers,
                      x_ref, win_ref, bin_ref, a_ref,
                      wfc_ref, bfc_ref, wres_ref, bres_ref,
                      forecast_ref, res_ref, signal_ref):
    # in_proj (lifted to the flat (B, S*C) layout):  h = x_flat @ Win + bin
    h = (jnp.dot(x_ref[...], win_ref[...], preferred_element_type=jnp.float32)
         + bin_ref[...])                                    # (B, S*C) f32

    # n_layers spectral layers, each fused into one dense operator:
    #   h <- h + h @ A_l    (A_l already contains rDFT, per-mode complex
    #                        channel mixing, and inverse rDFT)
    for l in range(n_layers):                               # static unroll
        h = h + jnp.dot(h.astype(a_ref.dtype), a_ref[l],
                        preferred_element_type=jnp.float32)

    signal_ref[...] = h

    # fused + lifted output heads (bias-only 2-layer MLPs collapsed host-side)
    hb = h.astype(wfc_ref.dtype)
    forecast_ref[...] = (
        jnp.dot(hb, wfc_ref[...], preferred_element_type=jnp.float32)
        + bfc_ref[...])
    res_ref[...] = (
        jnp.dot(hb, wres_ref[...], preferred_element_type=jnp.float32)
        + bres_ref[...])


@functools.partial(jax.jit, static_argnames=("output_dim",))
def fno_factorized_block_1d(x, ops, *, output_dim):
    """x: (B, S, input_dim) -> (forecast (B,S,1,Dout), res_out (B,S,C), signal (B,S,C))."""
    B, S, Din = x.shape
    L = ops['a'].shape[0]
    SC = ops['a'].shape[-1]
    C = SC // S
    Pout = ops['wfc'].shape[-1] // S        # padded per-position forecast width

    x_flat = x.reshape(B, S * Din).astype(jnp.bfloat16)

    kernel = functools.partial(_fused_fno_kernel, L)
    # No grid: every operand is a single whole-array VMEM block (total < 4 MiB),
    # so there is no pipelining / per-step overhead and no double-buffering.
    forecast_flat, res_flat, signal_flat = pl.pallas_call(
        kernel,
        out_shape=(
            jax.ShapeDtypeStruct((B, S * Pout), jnp.float32),   # forecast (padded)
            jax.ShapeDtypeStruct((B, SC), jnp.float32),         # res_out (flat)
            jax.ShapeDtypeStruct((B, SC), jnp.float32),         # signal  (flat)
        ),
    )(x_flat, ops['win'], ops['bin'], ops['a'],
      ops['wfc'], ops['bfc'], ops['wres'], ops['bres'])

    forecast = forecast_flat.reshape(B, S, Pout)[:, :, :output_dim][:, :, None, :]
    res_out = res_flat.reshape(B, S, C)
    signal_out = signal_flat.reshape(B, S, C)
    return forecast, res_out, signal_out


# ------------------------------ host-side setup ------------------------------

def init_params(key, input_dim, width, output_dim, modes, n_layers):
    ks = jax.random.split(key, 8 + 2 * n_layers)

    def linear_init(k, din, dout):
        k1, k2 = jax.random.split(k)
        bound = 1.0 / np.sqrt(din)
        w = jax.random.uniform(k1, (din, dout), jnp.float32, -bound, bound)
        b = jax.random.uniform(k2, (dout,), jnp.float32, -bound, bound)
        return w, b

    p = {}
    p['in_w'], p['in_b'] = linear_init(ks[0], input_dim, width)
    p['out1_w'], p['out1_b'] = linear_init(ks[1], width, 128)
    p['out2_w'], p['out2_b'] = linear_init(ks[2], 128, output_dim)
    p['res1_w'], p['res1_b'] = linear_init(ks[3], width, 128)
    p['res2_w'], p['res2_b'] = linear_init(ks[4], 128, width)

    scale = 1.0 / (width * width)
    p['wr'] = jnp.stack(
        [scale * jax.random.uniform(ks[8 + 2 * i], (width, width, modes), jnp.float32)
         for i in range(n_layers)])                     # (L, Cin, Cout, M)
    p['wi'] = jnp.stack(
        [scale * jax.random.uniform(ks[9 + 2 * i], (width, width, modes), jnp.float32)
         for i in range(n_layers)])
    return p


def build_operators(params, S, modes):
    """Precompute (host-side, float64) all fused/lifted operators for the kernel."""
    in_w = np.asarray(params['in_w'], np.float64)       # (Din, C)
    in_b = np.asarray(params['in_b'], np.float64)
    C = in_w.shape[1]
    M = modes
    wr = np.asarray(params['wr'], np.float64)           # (L, Cin, Cout, M)
    wi = np.asarray(params['wi'], np.float64)
    L = wr.shape[0]
    assert M <= S // 2 + 1, "truncated-DFT construction requires modes <= S//2 + 1"

    # --- truncated rDFT / inverse-rDFT matrices ---
    n = np.arange(S, dtype=np.float64)
    k = np.arange(M, dtype=np.float64)
    ang = 2.0 * np.pi * np.outer(n, k) / S              # (S, M)
    frt = np.cos(ang).T                                 # (M, S): Re rfft rows
    fit = (-np.sin(ang)).T                              # (M, S): Im rfft rows
    ck = np.full((M,), 2.0)
    ck[0] = 1.0
    if S % 2 == 0 and M - 1 == S // 2:
        ck[-1] = 1.0                                    # Nyquist counted once
    grt = (ck[None, :] / S) * np.cos(ang)               # (S, M)
    git = -(ck[None, :] / S) * np.sin(ang)              # (S, M)

    # --- lifted DFT operators acting on flat (S*C) hidden state ---
    eyeC = np.eye(C)
    LF = np.zeros((S, C, M, 2, C))
    LF[:, :, :, 0, :] = np.einsum('ks,cd->sckd', frt, eyeC)
    LF[:, :, :, 1, :] = np.einsum('ks,cd->sckd', fit, eyeC)
    LF = LF.reshape(S * C, M, 2 * C)                    # (S*C, M, 2C)

    LG = np.zeros((M, 2, C, S, C))
    LG[:, 0, :, :, :] = np.einsum('sk,cd->kcsd', grt, eyeC)
    LG[:, 1, :, :, :] = np.einsum('sk,cd->kcsd', git, eyeC)
    LG = LG.reshape(M, 2 * C, S * C)                    # (M, 2C, S*C)

    # --- per-mode block-complex channel-mixing weights ---
    wr_m = np.transpose(wr, (0, 3, 1, 2))               # (L, M, Cin, Cout)
    wi_m = np.transpose(wi, (0, 3, 1, 2))
    Wblk = np.zeros((L, M, 2, C, 2, C))
    Wblk[:, :, 0, :, 0, :] = wr_m
    Wblk[:, :, 0, :, 1, :] = wi_m
    Wblk[:, :, 1, :, 0, :] = -wi_m
    Wblk[:, :, 1, :, 1, :] = wr_m
    Wblk = Wblk.reshape(L, M, 2 * C, 2 * C)

    # --- fuse each layer into one (S*C, S*C) operator: h += h @ A_l ---
    A = np.zeros((L, S * C, S * C))
    for l in range(L):
        for kk in range(M):
            A[l] += LF[:, kk, :] @ Wblk[l, kk] @ LG[kk]

    # --- lifted in_proj ---
    Win = np.kron(np.eye(S), in_w)                      # (S*Din, S*C)
    Bin = np.tile(in_b, S)[None, :]                     # (1, S*C)

    # --- collapse the bias-only 2-layer output MLPs and lift them ---
    out1_w = np.asarray(params['out1_w'], np.float64)
    out1_b = np.asarray(params['out1_b'], np.float64)
    out2_w = np.asarray(params['out2_w'], np.float64)
    out2_b = np.asarray(params['out2_b'], np.float64)
    res1_w = np.asarray(params['res1_w'], np.float64)
    res1_b = np.asarray(params['res1_b'], np.float64)
    res2_w = np.asarray(params['res2_w'], np.float64)
    res2_b = np.asarray(params['res2_b'], np.float64)
    output_dim = out2_w.shape[1]

    # pad per-position forecast width so the flat output width is lane-dense
    step = 128 // math.gcd(S, 128)
    pad_out = max(step, int(np.ceil(output_dim / step)) * step)

    Wfc = out1_w @ out2_w                               # (C, Dout)
    bfc = out1_b @ out2_w + out2_b
    Wfc_pad = np.zeros((C, pad_out)); Wfc_pad[:, :output_dim] = Wfc
    bfc_pad = np.zeros((pad_out,)); bfc_pad[:output_dim] = bfc
    Wfc_lift = np.kron(np.eye(S), Wfc_pad)              # (S*C, S*pad_out)
    bfc_lift = np.tile(bfc_pad, S)[None, :]

    Wres = res1_w @ res2_w                              # (C, C)
    bres = res1_b @ res2_w + res2_b
    Wres_lift = np.kron(np.eye(S), Wres)                # (S*C, S*C)
    bres_lift = np.tile(bres, S)[None, :]

    return {
        'win': jnp.asarray(Win, jnp.bfloat16),
        'bin': jnp.asarray(Bin, jnp.float32),
        'a': jnp.asarray(A, jnp.bfloat16),
        'wfc': jnp.asarray(Wfc_lift, jnp.bfloat16),
        'bfc': jnp.asarray(bfc_lift, jnp.float32),
        'wres': jnp.asarray(Wres_lift, jnp.bfloat16),
        'bres': jnp.asarray(bres_lift, jnp.float32),
    }


# ----------------------------- pure-JAX reference ----------------------------

def reference_forward(x, params, S, modes, n_layers):
    h = x @ params['in_w'] + params['in_b']
    B, _, C = h.shape
    for i in range(n_layers):
        hc = jnp.transpose(h, (0, 2, 1))                          # (B, C, S)
        x_ft = jnp.fft.rfft(hc, axis=-1)
        w = params['wr'][i] + 1j * params['wi'][i]                # (Cin, Cout, M)
        out_trunc = jnp.einsum('bix,iox->box', x_ft[:, :, :modes], w)
        out_ft = jnp.zeros((B, C, S // 2 + 1), jnp.complex64).at[:, :, :modes].set(out_trunc)
        sp = jnp.fft.irfft(out_ft, n=S, axis=-1)
        h = h + jnp.transpose(sp, (0, 2, 1))
    forecast = (h @ params['out1_w'] + params['out1_b']) @ params['out2_w'] + params['out2_b']
    res_out = (h @ params['res1_w'] + params['res1_b']) @ params['res2_w'] + params['res2_b']
    return forecast[:, :, None, :], res_out, h


# ------------------------------------ main -----------------------------------

if __name__ == "__main__":
    B, S = 2, 16
    input_dim, width, output_dim = 12, 32, 5
    modes, n_layers = 8, 4

    key = jax.random.PRNGKey(0)
    kx, kp = jax.random.split(key)
    x = jax.random.normal(kx, (B, S, input_dim), jnp.float32)
    params = init_params(kp, input_dim, width, output_dim, modes, n_layers)
    ops = build_operators(params, S, modes)

    forecast, res_out, signal_out = fno_factorized_block_1d(x, ops, output_dim=output_dim)
    jax.block_until_ready((forecast, res_out, signal_out))

    assert forecast.shape == (B, S, 1, output_dim)
    assert res_out.shape == (B, S, width)
    assert signal_out.shape == (B, S, width)

    f_ref, r_ref, s_ref = reference_forward(x, params, S, modes, n_layers)
    np.testing.assert_allclose(np.asarray(signal_out), np.asarray(s_ref), rtol=2e-2, atol=2e-2)
    np.testing.assert_allclose(np.asarray(forecast), np.asarray(f_ref), rtol=2e-2, atol=2e-2)
    np.testing.assert_allclose(np.asarray(res_out), np.asarray(r_ref), rtol=2e-2, atol=2e-2)

    print("KERNEL_OK")
</pallas_src>

<mosaic_0001>
module attributes {stable_mosaic.version = 11 : i64} {
  func.func @_fused_fno_kernel(%arg0: memref<2x192xbf16, #tpu.memory_space<vmem>>, %arg1: memref<192x512xbf16, #tpu.memory_space<vmem>>, %arg2: memref<1x512xf32, #tpu.memory_space<vmem>>, %arg3: memref<4x512x512xbf16, #tpu.memory_space<vmem>>, %arg4: memref<512x128xbf16, #tpu.memory_space<vmem>>, %arg5: memref<1x128xf32, #tpu.memory_space<vmem>>, %arg6: memref<512x512xbf16, #tpu.memory_space<vmem>>, %arg7: memref<1x512xf32, #tpu.memory_space<vmem>>, %arg8: memref<2x128xf32, #tpu.memory_space<vmem>>, %arg9: memref<2x512xf32, #tpu.memory_space<vmem>>, %arg10: memref<2x512xf32, #tpu.memory_space<vmem>>) attributes {dimension_semantics = [], scalar_prefetch = 0 : i64, scratch_operands = 0 : i64, tpu.core_type = #tpu.core_type<tc>} {
    %c0 = arith.constant 0 : index
    %c0_0 = arith.constant 0 : index
    %0 = vector.load %arg0[%c0, %c0_0] : memref<2x192xbf16, #tpu.memory_space<vmem>>, vector<2x192xbf16>
    %c0_1 = arith.constant 0 : index
    %c0_2 = arith.constant 0 : index
    %1 = vector.load %arg1[%c0_1, %c0_2] : memref<192x512xbf16, #tpu.memory_space<vmem>>, vector<192x512xbf16>
    %cst = arith.constant dense<0.000000e+00> : vector<2x512xf32>
    %2 = tpu.matmul %0, %1, %cst {dimension_numbers = #tpu.dot_dimension_numbers<[1], [0], [0], [1], [0, 0, 1, 1], [], []>} : vector<2x192xbf16>, vector<192x512xbf16>, vector<2x512xf32> -> vector<2x512xf32>
    %c0_3 = arith.constant 0 : index
    %c0_4 = arith.constant 0 : index
    %3 = vector.load %arg2[%c0_3, %c0_4] : memref<1x512xf32, #tpu.memory_space<vmem>>, vector<1x512xf32>
    %4 = vector.broadcast %3 : vector<1x512xf32> to vector<2x512xf32>
    %5 = arith.addf %2, %4 : vector<2x512xf32>
    %6 = arith.truncf %5 : vector<2x512xf32> to vector<2x512xbf16>
    %c0_5 = arith.constant 0 : index
    %c0_6 = arith.constant 0 : index
    %c0_7 = arith.constant 0 : index
    %7 = vector.load %arg3[%c0_5, %c0_6, %c0_7] : memref<4x512x512xbf16, #tpu.memory_space<vmem>>, vector<1x512x512xbf16>
    %8 = vector.shape_cast %7 : vector<1x512x512xbf16> to vector<512x512xbf16>
    %cst_8 = arith.constant dense<0.000000e+00> : vector<2x512xf32>
    %9 = tpu.matmul %6, %8, %cst_8 {dimension_numbers = #tpu.dot_dimension_numbers<[1], [0], [0], [1], [0, 0, 1, 1], [], []>} : vector<2x512xbf16>, vector<512x512xbf16>, vector<2x512xf32> -> vector<2x512xf32>
    %10 = arith.addf %5, %9 : vector<2x512xf32>
    %11 = arith.truncf %10 : vector<2x512xf32> to vector<2x512xbf16>
    %c1 = arith.constant 1 : index
    %c0_9 = arith.constant 0 : index
    %c0_10 = arith.constant 0 : index
    %12 = vector.load %arg3[%c1, %c0_9, %c0_10] : memref<4x512x512xbf16, #tpu.memory_space<vmem>>, vector<1x512x512xbf16>
    %13 = vector.shape_cast %12 : vector<1x512x512xbf16> to vector<512x512xbf16>
    %cst_11 = arith.constant dense<0.000000e+00> : vector<2x512xf32>
    %14 = tpu.matmul %11, %13, %cst_11 {dimension_numbers = #tpu.dot_dimension_numbers<[1], [0], [0], [1], [0, 0, 1, 1], [], []>} : vector<2x512xbf16>, vector<512x512xbf16>, vector<2x512xf32> -> vector<2x512xf32>
    %15 = arith.addf %10, %14 : vector<2x512xf32>
    %16 = arith.truncf %15 : vector<2x512xf32> to vector<2x512xbf16>
    %c2 = arith.constant 2 : index
    %c0_12 = arith.constant 0 : index
    %c0_13 = arith.constant 0 : index
    %17 = vector.load %arg3[%c2, %c0_12, %c0_13] : memref<4x512x512xbf16, #tpu.memory_space<vmem>>, vector<1x512x512xbf16>
    %18 = vector.shape_cast %17 : vector<1x512x512xbf16> to vector<512x512xbf16>
    %cst_14 = arith.constant dense<0.000000e+00> : vector<2x512xf32>
    %19 = tpu.matmul %16, %18, %cst_14 {dimension_numbers = #tpu.dot_dimension_numbers<[1], [0], [0], [1], [0, 0, 1, 1], [], []>} : vector<2x512xbf16>, vector<512x512xbf16>, vector<2x512xf32> -> vector<2x512xf32>
    %20 = arith.addf %15, %19 : vector<2x512xf32>
    %21 = arith.truncf %20 : vector<2x512xf32> to vector<2x512xbf16>
    %c3 = arith.constant 3 : index
    %c0_15 = arith.constant 0 : index
    %c0_16 = arith.constant 0 : index
    %22 = vector.load %arg3[%c3, %c0_15, %c0_16] : memref<4x512x512xbf16, #tpu.memory_space<vmem>>, vector<1x512x512xbf16>
    %23 = vector.shape_cast %22 : vector<1x512x512xbf16> to vector<512x512xbf16>
    %cst_17 = arith.constant dense<0.000000e+00> : vector<2x512xf32>
    %24 = tpu.matmul %21, %23, %cst_17 {dimension_numbers = #tpu.dot_dimension_numbers<[1], [0], [0], [1], [0, 0, 1, 1], [], []>} : vector<2x512xbf16>, vector<512x512xbf16>, vector<2x512xf32> -> vector<2x512xf32>
    %25 = arith.addf %20, %24 : vector<2x512xf32>
    %c0_18 = arith.constant 0 : index
    %c0_19 = arith.constant 0 : index
    %26 = vector.load %arg10[%c0_18, %c0_19] : memref<2x512xf32, #tpu.memory_space<vmem>>, vector<2x512xf32>
    tpu.vector_store %arg10[%c0_18, %c0_19], %25 {strides = array<i32>} : memref<2x512xf32, #tpu.memory_space<vmem>>, vector<2x512xf32>,
    %27 = arith.truncf %25 : vector<2x512xf32> to vector<2x512xbf16>
    %c0_20 = arith.constant 0 : index
    %c0_21 = arith.constant 0 : index
    %28 = vector.load %arg4[%c0_20, %c0_21] : memref<512x128xbf16, #tpu.memory_space<vmem>>, vector<512x128xbf16>
    %cst_22 = arith.constant dense<0.000000e+00> : vector<2x128xf32>
    %29 = tpu.matmul %27, %28, %cst_22 {dimension_numbers = #tpu.dot_dimension_numbers<[1], [0], [0], [1], [0, 0, 1, 1], [], []>} : vector<2x512xbf16>, vector<512x128xbf16>, vector<2x128xf32> -> vector<2x128xf32>
    %c0_23 = arith.constant 0 : index
    %c0_24 = arith.constant 0 : index
    %30 = vector.load %arg5[%c0_23, %c0_24] : memref<1x128xf32, #tpu.memory_space<vmem>>, vector<1x128xf32>
    %31 = vector.broadcast %30 : vector<1x128xf32> to vector<2x128xf32>
    %32 = arith.addf %29, %31 : vector<2x128xf32>
    %c0_25 = arith.constant 0 : index
    %c0_26 = arith.constant 0 : index
    %33 = vector.load %arg8[%c0_25, %c0_26] : memref<2x128xf32, #tpu.memory_space<vmem>>, vector<2x128xf32>
    tpu.vector_store %arg8[%c0_25, %c0_26], %32 {strides = array<i32>} : memref<2x128xf32, #tpu.memory_space<vmem>>, vector<2x128xf32>,
    %c0_27 = arith.constant 0 : index
    %c0_28 = arith.constant 0 : index
    %34 = vector.load %arg6[%c0_27, %c0_28] : memref<512x512xbf16, #tpu.memory_space<vmem>>, vector<512x512xbf16>
    %cst_29 = arith.constant dense<0.000000e+00> : vector<2x512xf32>
    %35 = tpu.matmul %27, %34, %cst_29 {dimension_numbers = #tpu.dot_dimension_numbers<[1], [0], [0], [1], [0, 0, 1, 1], [], []>} : vector<2x512xbf16>, vector<512x512xbf16>, vector<2x512xf32> -> vector<2x512xf32>
    %c0_30 = arith.constant 0 : index
    %c0_31 = arith.constant 0 : index
    %36 = vector.load %arg7[%c0_30, %c0_31] : memref<1x512xf32, #tpu.memory_space<vmem>>, vector<1x512xf32>
    %37 = vector.broadcast %36 : vector<1x512xf32> to vector<2x512xf32>
    %38 = arith.addf %35, %37 : vector<2x512xf32>
    %c0_32 = arith.constant 0 : index
    %c0_33 = arith.constant 0 : index
    %39 = vector.load %arg9[%c0_32, %c0_33] : memref<2x512xf32, #tpu.memory_space<vmem>>, vector<2x512xf32>
    tpu.vector_store %arg9[%c0_32, %c0_33], %38 {strides = array<i32>} : memref<2x512xf32, #tpu.memory_space<vmem>>, vector<2x512xf32>,
    return
  }
}

</mosaic_0001>

<bundles_post_ra>
// kernel: fno_factorized_block_1d.1
= control target key start
LH: loop header
LB: loop body
LE: loop exit
PB: predicated region body
PF: predicated region fallthrough
CT: control target
= control target key end

     0   :  { %16 = vsyncpa [#allocation3], 0  ;;  %s10087_s0 = inlined_call_operand.vmem [shape: bf16[2,192], index: 0, kind: input, shape index: {}]   ;;  %s10088_s1 = inlined_call_operand.hbm [shape: bf16[192,512], index: 1, kind: input, shape index: {}]   ;;  %s10089_s2 = inlined_call_operand.hbm [shape: f32[1,512], index: 2, kind: input, shape index: {}]   ;;  %s10090_s3 = inlined_call_operand.hbm [shape: bf16[4,512,512], index: 3, kind: input, shape index: {}]   ;;  %s10091_s4 = inlined_call_operand.hbm [shape: bf16[512,128], index: 4, kind: input, shape index: {}]   ;;  %s10092_s5 = inlined_call_operand.hbm [shape: f32[1,128], index: 5, kind: input, shape index: {}]   ;;  %s10093_s6 = inlined_call_operand.hbm [shape: bf16[512,512], index: 6, kind: input, shape index: {}]   ;;  %s10094_s7 = inlined_call_operand.hbm [shape: f32[1,512], index: 7, kind: input, shape index: {}]   ;;  %s10095_s8 = inlined_call_operand.vmem [shape: f32[2,128], index: 8, kind: output, shape index: {0}]   ;;  %s10096_s9 = inlined_call_operand.vmem [shape: f32[2,512], index: 9, kind: output, shape index: {1}]   ;;  %s10097_s10 = inlined_call_operand.vmem [shape: f32[2,512], index: 10, kind: output, shape index: {2}]  }
   0x1   :  { %17 = vsyncpa [#allocation5], 0 }
   0x2   :  { %18 = vsyncpa [#allocation8], 0  ;;  %s40_s15 = sshll.u32 %s10089_s2, 4  ;;  %s41_s15 = int_to_ptr.hbm [resolvable:$true] %s40_s15 }
   0x3   :  { %19 = vsyncpa [#allocation11], 0  ;;  %s9624_s16 = smov [#allocation4]   ;;  %s63_s20 = sshll.u32 %s10091_s4, 4  ;;  %s64_s20 = int_to_ptr.hbm [resolvable:$true] %s63_s20 }
   0x4   :  { %s42_s17 = sshll.u32 %s9624_s16, 4  ;;  %s9625_s21 = smov [#allocation7]   ;;  %s43_s17 = int_to_ptr.vmem [resolvable:$true] %s42_s17 }
   0x5   :  { %45 = dma.hbm_to_vmem [thread:$0]  %s41_s15, 64, %s43_s17, [#allocation5]  }
   0x6   :  { %s65_s22 = sshll.u32 %s9625_s21, 4  ;;  %s9626_s23 = smov 64   ;;  %s66_s22 = int_to_ptr.vmem [resolvable:$true] %s65_s22 }
   0x7   :  { %s9627_s24 = smov 4   ;;  %s87_s2 = sshll.u32 %s10093_s6, 4  ;;  %s88_s2 = int_to_ptr.hbm [resolvable:$true] %s87_s2 }
   0x8   :  { %71 = dma.hbm_to_vmem [thread:$0]  %s64_s20, 4096, %s66_s22, [#allocation8], %s9626_s23, %s9626_s23, %s9627_s24  }
   0x9   :  { %s9628_s27 = smov [#allocation10]   ;;  %s26_s4 = sshll.u32 %s10088_s1, 4  ;;  %s27_s4 = int_to_ptr.hbm [resolvable:$true] %s26_s4 }
   0xa   :  { %s89_s28 = sshll.u32 %s9628_s27, 4  ;;  %s9629_s11 = smov 256   ;;  %s90_s28 = int_to_ptr.vmem [resolvable:$true] %s89_s28 }
   0xb   :  { %s9630_s12 = smov 16   ;;  %s9631_s13 = smov [#allocation2]  }
   0xc   :  { %95 = dma.hbm_to_vmem [thread:$0]  %s88_s2, 16384, %s90_s28, [#allocation11], %s9629_s11, %s9629_s11, %s9630_s12  }
   0xd   :  { %s28_s14 = sshll.u32 %s9631_s13, 4  ;;  %s50_s17 = sshll.u32 %s10090_s3, 4  ;;  %s29_s14 = int_to_ptr.vmem [resolvable:$true] %s28_s14  ;;  %s51_s17 = int_to_ptr.hbm [resolvable:$true] %s50_s17 }
   0xe   :  { %34 = dma.hbm_to_vmem [thread:$0]  %s27_s4, 6144, %s29_s14, [#allocation3], %s9629_s11, %s9629_s11, %s9630_s12  }
   0xf   :  { %s77_s19 = sshll.u32 %s10092_s5, 4  ;;  %s9632_s20 = smov [#allocation6]   ;;  %s78_s19 = int_to_ptr.hbm [resolvable:$true] %s77_s19 }
  0x10   :  { %s52_s21 = sshll.u32 %s9632_s20, 4  ;;  %s9633_s1 = smov [#allocation9]   ;;  %s53_s21 = int_to_ptr.vmem [resolvable:$true] %s52_s21 }
  0x11   :  { %58 = dma.hbm_to_vmem [thread:$0]  %s51_s17, 65536, %s53_s21, [#allocation5], %s9629_s11, %s9629_s11, %s9630_s12  }
  0x12   :  { %s79_s22 = sshll.u32 %s9633_s1, 4  ;;  %s101_s25 = sshll.u32 %s10094_s7, 4  ;;  %s80_s22 = int_to_ptr.vmem [resolvable:$true] %s79_s22  ;;  %s102_s25 = int_to_ptr.hbm [resolvable:$true] %s101_s25 }
  0x13   :  { %82 = dma.hbm_to_vmem [thread:$0]  %s78_s19, 16, %s80_s22, [#allocation8]  }
  0x14   :  { %s9634_s3 = smov [#allocation12]  }
  0x15   :  { %s103_s26 = sshll.u32 %s9634_s3, 4  ;;  %s104_s26 = int_to_ptr.vmem [resolvable:$true] %s103_s26 }
  0x16   :  { %106 = dma.hbm_to_vmem [thread:$0]  %s102_s25, 64, %s104_s26, [#allocation11]  }
  0x17   :  { %9616 = dma.done.wait [#allocation3], 6144  }
  0x18   :  { %9617 = vsyncadd [#allocation3], 4294961152 }
  0x19   :  { %9618 = dma.done.wait [#allocation5], 65600  }
  0x1a   :  { %9619 = vsyncadd [#allocation5], 4294901696 }
  0x1b   :  { %9620 = dma.done.wait [#allocation8], 4112  }
  0x1c   :  { %9621 = vsyncadd [#allocation8], 4294963184 }
  0x1d   :  { %9622 = dma.done.wait [#allocation11], 16448  }
  0x1e   :  { %9623 = vsyncadd [#allocation11], 4294950848  ;;  %v5946_v0 = vld [vmem:[#allocation2 + $0xe0] sm:$0xf]  ;;  %v8746_v1 = vld [vmem:[#allocation2 + $0xec] sm:$0xf0] }
  0x1f   :  { %v6010_v2 = vld [vmem:[#allocation2 + $0x160] sm:$0xf]  ;;  %v5947_v3 = vor.u32 %v8746_v1, %v5946_v0  ;;  %v8762_v4 = vld [vmem:[#allocation2 + $0x16c] sm:$0xf0]  ;;  %v8744_v5 = vld [vmem:[#allocation2 + $0xe4] sm:$0xf] }
  0x20   :  { %v5948_v6 = vld [vmem:[#allocation2 + $0xf0] sm:$0xf0]  ;;  %v6011_v7 = vor.u32 %v8762_v4, %v6010_v2  ;;  %v5930_v9 = vld [vmem:[#allocation2 + $0xc0] sm:$0xf]  ;;  %v8742_v10 = vld [vmem:[#allocation2 + $0xcc] sm:$0xf0] }
  0x21   :  { %v5951_v8 = vor.u32 %v8744_v5, %v5948_v6  ;;  %v5994_v11 = vld [vmem:[#allocation2 + $0x140] sm:$0xf]  ;;  %443 = vmatpush.bf16.msra.mxu0 %v5947_v3  ;;  %v5931_v12 = vor.u32 %v8742_v10, %v5930_v9  ;;  %v8758_v13 = vld [vmem:[#allocation2 + $0x14c] sm:$0xf0]  ;;  %v8740_v14 = vld [vmem:[#allocation2 + $0xc4] sm:$0xf] }
  0x22   :  { %v5932_v15 = vld [vmem:[#allocation2 + $0xd0] sm:$0xf0]  ;;  %460 = vmatpush.bf16.msra.mxu1 %v6011_v7  ;;  %v5995_v16 = vor.u32 %v8758_v13, %v5994_v11  ;;  %v5914_v18 = vld [vmem:[#allocation2 + $0xa0] sm:$0xf]  ;;  %v8738_v19 = vld [vmem:[#allocation2 + $0xac] sm:$0xf0] }
  0x23   :  { %469 = vmatpush.bf16.msra.mxu2 %v5951_v8  ;;  %v5935_v17 = vor.u32 %v8740_v14, %v5932_v15  ;;  %v5978_v20 = vld [vmem:[#allocation2 + $0x120] sm:$0xf]  ;;  %v8754_v21 = vld [vmem:[#allocation2 + $0x12c] sm:$0xf0]  ;;  %v8736_v22 = vld [vmem:[#allocation2 + $0xa4] sm:$0xf]  ;;  %v5915_v26 = vor.u32 %v8738_v19, %v5914_v18 }
  0x24   :  { %v5916_v23 = vld [vmem:[#allocation2 + $0xb0] sm:$0xf0]  ;;  %v8760_v24 = vld [vmem:[#allocation2 + $0x164] sm:$0xf]  ;;  %v5898_v28 = vld [vmem:[#allocation2 + $0x80] sm:$0xf]  ;;  %v5979_v30 = vor.u32 %v8754_v21, %v5978_v20 }
  0x25   :  { %v6012_v25 = vld [vmem:[#allocation2 + $0x170] sm:$0xf0]  ;;  %444 = vmatpush.bf16.msra.mxu0 %v5931_v12  ;;  %v8734_v29 = vld [vmem:[#allocation2 + $0x8c] sm:$0xf0]  ;;  %v5919_v31 = vor.u32 %v8736_v22, %v5916_v23  ;;  %v5962_v32 = vld [vmem:[#allocation2 + $0x100] sm:$0xf] }
  0x26   :  { %v6015_v27 = vor.u32 %v8760_v24, %v6012_v25  ;;  %461 = vmatpush.bf16.msra.mxu1 %v5995_v16  ;;  %v8750_v33 = vld [vmem:[#allocation2 + $0x10c] sm:$0xf0]  ;;  %v8756_v34 = vld [vmem:[#allocation2 + $0x144] sm:$0xf]  ;;  %v5900_v36 = vld [vmem:[#allocation2 + $0x90] sm:$0xf0]  ;;  %v5899_v41 = vor.u32 %v8734_v29, %v5898_v28 }
  0x27   :  { %470 = vmatpush.bf16.msra.mxu2 %v5935_v17  ;;  %v8732_v35 = vld [vmem:[#allocation2 + $0x84] sm:$0xf]  ;;  %v5996_v37 = vld [vmem:[#allocation2 + $0x150] sm:$0xf0]  ;;  %v5954_v39 = vld [vmem:[#allocation2 + $0xe8] sm:$0xf]  ;;  %v5963_v44 = vor.u32 %v8750_v33, %v5962_v32 }
  0x28   :  { %486 = vmatpush.bf16.msra.mxu3 %v6015_v27  ;;  %v5999_v38 = vor.u32 %v8756_v34, %v5996_v37  ;;  %v8747_v40 = vld [vmem:[#allocation2 + $0xf4] sm:$0xf0]  ;;  %v8752_v42 = vld [vmem:[#allocation2 + $0x124] sm:$0xf]  ;;  %v5980_v43 = vld [vmem:[#allocation2 + $0x130] sm:$0xf0]  ;;  %v5903_v45 = vor.u32 %v8732_v35, %v5900_v36 }
  0x29   :  { %445 = vmatpush.bf16.msra.mxu0 %v5915_v26  ;;  %v5882_v46 = vld [vmem:[#allocation2 + $0x60] sm:$0xf]  ;;  %v8730_v47 = vld [vmem:[#allocation2 + $0x6c] sm:$0xf0]  ;;  %v5955_v48 = vor.u32 %v8747_v40, %v5954_v39  ;;  %v8728_v49 = vld [vmem:[#allocation2 + $0x64] sm:$0xf]  ;;  %v5983_v51 = vor.u32 %v8752_v42, %v5980_v43 }
  0x2a   :  { %462 = vmatpush.bf16.msra.mxu1 %v5979_v30  ;;  %v5884_v50 = vld [vmem:[#allocation2 + $0x70] sm:$0xf0]  ;;  %v5938_v52 = vld [vmem:[#allocation2 + $0xc8] sm:$0xf]  ;;  %v8743_v53 = vld [vmem:[#allocation2 + $0xd4] sm:$0xf0]  ;;  %v5883_v56 = vor.u32 %v8730_v47, %v5882_v46 }
  0x2b   :  { %471 = vmatpush.bf16.msra.mxu2 %v5919_v31  ;;  %v8748_v54 = vld [vmem:[#allocation2 + $0x104] sm:$0xf]  ;;  %v5964_v55 = vld [vmem:[#allocation2 + $0x110] sm:$0xf0]  ;;  %v5866_v57 = vld [vmem:[#allocation2 + $0x40] sm:$0xf]  ;;  %v5887_v58 = vor.u32 %v8728_v49, %v5884_v50  ;;  %v5939_v62 = vor.u32 %v8743_v53, %v5938_v52 }
  0x2c   :  { %487 = vmatpush.bf16.msra.mxu3 %v5999_v38  ;;  %v8726_v59 = vld [vmem:[#allocation2 + $0x4c] sm:$0xf0]  ;;  %v8724_v60 = vld [vmem:[#allocation2 + $0x44] sm:$0xf]  ;;  %v136_v61 = vld [vmem:[%s10087_s0] sm:$0x3]  ;;  %v5967_v0 = vor.u32 %v8748_v54, %v5964_v55 }
  0x2d   :  { %446 = vmatpush.bf16.msra.mxu0 %v5899_v41  ;;  %v5868_v63 = vld [vmem:[#allocation2 + $0x50] sm:$0xf0]  ;;  %v5922_v1 = vld [vmem:[#allocation2 + $0xa8] sm:$0xf]  ;;  %196 = vst [vmem:[#allocation1] ss:$9 sm:$0xff] %v136_v61  ;;  %v5867_v5 = vor.u32 %v8726_v59, %v5866_v57 }
  0x2e   :  { %463 = vmatpush.bf16.msra.mxu1 %v5963_v44  ;;  %v8739_v2 = vld [vmem:[#allocation2 + $0xb4] sm:$0xf0]  ;;  %v6018_v3 = vld [vmem:[#allocation2 + $0x168] sm:$0xf]  ;;  %vm440_vm0 = vcmask 523264   ;;  %v5871_v7 = vor.u32 %v8724_v60, %v5868_v63  ;;  %vm4493_vm1 = vcmask 1041408  }
  0x2f   :  { %472 = vmatpush.bf16.msra.mxu2 %v5903_v45  ;;  %v8763_v4 = vld [vmem:[#allocation2 + $0x174] sm:$0xf0]  ;;  %v5850_v8 = vld [vmem:[#allocation2 + $0x20] sm:$0xf]  ;;  %v8722_v9 = vld [vmem:[#allocation2 + $0x2c] sm:$0xf0]  ;;  %v5923_v11 = vor.u32 %v8739_v2, %v5922_v1 }
  0x30   :  { %488 = vmatpush.bf16.msra.mxu3 %v5983_v51  ;;  %v6019_v6 = vor.u32 %v8763_v4, %v6018_v3  ;;  %v6002_v10 = vld [vmem:[#allocation2 + $0x148] sm:$0xf]  ;;  %v8720_v12 = vld [vmem:[#allocation2 + $0x24] sm:$0xf]  ;;  %v5852_v13 = vld [vmem:[#allocation2 + $0x30] sm:$0xf0]  ;;  %v5851_v19 = vor.u32 %v8722_v9, %v5850_v8 }
  0x31   :  { %447 = vmatpush.bf16.msra.mxu0 %v5883_v56  ;;  %v8759_v14 = vld [vmem:[#allocation2 + $0x154] sm:$0xf0]  ;;  %v5906_v15 = vld [vmem:[#allocation2 + $0x88] sm:$0xf]  ;;  %v5834_v17 = vld [vmem:[#allocation2] sm:$0xf]  ;;  %v5855_v23 = vor.u32 %v8720_v12, %v5852_v13 }
  0x32   :  { %495 = vmatpush.bf16.msrb.mxu1 %v5955_v48  ;;  %v8735_v16 = vld [vmem:[#allocation2 + $0x94] sm:$0xf0]  ;;  %v6003_v18 = vor.u32 %v8759_v14, %v6002_v10  ;;  %v8718_v20 = vld [vmem:[#allocation2 + $0xc] sm:$0xf0]  ;;  %v5986_v21 = vld [vmem:[#allocation2 + $0x128] sm:$0xf] }
  0x33   :  { %473 = vmatpush.bf16.msra.mxu2 %v5887_v58  ;;  %v8755_v22 = vld [vmem:[#allocation2 + $0x134] sm:$0xf0]  ;;  %v8716_v25 = vld [vmem:[#allocation2 + $0x4] sm:$0xf]  ;;  %v5836_v26 = vld [vmem:[#allocation2 + $0x10] sm:$0xf0]  ;;  %v5907_v27 = vor.u32 %v8735_v16, %v5906_v15  ;;  %v5835_v35 = vor.u32 %v8718_v20, %v5834_v17 }
  0x34   :  { %489 = vmatpush.bf16.msra.mxu3 %v5967_v0  ;;  %v9714_v24 = vld [vmem:[#allocation1 + $0x9] sm:$0xff]  ;;  %v8745_v29 = vld [vmem:[#allocation2 + $0xec] sm:$0xf]  ;;  %v5956_v30 = vld [vmem:[#allocation2 + $0xf8] sm:$0xf0]  ;;  %v5987_v32 = vor.u32 %v8755_v22, %v5986_v21  ;;  %v5839_v38 = vor.u32 %v8716_v25, %v5836_v26  ;;  %vm4495_vm2 = vcmask 1045508  }
  0x35   :  { %448 = vmatpush.bf16.msra.mxu0 %v5867_v5  ;;  %v5890_v28 = vld [vmem:[#allocation2 + $0x68] sm:$0xf]  ;;  %6024 = vmatmul.msk.bf16.vlgmr.msra.gmra.mxu1 %vm440_vm0, %v9714_v24  ;;  %v8731_v31 = vld [vmem:[#allocation2 + $0x74] sm:$0xf0]  ;;  %v8761_v33 = vld [vmem:[#allocation2 + $0x16c] sm:$0xf]  ;;  %v5959_v39 = vor.u32 %v8745_v29, %v5956_v30 }
  0x36   :  { %496 = vmatpush.bf16.msrb.mxu1 %v5939_v62  ;;  %v6020_v34 = vld [vmem:[#allocation2 + $0x178] sm:$0xf0]  ;;  %v5970_v36 = vld [vmem:[#allocation2 + $0x108] sm:$0xf]  ;;  %v8751_v37 = vld [vmem:[#allocation2 + $0x114] sm:$0xf0]  ;;  %v5891_v40 = vor.u32 %v8731_v31, %v5890_v28 }
  0x37   :  { %474 = vmatpush.bf16.msra.mxu2 %v5871_v7  ;;  %6025 = vmatmul.msk.bf16.vlgmr.msra.gmra.mxu3 %vm440_vm0, %v9714_v24  ;;  %v5874_v41 = vld [vmem:[#allocation2 + $0x48] sm:$0xf]  ;;  %v8741_v42 = vld [vmem:[#allocation2 + $0xcc] sm:$0xf]  ;;  %v5940_v43 = vld [vmem:[#allocation2 + $0xd8] sm:$0xf0]  ;;  %v6023_v44 = vor.u32 %v8761_v33, %v6020_v34  ;;  %v5971_v46 = vor.u32 %v8751_v37, %v5970_v36 }
  0x38   :  { %512 = vmatpush.bf16.msrb.mxu3 %v6019_v6  ;;  %v8727_v45 = vld [vmem:[#allocation2 + $0x54] sm:$0xf0]  ;;  %v8757_v47 = vld [vmem:[#allocation2 + $0x14c] sm:$0xf]  ;;  %v6004_v48 = vld [vmem:[#allocation2 + $0x158] sm:$0xf0]  ;;  %v5943_v50 = vor.u32 %v8741_v42, %v5940_v43 }
  0x39   :  { %449 = vmatpush.bf16.msra.mxu0 %v5851_v19  ;;  %v9720_v49 = vld [vmem:[#allocation1] sm:$0xff]  ;;  %v5858_v51 = vld [vmem:[#allocation2 + $0x28] sm:$0xf]  ;;  %v8737_v52 = vld [vmem:[#allocation2 + $0xac] sm:$0xf]  ;;  %v5875_v53 = vor.u32 %v8727_v45, %v5874_v41  ;;  %v6007_v55 = vor.u32 %v8757_v47, %v6004_v48  ;;  %vm4497_vm3 = vcmask 1043456  }
  0x3a   :  { %497 = vmatpush.bf16.msrb.mxu1 %v5923_v11  ;;  %v5924_v54 = vld [vmem:[#allocation2 + $0xb8] sm:$0xf0]  ;;  %v6142_v56 = vld [vmem:[#allocation6 + $0xe0] sm:$0xf]  ;;  %v8794_v57 = vld [vmem:[#allocation6 + $0xec] sm:$0xf0] }
  0x3b   :  { %475 = vmatpush.bf16.msra.mxu2 %v5855_v23  ;;  %v8723_v58 = vld [vmem:[#allocation2 + $0x34] sm:$0xf0]  ;;  %v6143_v59 = vor.u32 %v8794_v57, %v6142_v56  ;;  %v6126_v60 = vld [vmem:[#allocation6 + $0xc0] sm:$0xf]  ;;  %v8790_v61 = vld [vmem:[#allocation6 + $0xcc] sm:$0xf0]  ;;  %v5927_v0 = vor.u32 %v8737_v52, %v5924_v54 }
  0x3c   :  { %513 = vmatpush.bf16.msrb.mxu3 %v6003_v18  ;;  %v8753_v62 = vld [vmem:[#allocation2 + $0x12c] sm:$0xf]  ;;  %v5988_v63 = vld [vmem:[#allocation2 + $0x138] sm:$0xf0]  ;;  %v6127_v2 = vor.u32 %v8790_v61, %v6126_v60  ;;  %v5859_v3 = vor.u32 %v8723_v58, %v5858_v51  ;;  %v6110_v5 = vld [vmem:[#allocation6 + $0xa0] sm:$0xf] }
  0x3d   :  { %450 = vmatpush.bf16.msra.mxu0 %v5835_v35  ;;  %v8733_v1 = vld [vmem:[#allocation2 + $0x8c] sm:$0xf]  ;;  %v5908_v4 = vld [vmem:[#allocation2 + $0x98] sm:$0xf0]  ;;  %v8786_v6 = vld [vmem:[#allocation6 + $0xac] sm:$0xf0]  ;;  %v5991_v9 = vor.u32 %v8753_v62, %v5988_v63 }
  0x3e   :  { %498 = vmatpush.bf16.msrb.mxu1 %v5907_v27  ;;  %v5842_v7 = vld [vmem:[#allocation2 + $0x8] sm:$0xf]  ;;  %v8719_v8 = vld [vmem:[#allocation2 + $0x14] sm:$0xf0]  ;;  %v8749_v10 = vld [vmem:[#allocation2 + $0x10c] sm:$0xf]  ;;  %v5911_v14 = vor.u32 %v8733_v1, %v5908_v4  ;;  %v6111_v15 = vor.u32 %v8786_v6, %v6110_v5 }
  0x3f   :  { %476 = vmatpush.bf16.msra.mxu2 %v5839_v38  ;;  %v5972_v11 = vld [vmem:[#allocation2 + $0x118] sm:$0xf0]  ;;  %v6270_v12 = vld [vmem:[#allocation6 + $0x1e0] sm:$0xf]  ;;  %v8826_v13 = vld [vmem:[#allocation6 + $0x1ec] sm:$0xf0]  ;;  %v5843_v18 = vor.u32 %v8719_v8, %v5842_v7 }
  0x40   :  { %514 = vmatpush.bf16.msrb.mxu3 %v5987_v32  ;;  %451 = vmatmul.bf16.vlgmr.msra.gmra.mxu0 %v9720_v49  ;;  %v6398_v16 = vld [vmem:[#allocation6 + $0x2e0] sm:$0xf]  ;;  %v8858_v17 = vld [vmem:[#allocation6 + $0x2ec] sm:$0xf0]  ;;  %v8729_v19 = vld [vmem:[#allocation2 + $0x6c] sm:$0xf]  ;;  %v5975_v21 = vor.u32 %v8749_v10, %v5972_v11  ;;  %v6271_v22 = vor.u32 %v8826_v13, %v6270_v12 }
  0x41   :  { %521 = vmatpush.bf16.msrb.mxu0 %v5959_v39  ;;  %v5892_v20 = vld [vmem:[#allocation2 + $0x78] sm:$0xf0]  ;;  %v6094_v23 = vld [vmem:[#allocation6 + $0x80] sm:$0xf]  ;;  %v8782_v25 = vld [vmem:[#allocation6 + $0x8c] sm:$0xf0]  ;;  %v6399_v28 = vor.u32 %v8858_v17, %v6398_v16 }
  0x42   :  { %499 = vmatpush.bf16.msrb.mxu1 %v5891_v40  ;;  %477 = vmatmul.bf16.vlgmr.msra.gmra.mxu2 %v9720_v49  ;;  %v6254_v26 = vld [vmem:[#allocation6 + $0x1c0] sm:$0xf]  ;;  %v8822_v27 = vld [vmem:[#allocation6 + $0x1cc] sm:$0xf0]  ;;  %v5895_v29 = vor.u32 %v8729_v19, %v5892_v20  ;;  %v8725_v30 = vld [vmem:[#allocation2 + $0x4c] sm:$0xf]  ;;  %v6095_v32 = vor.u32 %v8782_v25, %v6094_v23 }
  0x43   :  { %538 = vmatpush.bf16.msrb.mxu2 %v6023_v44  ;;  %v5876_v31 = vld [vmem:[#allocation2 + $0x58] sm:$0xf0]  ;;  %v6382_v33 = vld [vmem:[#allocation6 + $0x2c0] sm:$0xf]  ;;  %v8854_v34 = vld [vmem:[#allocation6 + $0x2cc] sm:$0xf0]  ;;  %v6255_v35 = vor.u32 %v8822_v27, %v6254_v26 }
  0x44   :  { %515 = vmatpush.bf16.msrb.mxu3 %v5971_v46  ;;  %v6078_v36 = vld [vmem:[#allocation6 + $0x60] sm:$0xf]  ;;  %v8778_v37 = vld [vmem:[#allocation6 + $0x6c] sm:$0xf0]  ;;  %v5879_v40 = vor.u32 %v8725_v30, %v5876_v31  ;;  %v8721_v41 = vld [vmem:[#allocation2 + $0x2c] sm:$0xf]  ;;  %v6383_v42 = vor.u32 %v8854_v34, %v6382_v33 }
  0x45   :  { %522 = vmatpush.bf16.msrb.mxu0 %v5943_v50  ;;  %v6238_v38 = vld [vmem:[#allocation6 + $0x1a0] sm:$0xf]  ;;  %v8818_v39 = vld [vmem:[#allocation6 + $0x1ac] sm:$0xf0]  ;;  %v5860_v43 = vld [vmem:[#allocation2 + $0x38] sm:$0xf0]  ;;  %v6079_v44 = vor.u32 %v8778_v37, %v6078_v36 }
  0x46   :  { %500 = vmatpush.bf16.msrb.mxu1 %v5875_v53  ;;  %v6366_v45 = vld [vmem:[#allocation6 + $0x2a0] sm:$0xf]  ;;  %v8850_v46 = vld [vmem:[#allocation6 + $0x2ac] sm:$0xf0]  ;;  %v6239_v47 = vor.u32 %v8818_v39, %v6238_v38  ;;  %v5863_v53 = vor.u32 %v8721_v41, %v5860_v43  ;;  %v8717_v54 = vld [vmem:[#allocation2 + $0xc] sm:$0xf] }
  0x47   :  { %539 = vmatpush.bf16.msrb.mxu2 %v6007_v55  ;;  %6026 = vmatmul.msk.bf16.vlgmr.msrb.gmra.mxu3 %vm440_vm0, %v9714_v24  ;;  %v6062_v48 = vld [vmem:[#allocation6 + $0x40] sm:$0xf]  ;;  %v8774_v50 = vld [vmem:[#allocation6 + $0x4c] sm:$0xf0]  ;;  %v5844_v55 = vld [vmem:[#allocation2 + $0x18] sm:$0xf0]  ;;  %v6367_v56 = vor.u32 %v8850_v46, %v6366_v45 }
  0x48   :  { %1319 = vmatpush.bf16.msra.mxu3 %v6143_v59  ;;  %v6222_v51 = vld [vmem:[#allocation6 + $0x180] sm:$0xf]  ;;  %v8814_v52 = vld [vmem:[#allocation6 + $0x18c] sm:$0xf0]  ;;  %v6063_v57 = vor.u32 %v8774_v50, %v6062_v48  ;;  %v6144_v16 = vld [vmem:[#allocation6 + $0xf0] sm:$0xf0] }
  0x49   :  { %523 = vmatpush.bf16.msrb.mxu0 %v5927_v0  ;;  %v6046_v58 = vld [vmem:[#allocation6 + $0x20] sm:$0xf]  ;;  %v8846_v60 = vld [vmem:[#allocation6 + $0x28c] sm:$0xf0]  ;;  %v6223_v61 = vor.u32 %v8814_v52, %v6222_v51  ;;  %v6128_v30 = vld [vmem:[#allocation6 + $0xd0] sm:$0xf0] }
  0x4a   :  { %501 = vmatpush.bf16.msrb.mxu1 %v5859_v3  ;;  %v6350_v59 = vld [vmem:[#allocation6 + $0x280] sm:$0xf]  ;;  %v8770_v62 = vld [vmem:[#allocation6 + $0x2c] sm:$0xf0]  ;;  %v8784_v41 = vld [vmem:[#allocation6 + $0xa4] sm:$0xf] }
  0x4b   :  { %540 = vmatpush.bf16.msrb.mxu2 %v5991_v9  ;;  %v6526_v63 = vld [vmem:[#allocation6 + $0x3e0] sm:$0xf]  ;;  %v8890_v0 = vld [vmem:[#allocation6 + $0x3ec] sm:$0xf0]  ;;  %v6351_v3 = vor.u32 %v8846_v60, %v6350_v59  ;;  %v6047_v4 = vor.u32 %v8770_v62, %v6046_v58  ;;  %v6272_v43 = vld [vmem:[#allocation6 + $0x1f0] sm:$0xf0] }
  0x4c   :  { %1320 = vmatpush.bf16.msra.mxu3 %v6127_v2  ;;  %v6206_v1 = vld [vmem:[#allocation6 + $0x160] sm:$0xf]  ;;  %v5847_v2 = vor.u32 %v8717_v54, %v5844_v55  ;;  %v8842_v8 = vld [vmem:[#allocation6 + $0x26c] sm:$0xf0]  ;;  %v6527_v9 = vor.u32 %v8890_v0, %v6526_v63  ;;  %v8856_v48 = vld [vmem:[#allocation6 + $0x2e4] sm:$0xf] }
  0x4d   :  { %524 = vmatpush.bf16.msrb.mxu0 %v5911_v14  ;;  %v6190_v5 = vld [vmem:[#allocation6 + $0x140] sm:$0xf]  ;;  %v8766_v11 = vld [vmem:[#allocation6 + $0xc] sm:$0xf0]  ;;  %v6400_v52 = vld [vmem:[#allocation6 + $0x2f0] sm:$0xf0] }
  0x4e   :  { %502 = vmatpush.bf16.msrb.mxu1 %v5843_v18  ;;  %v6030_v6 = vld [vmem:[#allocation6] sm:$0xf]  ;;  %v8886_v13 = vld [vmem:[#allocation6 + $0x3cc] sm:$0xf0]  ;;  %v8820_v58 = vld [vmem:[#allocation6 + $0x1c4] sm:$0xf] }
  0x4f   :  { %541 = vmatpush.bf16.msrb.mxu2 %v5975_v21  ;;  %v6334_v7 = vld [vmem:[#allocation6 + $0x260] sm:$0xf]  ;;  %v8806_v14 = vld [vmem:[#allocation6 + $0x14c] sm:$0xf0]  ;;  %v6031_v18 = vor.u32 %v8766_v11, %v6030_v6  ;;  %v6256_v59 = vld [vmem:[#allocation6 + $0x1d0] sm:$0xf0] }
  0x50   :  { %1321 = vmatpush.bf16.msra.mxu3 %v6111_v15  ;;  %v6510_v12 = vld [vmem:[#allocation6 + $0x3c0] sm:$0xf]  ;;  %v8792_v15 = vld [vmem:[#allocation6 + $0xe4] sm:$0xf]  ;;  %v6335_v17 = vor.u32 %v8842_v8, %v6334_v7  ;;  %v8838_v20 = vld [vmem:[#allocation6 + $0x24c] sm:$0xf0] }
  0x51   :  { %503 = vmatmul.bf16.vlgmr.msrb.gmra.mxu1 %v9720_v49  ;;  %525 = vmatpush.bf16.msrb.mxu0 %v5895_v29  ;;  %v6318_v19 = vld [vmem:[#allocation6 + $0x240] sm:$0xf]  ;;  %v6511_v21 = vor.u32 %v8886_v13, %v6510_v12  ;;  %v6147_v23 = vor.u32 %v8792_v15, %v6144_v16  ;;  %v8882_v27 = vld [vmem:[#allocation6 + $0x3ac] sm:$0xf0]  ;;  %v8788_v29 = vld [vmem:[#allocation6 + $0xc4] sm:$0xf] }
  0x52   :  { %1332 = vmatpush.bf16.msra.mxu1 %v6271_v22  ;;  %6027 = vmatmul.msk.bf16.vlgmr.msrb.gmra.mxu2 %vm440_vm0, %v9714_v24  ;;  %v8810_v24 = vld [vmem:[#allocation6 + $0x16c] sm:$0xf0]  ;;  %v6191_v22 = vor.u32 %v8806_v14, %v6190_v5  ;;  %v6174_v25 = vld [vmem:[#allocation6 + $0x120] sm:$0xf]  ;;  %v6319_v31 = vor.u32 %v8838_v20, %v6318_v19  ;;  %v6131_v36 = vor.u32 %v8788_v29, %v6128_v30  ;;  %v8852_v0 = vld [vmem:[#allocation6 + $0x2c4] sm:$0xf] }
  0x53   :  { %1345 = vmatpush.bf16.msra.mxu2 %v6399_v28  ;;  %v6207_v10 = vor.u32 %v8810_v24, %v6206_v1  ;;  %v6494_v26 = vld [vmem:[#allocation6 + $0x3a0] sm:$0xf]  ;;  %v8802_v28 = vld [vmem:[#allocation6 + $0x12c] sm:$0xf0]  ;;  %v6384_v1 = vld [vmem:[#allocation6 + $0x2d0] sm:$0xf0]  ;;  %v6259_v24 = vor.u32 %v8820_v58, %v6256_v59 }
  0x54   :  { %1322 = vmatpush.bf16.msra.mxu3 %v6095_v32  ;;  %v6302_v32 = vld [vmem:[#allocation6 + $0x220] sm:$0xf]  ;;  %v8834_v33 = vld [vmem:[#allocation6 + $0x22c] sm:$0xf0]  ;;  %v6495_v34 = vor.u32 %v8882_v27, %v6494_v26  ;;  %v6240_v5 = vld [vmem:[#allocation6 + $0x1b0] sm:$0xf0]  ;;  %v6387_v6 = vor.u32 %v8852_v0, %v6384_v1 }
  0x55   :  { %526 = vmatpush.bf16.msrb.mxu0 %v5879_v40  ;;  %v6158_v37 = vld [vmem:[#allocation6 + $0x100] sm:$0xf]  ;;  %v8878_v39 = vld [vmem:[#allocation6 + $0x38c] sm:$0xf0]  ;;  %v8772_v14 = vld [vmem:[#allocation6 + $0x44] sm:$0xf] }
  0x56   :  { %1333 = vmatpush.bf16.msra.mxu1 %v6255_v35  ;;  %v6175_v35 = vor.u32 %v8802_v28, %v6174_v25  ;;  %v6478_v38 = vld [vmem:[#allocation6 + $0x380] sm:$0xf]  ;;  %v8798_v40 = vld [vmem:[#allocation6 + $0x10c] sm:$0xf0]  ;;  %v6064_v16 = vld [vmem:[#allocation6 + $0x50] sm:$0xf0] }
  0x57   :  { %1346 = vmatpush.bf16.msra.mxu2 %v6383_v42  ;;  %v8824_v42 = vld [vmem:[#allocation6 + $0x1e4] sm:$0xf]  ;;  %v6286_v45 = vld [vmem:[#allocation6 + $0x200] sm:$0xf]  ;;  %v8830_v46 = vld [vmem:[#allocation6 + $0x20c] sm:$0xf0]  ;;  %v6159_v50 = vor.u32 %v8798_v40, %v6158_v37 }
  0x58   :  { %1323 = vmatpush.bf16.msra.mxu3 %v6079_v44  ;;  %v6303_v44 = vor.u32 %v8834_v33, %v6302_v32  ;;  %v8874_v54 = vld [vmem:[#allocation6 + $0x36c] sm:$0xf0]  ;;  %v6275_v55 = vor.u32 %v8824_v42, %v6272_v43  ;;  %v6287_v60 = vor.u32 %v8830_v46, %v6286_v45  ;;  %v6446_v12 = vld [vmem:[#allocation6 + $0x340] sm:$0xf]  ;;  %v6368_v19 = vld [vmem:[#allocation6 + $0x2b0] sm:$0xf0] }
  0x59   :  { %527 = vmatpush.bf16.msrb.mxu0 %v5863_v53  ;;  %v6462_v53 = vld [vmem:[#allocation6 + $0x360] sm:$0xf]  ;;  %v8870_v13 = vld [vmem:[#allocation6 + $0x34c] sm:$0xf0]  ;;  %v8768_v27 = vld [vmem:[#allocation6 + $0x24] sm:$0xf] }
  0x5a   :  { %1334 = vmatpush.bf16.msra.mxu1 %v6239_v47  ;;  %v6479_v47 = vor.u32 %v8878_v39, %v6478_v38  ;;  %v6463_v62 = vor.u32 %v8874_v54, %v6462_v53  ;;  %v6447_v15 = vor.u32 %v8870_v13, %v6446_v12  ;;  %v6430_v25 = vld [vmem:[#allocation6 + $0x320] sm:$0xf]  ;;  %v8866_v26 = vld [vmem:[#allocation6 + $0x32c] sm:$0xf0]  ;;  %v6048_v29 = vld [vmem:[#allocation6 + $0x30] sm:$0xf0] }
  0x5b   :  { %1347 = vmatpush.bf16.msra.mxu2 %v6367_v56  ;;  %v8780_v56 = vld [vmem:[#allocation6 + $0x84] sm:$0xf]  ;;  %v6431_v28 = vor.u32 %v8866_v26, %v6430_v25  ;;  %v6051_v32 = vor.u32 %v8768_v27, %v6048_v29  ;;  %v6414_v37 = vld [vmem:[#allocation6 + $0x300] sm:$0xf]  ;;  %v8862_v38 = vld [vmem:[#allocation6 + $0x30c] sm:$0xf0] }
  0x5c   :  { %1324 = vmatpush.bf16.msra.mxu3 %v6063_v57  ;;  %v6096_v57 = vld [vmem:[#allocation6 + $0x90] sm:$0xf0]  ;;  %v8844_v30 = vld [vmem:[#allocation6 + $0x284] sm:$0xf]  ;;  %v6415_v40 = vor.u32 %v8862_v38, %v6414_v37  ;;  %v9730_v12 = vld [vmem:[#allocation4] sm:$0xf] }
  0x5d   :  { %528 = vmatpush.bf16.msrb.mxu0 %v5847_v2  ;;  %v6099_v63 = vor.u32 %v8780_v56, %v6096_v57  ;;  %v8776_v2 = vld [vmem:[#allocation6 + $0x64] sm:$0xf]  ;;  %v6336_v43 = vld [vmem:[#allocation6 + $0x270] sm:$0xf0]  ;;  %v6150_v25 = vld [vmem:[#allocation6 + $0xe8] sm:$0xf] }
  0x5e   :  { %1335 = vmatpush.bf16.msra.mxu1 %v6223_v61  ;;  %v6403_v61 = vor.u32 %v8856_v48, %v6400_v52  ;;  %v8764_v39 = vld [vmem:[#allocation6 + $0x4] sm:$0xf]  ;;  %v6528_v45 = vld [vmem:[#allocation6 + $0x3f0] sm:$0xf0]  ;;  %v8795_v26 = vld [vmem:[#allocation6 + $0xf4] sm:$0xf0] }
  0x5f   :  { %1348 = vmatpush.bf16.msra.mxu2 %v6351_v3  ;;  %v6080_v3 = vld [vmem:[#allocation6 + $0x70] sm:$0xf0]  ;;  %v8800_v48 = vld [vmem:[#allocation6 + $0x124] sm:$0xf] }
  0x60   :  { %1325 = vmatpush.bf16.msra.mxu3 %v6047_v4  ;;  %529 = vmatmul.bf16.vlgmr.msrb.gmra.mxu0 %v9720_v49  ;;  %v6112_v49 = vld [vmem:[#allocation6 + $0xb0] sm:$0xf0]  ;;  %v8816_v4 = vld [vmem:[#allocation6 + $0x1a4] sm:$0xf]  ;;  %v6083_v7 = vor.u32 %v8776_v2, %v6080_v3 }
  0x61   :  { %1358 = vmatpush.bf16.msra.mxu0 %v6527_v9  ;;  %v6115_v51 = vor.u32 %v8784_v41, %v6112_v49  ;;  %v6243_v8 = vor.u32 %v8816_v4, %v6240_v5  ;;  %v8812_v9 = vld [vmem:[#allocation6 + $0x184] sm:$0xf]  ;;  %v6032_v41 = vld [vmem:[#allocation6 + $0x10] sm:$0xf0] }
  0x62   :  { %1336 = vmatpush.bf16.msra.mxu1 %v6207_v10  ;;  %v6224_v10 = vld [vmem:[#allocation6 + $0x190] sm:$0xf0]  ;;  %v8840_v49 = vld [vmem:[#allocation6 + $0x264] sm:$0xf]  ;;  %v6035_v42 = vor.u32 %v8764_v39, %v6032_v41  ;;  %v6278_v41 = vld [vmem:[#allocation6 + $0x1e8] sm:$0xf] }
  0x63   :  { %1349 = vmatpush.bf16.msra.mxu2 %v6335_v17  ;;  %v6227_v11 = vor.u32 %v8812_v9, %v6224_v10  ;;  %v6067_v17 = vor.u32 %v8772_v14, %v6064_v16  ;;  %v6339_v46 = vor.u32 %v8840_v49, %v6336_v43  ;;  %v8836_v52 = vld [vmem:[#allocation6 + $0x244] sm:$0xf]  ;;  %v6320_v53 = vld [vmem:[#allocation6 + $0x250] sm:$0xf0]  ;;  %v8827_v49 = vld [vmem:[#allocation6 + $0x1f4] sm:$0xf0] }
  0x64   :  { %1326 = vmatpush.bf16.msra.mxu3 %v6031_v18  ;;  %v8848_v18 = vld [vmem:[#allocation6 + $0x2a4] sm:$0xf]  ;;  %v6512_v56 = vld [vmem:[#allocation6 + $0x3d0] sm:$0xf0]  ;;  %v8787_v43 = vld [vmem:[#allocation6 + $0xb4] sm:$0xf0] }
  0x65   :  { %1359 = vmatpush.bf16.msra.mxu0 %v6511_v21  ;;  %v6371_v20 = vor.u32 %v8848_v18, %v6368_v19  ;;  %v8808_v21 = vld [vmem:[#allocation6 + $0x164] sm:$0xf]  ;;  %v6160_v59 = vld [vmem:[#allocation6 + $0x110] sm:$0xf0] }
  0x66   :  { %1337 = vmatpush.bf16.msra.mxu1 %v6191_v22  ;;  %v6208_v22 = vld [vmem:[#allocation6 + $0x170] sm:$0xf0]  ;;  %v8884_v54 = vld [vmem:[#allocation6 + $0x3c4] sm:$0xf] }
  0x67   :  { %1350 = vmatpush.bf16.msra.mxu2 %v6319_v31  ;;  %v6352_v31 = vld [vmem:[#allocation6 + $0x290] sm:$0xf0]  ;;  %v6515_v57 = vor.u32 %v8884_v54, %v6512_v56  ;;  %v8796_v58 = vld [vmem:[#allocation6 + $0x104] sm:$0xf]  ;;  %v8783_v54 = vld [vmem:[#allocation6 + $0x94] sm:$0xf0] }
  0x68   :  { %1371 = vmatpush.bf16.msrb.mxu3 %v6147_v23  ;;  %v6211_v23 = vor.u32 %v8808_v21, %v6208_v22  ;;  %v6355_v33 = vor.u32 %v8844_v30, %v6352_v31  ;;  %v6496_v1 = vld [vmem:[#allocation6 + $0x3b0] sm:$0xf0]  ;;  %v8828_v2 = vld [vmem:[#allocation6 + $0x204] sm:$0xf]  ;;  %v188_v31 = vperm.slane %v9730_v12, 1 }
  0x69   :  { %1360 = vmatpush.bf16.msra.mxu0 %v6495_v34  ;;  %v8804_v34 = vld [vmem:[#allocation6 + $0x144] sm:$0xf]  ;;  %v6288_v3 = vld [vmem:[#allocation6 + $0x210] sm:$0xf0] }
  0x6a   :  { %1338 = vmatpush.bf16.msra.mxu1 %v6175_v35  ;;  %v6192_v35 = vld [vmem:[#allocation6 + $0x150] sm:$0xf0]  ;;  %v8876_v4 = vld [vmem:[#allocation6 + $0x384] sm:$0xf]  ;;  %v6291_v5 = vor.u32 %v8828_v2, %v6288_v3 }
  0x6b   :  { %1351 = vmatpush.bf16.msra.mxu2 %v6303_v44  ;;  %v8888_v44 = vld [vmem:[#allocation6 + $0x3e4] sm:$0xf]  ;;  %v6464_v9 = vld [vmem:[#allocation6 + $0x370] sm:$0xf0] }
  0x6c   :  { %1372 = vmatpush.bf16.msrb.mxu3 %v6131_v36  ;;  %v6195_v36 = vor.u32 %v8804_v34, %v6192_v35  ;;  %v8868_v13 = vld [vmem:[#allocation6 + $0x344] sm:$0xf]  ;;  %v6448_v14 = vld [vmem:[#allocation6 + $0x350] sm:$0xf0]  ;;  %v6134_v35 = vld [vmem:[#allocation6 + $0xc8] sm:$0xf] }
  0x6d   :  { %1361 = vmatpush.bf16.msra.mxu0 %v6479_v47  ;;  %v6531_v47 = vor.u32 %v8888_v44, %v6528_v45  ;;  %v8864_v18 = vld [vmem:[#allocation6 + $0x324] sm:$0xf]  ;;  %v6432_v19 = vld [vmem:[#allocation6 + $0x330] sm:$0xf0]  ;;  %v189_v45 = vperm.slane %v9730_v12, 2 }
  0x6e   :  { %1339 = vmatpush.bf16.msra.mxu1 %v6159_v50  ;;  %v6176_v50 = vld [vmem:[#allocation6 + $0x130] sm:$0xf0]  ;;  %v8860_v27 = vld [vmem:[#allocation6 + $0x304] sm:$0xf] }
  0x6f   :  { %1352 = vmatpush.bf16.msra.mxu2 %v6287_v60  ;;  %v6163_v60 = vor.u32 %v8796_v58, %v6160_v59  ;;  %v6406_v59 = vld [vmem:[#allocation6 + $0x2e8] sm:$0xf] }
  0x70   :  { %1373 = vmatpush.bf16.msrb.mxu3 %v6115_v51  ;;  %v6179_v51 = vor.u32 %v8800_v48, %v6176_v50  ;;  %v6262_v50 = vld [vmem:[#allocation6 + $0x1c8] sm:$0xf] }
  0x71   :  { %1362 = vmatpush.bf16.msra.mxu0 %v6463_v62  ;;  %v6304_v62 = vld [vmem:[#allocation6 + $0x230] sm:$0xf0] }
  0x72   :  { %1384 = vmatpush.bf16.msrb.mxu1 %v6275_v55  ;;  %v6323_v55 = vor.u32 %v8836_v52, %v6320_v53  ;;  %v6102_v53 = vld [vmem:[#allocation6 + $0x88] sm:$0xf] }
  0x73   :  { %1397 = vmatpush.bf16.msrb.mxu2 %v6403_v61  ;;  %v8832_v61 = vld [vmem:[#allocation6 + $0x224] sm:$0xf] }
  0x74   :  { %1374 = vmatpush.bf16.msrb.mxu3 %v6099_v63  ;;  %v8880_v63 = vld [vmem:[#allocation6 + $0x3a4] sm:$0xf]  ;;  %v6307_v0 = vor.u32 %v8832_v61, %v6304_v62  ;;  %v6103_v61 = vor.u32 %v8783_v54, %v6102_v53  ;;  %v6246_v62 = vld [vmem:[#allocation6 + $0x1a8] sm:$0xf]  ;;  %v8803_v53 = vld [vmem:[#allocation6 + $0x134] sm:$0xf0] }
  0x75   :  { %1363 = vmatpush.bf16.msra.mxu0 %v6447_v15  ;;  %v6451_v15 = vor.u32 %v8868_v13, %v6448_v14  ;;  %v8775_v13 = vld [vmem:[#allocation6 + $0x54] sm:$0xf0] }
  0x76   :  { %1385 = vmatpush.bf16.msrb.mxu1 %v6259_v24  ;;  %v6499_v24 = vor.u32 %v8880_v63, %v6496_v1  ;;  %v8819_v63 = vld [vmem:[#allocation6 + $0x1b4] sm:$0xf0]  ;;  %v6086_v1 = vld [vmem:[#allocation6 + $0x68] sm:$0xf] }
  0x77   :  { %1398 = vmatpush.bf16.msrb.mxu2 %v6387_v6  ;;  %v6480_v6 = vld [vmem:[#allocation6 + $0x390] sm:$0xf0] }
  0x78   :  { %1375 = vmatpush.bf16.msrb.mxu3 %v6083_v7  ;;  %v6483_v7 = vor.u32 %v8876_v4, %v6480_v6  ;;  %v6247_v4 = vor.u32 %v8819_v63, %v6246_v62  ;;  %v8855_v6 = vld [vmem:[#allocation6 + $0x2d4] sm:$0xf0]  ;;  %v8789_v63 = vld [vmem:[#allocation6 + $0xcc] sm:$0xf] }
  0x79   :  { %1364 = vmatpush.bf16.msra.mxu0 %v6431_v28  ;;  %v6416_v28 = vld [vmem:[#allocation6 + $0x310] sm:$0xf0]  ;;  %v8839_v62 = vld [vmem:[#allocation6 + $0x254] sm:$0xf0] }
  0x7a   :  { %1386 = vmatpush.bf16.msrb.mxu1 %v6243_v8  ;;  %v8872_v8 = vld [vmem:[#allocation6 + $0x364] sm:$0xf]  ;;  %v6419_v30 = vor.u32 %v8860_v27, %v6416_v28  ;;  %v190_v27 = vperm.slane %v9730_v12, 3 }
  0x7b   :  { %1399 = vmatpush.bf16.msrb.mxu2 %v6371_v20  ;;  %v6467_v10 = vor.u32 %v8872_v8, %v6464_v9  ;;  %v6435_v20 = vor.u32 %v8864_v18, %v6432_v19  ;;  %v6230_v8 = vld [vmem:[#allocation6 + $0x188] sm:$0xf]  ;;  %v8815_v9 = vld [vmem:[#allocation6 + $0x194] sm:$0xf0] }
  0x7c   :  { %1376 = vmatpush.bf16.msrb.mxu3 %v6067_v17  ;;  %v187_v17 = vperm.slane %v9730_v12, 0  ;;  %v6374_v18 = vld [vmem:[#allocation6 + $0x2a8] sm:$0xf]  ;;  %v8851_v19 = vld [vmem:[#allocation6 + $0x2b4] sm:$0xf0] }
  0x7d   :  { %1365 = vmatpush.bf16.msra.mxu0 %v6415_v40 }
  0x7e   :  { %1387 = vmatpush.bf16.msrb.mxu1 %v6227_v11 }
  0x7f   :  { %1400 = vmatpush.bf16.msrb.mxu2 %v6355_v33 }
  0x80   :  { %1377 = vmatpush.bf16.msrb.mxu3 %v6051_v32  ;;  %v6151_v32 = vor.u32 %v8795_v26, %v6150_v25  ;;  %v8771_v25 = vld [vmem:[#allocation6 + $0x34] sm:$0xf0]  ;;  %v6375_v26 = vor.u32 %v8851_v19, %v6374_v18 }
  0x81   :  { %1410 = vmatpush.bf16.msrb.mxu0 %v6531_v47 }
  0x82   :  { %1388 = vmatpush.bf16.msrb.mxu1 %v6211_v23 }
  0x83   :  { %1401 = vmatpush.bf16.msrb.mxu2 %v6339_v46  ;;  %v6279_v46 = vor.u32 %v8827_v49, %v6278_v41  ;;  %v6342_v41 = vld [vmem:[#allocation6 + $0x268] sm:$0xf] }
  0x84   :  { %1378 = vmatpush.bf16.msrb.mxu3 %v6035_v42  ;;  %v6118_v42 = vld [vmem:[#allocation6 + $0xa8] sm:$0xf] }
  0x85   :  { %1411 = vmatpush.bf16.msrb.mxu0 %v6515_v57  ;;  %v6119_v48 = vor.u32 %v8787_v43, %v6118_v42  ;;  %v6534_v49 = vld [vmem:[#allocation6 + $0x3e8] sm:$0xf]  ;;  %v8891_v42 = vld [vmem:[#allocation6 + $0x3f4] sm:$0xf0] }
  0x86   :  { %1389 = vmatpush.bf16.msrb.mxu1 %v6195_v36  ;;  %v8791_v36 = vld [vmem:[#allocation6 + $0xd4] sm:$0xf0]  ;;  %v6535_v54 = vor.u32 %v8891_v42, %v6534_v49 }
  0x87   :  { %1402 = vmatpush.bf16.msrb.mxu2 %v6323_v55  ;;  %v6135_v39 = vor.u32 %v8791_v36, %v6134_v35  ;;  %v8807_v35 = vld [vmem:[#allocation6 + $0x154] sm:$0xf0] }
  0x88   :  { %v8875_v49 = vld [vmem:[#allocation6 + $0x374] sm:$0xf0] }
  0x89   :  { %1412 = vmatpush.bf16.msrb.mxu0 %v6499_v24  ;;  %v8779_v24 = vld [vmem:[#allocation6 + $0x74] sm:$0xf0] }
  0x8a   :  { %1390 = vmatpush.bf16.msrb.mxu1 %v6179_v51  ;;  %v8823_v51 = vld [vmem:[#allocation6 + $0x1d4] sm:$0xf0] }
  0x8b   :  { %1403 = vmatpush.bf16.msrb.mxu2 %v6307_v0  ;;  %v6263_v58 = vor.u32 %v8823_v51, %v6262_v50 }
  0x8d   :  { %1413 = vmatpush.bf16.msrb.mxu0 %v6483_v7  ;;  %v6087_v7 = vor.u32 %v8779_v24, %v6086_v1  ;;  %v6136_v1 = vld [vmem:[#allocation6 + $0xd8] sm:$0xf0]  ;;  %v6166_v24 = vld [vmem:[#allocation6 + $0x108] sm:$0xf] }
  0x8e   :  { %1391 = vmatpush.bf16.msrb.mxu1 %v6163_v60  ;;  %v8859_v60 = vld [vmem:[#allocation6 + $0x2f4] sm:$0xf0] }
  0x8f   :  { %1404 = vmatpush.bf16.msrb.mxu2 %v6291_v5  ;;  %v6407_v2 = vor.u32 %v8859_v60, %v6406_v59  ;;  %v6390_v5 = vld [vmem:[#allocation6 + $0x2c8] sm:$0xf]  ;;  %v8887_v60 = vld [vmem:[#allocation6 + $0x3d4] sm:$0xf0] }
  0x90   :  { %v6518_v59 = vld [vmem:[#allocation6 + $0x3c8] sm:$0xf] }
  0x91   :  { %1414 = vmatpush.bf16.msrb.mxu0 %v6467_v10 }
  0x95   :  { %1415 = vmatpush.bf16.msrb.mxu0 %v6451_v15  ;;  %v6391_v15 = vor.u32 %v8855_v6, %v6390_v5  ;;  %v6519_v5 = vor.u32 %v8887_v60, %v6518_v59  ;;  %v8825_v6 = vld [vmem:[#allocation6 + $0x1ec] sm:$0xf]  ;;  %v6072_v60 = vld [vmem:[#allocation6 + $0x58] sm:$0xf0] }
  0x96   :  { %v8773_v59 = vld [vmem:[#allocation6 + $0x4c] sm:$0xf] }
  0x99   :  { %1416 = vmatpush.bf16.msrb.mxu0 %v6435_v20 }
  0x9d   :  { %1417 = vmatpush.bf16.msrb.mxu0 %v6419_v30  ;;  %v6358_v30 = vld [vmem:[#allocation6 + $0x288] sm:$0xf] }
  0xb2   :  { %v465_v11 = vpop.f32.mrf.mxu1 }
  0xba   :  { %v491_v16 = vpop.f32.mrf.mxu3  ;;  %v467_v22 = vpop.f32.mrf.mxu1 }
  0xbb   :  { %v8811_v22 = vld [vmem:[#allocation6 + $0x174] sm:$0xf0] }
  0xbd   :  { %v452_v21 = vpop.f32.mrf.mxu0 }
  0xbe   :  { %v453_v23 = vadd.f32 %v452_v21, %v187_v17  ;;  %v6231_v17 = vor.u32 %v8815_v9, %v6230_v8  ;;  %v6214_v21 = vld [vmem:[#allocation6 + $0x168] sm:$0xf]  ;;  %v6139_v9 = vor.u32 %v8789_v63, %v6136_v1  ;;  %v6376_v63 = vld [vmem:[#allocation6 + $0x2b8] sm:$0xf0] }
  0xbf   :  { %v6215_v28 = vor.u32 %v8811_v22, %v6214_v21  ;;  %v6264_v21 = vld [vmem:[#allocation6 + $0x1d8] sm:$0xf0] }
  0xc0   :  { %v9733_v29 = vadd.f32 %v465_v11, %v453_v23  ;;  %v6070_v11 = vld [vmem:[#allocation6 + $0x48] sm:$0xf] }
  0xc1   :  { %v6071_v20 = vor.u32 %v8775_v13, %v6070_v11  ;;  %v6054_v23 = vld [vmem:[#allocation6 + $0x28] sm:$0xf]  ;;  %v8883_v13 = vld [vmem:[#allocation6 + $0x3b4] sm:$0xf0] }
  0xc2   :  { %v9738_v33 = vpack.c.bf16 %v9733_v29, %v9733_v29  ;;  %v493_v34 = vpop.f32.mrf.mxu3  ;;  %v6502_v11 = vld [vmem:[#allocation6 + $0x3a8] sm:$0xf] }
  0xc3   :  { %v6198_v34 = vld [vmem:[#allocation6 + $0x148] sm:$0xf]  ;;  %v6503_v19 = vor.u32 %v8883_v13, %v6502_v11  ;;  %v8845_v11 = vld [vmem:[#allocation6 + $0x28c] sm:$0xf]  ;;  %v6360_v13 = vld [vmem:[#allocation6 + $0x298] sm:$0xf0] }
  0xc4   :  { %1327 = vmatmul.bf16.vlgmr.msra.gmra.mxu3 %v9738_v33  ;;  %v6199_v43 = vor.u32 %v8807_v35, %v6198_v34  ;;  %v8857_v34 = vld [vmem:[#allocation6 + $0x2ec] sm:$0xf]  ;;  %v6408_v35 = vld [vmem:[#allocation6 + $0x2f8] sm:$0xf0] }
  0xc5   :  { %v478_v37 = vpop.f32.mrf.mxu2  ;;  %1423 = vmatpush.bf16.msra.mxu3 %v6151_v32  ;;  %v454_v40 = vpop.f32.mrf.mxu0  ;;  %v6055_v32 = vor.u32 %v8771_v25, %v6054_v23  ;;  %v6294_v25 = vld [vmem:[#allocation6 + $0x208] sm:$0xf]  ;;  %v6411_v42 = vor.u32 %v8857_v34, %v6408_v35 }
  0xc6   :  { %v479_v38 = vadd.f32 %v478_v37, %v188_v31  ;;  %v8847_v31 = vld [vmem:[#allocation6 + $0x294] sm:$0xf0]  ;;  %v6038_v37 = vld [vmem:[#allocation6 + $0x8] sm:$0xf] }
  0xc7   :  { %v6359_v40 = vor.u32 %v8847_v31, %v6358_v30  ;;  %v8781_v30 = vld [vmem:[#allocation6 + $0x8c] sm:$0xf]  ;;  %v6104_v31 = vld [vmem:[#allocation6 + $0x98] sm:$0xf0] }
  0xc8   :  { %v9741_v44 = vadd.f32 %v491_v16, %v479_v38  ;;  %v8767_v38 = vld [vmem:[#allocation6 + $0x14] sm:$0xf0] }
  0xc9   :  { %1424 = vmatpush.bf16.msra.mxu3 %v6135_v39  ;;  %v6039_v51 = vor.u32 %v8767_v38, %v6038_v37  ;;  %v8817_v37 = vld [vmem:[#allocation6 + $0x1ac] sm:$0xf]  ;;  %v6248_v38 = vld [vmem:[#allocation6 + $0x1b8] sm:$0xf0] }
  0xca   :  { %v9746_v47 = vpack.c.bf16 %v9741_v44, %v9741_v44  ;;  %v517_v52 = vpop.f32.mrf.mxu3 }
  0xcc   :  { %1340 = vmatmul.bf16.vlgmr.msra.gmra.mxu1 %v9746_v47 }
  0xcd   :  { %1436 = vmatpush.bf16.msra.mxu1 %v6279_v46  ;;  %v480_v57 = vpop.f32.mrf.mxu2  ;;  %1425 = vmatpush.bf16.msra.mxu3 %v6119_v48  ;;  %v8793_v46 = vld [vmem:[#allocation6 + $0xec] sm:$0xf]  ;;  %v6152_v48 = vld [vmem:[#allocation6 + $0xf8] sm:$0xf0] }
  0xce   :  { %v504_v55 = vpop.f32.mrf.mxu1  ;;  %v6155_v57 = vor.u32 %v8793_v46, %v6152_v48  ;;  %v8853_v46 = vld [vmem:[#allocation6 + $0x2cc] sm:$0xf]  ;;  %v6392_v48 = vld [vmem:[#allocation6 + $0x2d8] sm:$0xf0] }
  0xcf   :  { %v505_v56 = vadd.f32 %v504_v55, %v189_v45  ;;  %v8843_v45 = vld [vmem:[#allocation6 + $0x274] sm:$0xf0] }
  0xd1   :  { %v9749_v0 = vadd.f32 %v517_v52, %v505_v56  ;;  %1437 = vmatpush.bf16.msra.mxu1 %v6263_v58  ;;  %1426 = vmatpush.bf16.msra.mxu3 %v6103_v61  ;;  %v6182_v52 = vld [vmem:[#allocation6 + $0x128] sm:$0xf]  ;;  %v6343_v56 = vor.u32 %v8843_v45, %v6342_v41  ;;  %v6251_v45 = vor.u32 %v8817_v37, %v6248_v38  ;;  %v8885_v37 = vld [vmem:[#allocation6 + $0x3cc] sm:$0xf]  ;;  %v6520_v38 = vld [vmem:[#allocation6 + $0x3d8] sm:$0xf0] }
  0xd2   :  { %v519_v10 = vpop.f32.mrf.mxu3  ;;  %v6326_v58 = vld [vmem:[#allocation6 + $0x248] sm:$0xf]  ;;  %v6183_v61 = vor.u32 %v8803_v53, %v6182_v52  ;;  %v8813_v52 = vld [vmem:[#allocation6 + $0x18c] sm:$0xf]  ;;  %v6232_v53 = vld [vmem:[#allocation6 + $0x198] sm:$0xf0] }
  0xd3   :  { %v9753_v3 = vpack.c.bf16 %v9749_v0, %v9749_v0  ;;  %v6327_v8 = vor.u32 %v8839_v62, %v6326_v58  ;;  %v6310_v10 = vld [vmem:[#allocation6 + $0x228] sm:$0xf]  ;;  %v6395_v58 = vor.u32 %v8853_v46, %v6392_v48  ;;  %v8849_v62 = vld [vmem:[#allocation6 + $0x2ac] sm:$0xf] }
  0xd4   :  { %1379 = vmatmul.bf16.vlgmr.msrb.gmra.mxu3 %v9738_v33  ;;  %v6470_v41 = vld [vmem:[#allocation6 + $0x368] sm:$0xf]  ;;  %v8833_v46 = vld [vmem:[#allocation6 + $0x22c] sm:$0xf] }
  0xd5   :  { %1353 = vmatmul.bf16.vlgmr.msra.gmra.mxu2 %v9753_v3  ;;  %1438 = vmatpush.bf16.msra.mxu1 %v6247_v4  ;;  %v543_v16 = vpop.f32.mrf.mxu2  ;;  %v8881_v48 = vld [vmem:[#allocation6 + $0x3ac] sm:$0xf] }
  0xd6   :  { %1449 = vmatpush.bf16.msra.mxu2 %v6407_v2  ;;  %v506_v14 = vpop.f32.mrf.mxu1  ;;  %1427 = vmatpush.bf16.msra.mxu3 %v6087_v7  ;;  %v8799_v2 = vld [vmem:[#allocation6 + $0x114] sm:$0xf0]  ;;  %v6280_v7 = vld [vmem:[#allocation6 + $0x1f8] sm:$0xf0] }
  0xd7   :  { %v6167_v14 = vor.u32 %v8799_v2, %v6166_v24  ;;  %v6283_v18 = vor.u32 %v8825_v6, %v6280_v7  ;;  %v8809_v24 = vld [vmem:[#allocation6 + $0x16c] sm:$0xf]  ;;  %v6216_v2 = vld [vmem:[#allocation6 + $0x178] sm:$0xf0]  ;;  %v8867_v6 = vld [vmem:[#allocation6 + $0x334] sm:$0xf0]  ;;  %v6379_v7 = vor.u32 %v8849_v62, %v6376_v63 }
  0xd8   :  { %v8877_v63 = vld [vmem:[#allocation6 + $0x38c] sm:$0xf] }
  0xd9   :  { %1439 = vmatpush.bf16.msra.mxu1 %v6231_v17  ;;  %v6120_v17 = vld [vmem:[#allocation6 + $0xb8] sm:$0xf0] }
  0xda   :  { %1450 = vmatpush.bf16.msra.mxu2 %v6391_v15  ;;  %1428 = vmatpush.bf16.msra.mxu3 %v6071_v20  ;;  %v8835_v15 = vld [vmem:[#allocation6 + $0x234] sm:$0xf0]  ;;  %v8821_v20 = vld [vmem:[#allocation6 + $0x1cc] sm:$0xf] }
  0xdb   :  { %v6311_v22 = vor.u32 %v8835_v15, %v6310_v10  ;;  %v6219_v10 = vor.u32 %v8809_v24, %v6216_v2  ;;  %v8805_v15 = vld [vmem:[#allocation6 + $0x14c] sm:$0xf]  ;;  %v6766_v24 = vld [vmem:[#allocation6 + $0x5c0] sm:$0xf]  ;;  %v8950_v2 = vld [vmem:[#allocation6 + $0x5cc] sm:$0xf0] }
  0xdc   :  { %1392 = vmatmul.bf16.vlgmr.msrb.gmra.mxu1 %v9746_v47 }
  0xdd   :  { %v530_v36 = vpop.f32.mrf.mxu0  ;;  %1440 = vmatpush.bf16.msra.mxu1 %v6215_v28  ;;  %v545_v12 = vpop.f32.mrf.mxu2  ;;  %v8831_v28 = vld [vmem:[#allocation6 + $0x214] sm:$0xf0] }
  0xde   :  { %1451 = vmatpush.bf16.msra.mxu2 %v6375_v26  ;;  %v531_v39 = vadd.f32 %v530_v36, %v190_v27  ;;  %1429 = vmatpush.bf16.msra.mxu3 %v6055_v32  ;;  %v6486_v26 = vld [vmem:[#allocation6 + $0x388] sm:$0xf]  ;;  %v8879_v27 = vld [vmem:[#allocation6 + $0x394] sm:$0xf0]  ;;  %v6267_v32 = vor.u32 %v8821_v20, %v6264_v21  ;;  %v8777_v12 = vld [vmem:[#allocation6 + $0x6c] sm:$0xf]  ;;  %v6363_v21 = vor.u32 %v8845_v11, %v6360_v13 }
  0xdf   :  { %v6487_v36 = vor.u32 %v8879_v27, %v6486_v26  ;;  %v8765_v20 = vld [vmem:[#allocation6 + $0xc] sm:$0xf]  ;;  %v6750_v13 = vld [vmem:[#allocation6 + $0x5a0] sm:$0xf] }
  0xe0   :  { %v9759_v50 = vadd.f32 %v543_v16, %v531_v39  ;;  %v8785_v16 = vld [vmem:[#allocation6 + $0xac] sm:$0xf]  ;;  %v6295_v39 = vor.u32 %v8831_v28, %v6294_v25  ;;  %v6536_v25 = vld [vmem:[#allocation6 + $0x3f8] sm:$0xf0] }
  0xe1   :  { %1441 = vmatpush.bf16.msra.mxu1 %v6199_v43  ;;  %v6123_v23 = vor.u32 %v8785_v16, %v6120_v17  ;;  %v6088_v43 = vld [vmem:[#allocation6 + $0x78] sm:$0xf0]  ;;  %v8841_v27 = vld [vmem:[#allocation6 + $0x26c] sm:$0xf] }
  0xe2   :  { %v9763_v55 = vpack.c.bf16 %v9759_v50, %v9759_v50  ;;  %1452 = vmatpush.bf16.msra.mxu2 %v6359_v40  ;;  %1430 = vmatpush.bf16.msra.mxu3 %v6039_v51  ;;  %v6107_v40 = vor.u32 %v8781_v30, %v6104_v31  ;;  %v6471_v51 = vor.u32 %v8875_v49, %v6470_v41  ;;  %v6200_v16 = vld [vmem:[#allocation6 + $0x158] sm:$0xf0]  ;;  %v8801_v31 = vld [vmem:[#allocation6 + $0x12c] sm:$0xf] }
  0xe3   :  { %v6203_v26 = vor.u32 %v8805_v15, %v6200_v16  ;;  %v6344_v28 = vld [vmem:[#allocation6 + $0x278] sm:$0xf0]  ;;  %v8797_v49 = vld [vmem:[#allocation6 + $0x10c] sm:$0xf] }
  0xe4   :  { %1366 = vmatmul.bf16.vlgmr.msra.gmra.mxu0 %v9763_v55  ;;  %v6328_v41 = vld [vmem:[#allocation6 + $0x258] sm:$0xf0]  ;;  %v8873_v16 = vld [vmem:[#allocation6 + $0x36c] sm:$0xf] }
  0xe5   :  { %1405 = vmatmul.bf16.vlgmr.msrb.gmra.mxu2 %v9753_v3  ;;  %1462 = vmatpush.bf16.msra.mxu0 %v6535_v54  ;;  %v532_v4 = vpop.f32.mrf.mxu0  ;;  %v6091_v54 = vor.u32 %v8777_v12, %v6088_v43  ;;  %v6654_v12 = vld [vmem:[#allocation6 + $0x4e0] sm:$0xf]  ;;  %v8922_v43 = vld [vmem:[#allocation6 + $0x4ec] sm:$0xf0] }
  0xe6   :  { %1453 = vmatpush.bf16.msra.mxu2 %v6343_v56  ;;  %1475 = vmatpush.bf16.msrb.mxu3 %v6155_v57  ;;  %v6454_v56 = vld [vmem:[#allocation6 + $0x348] sm:$0xf]  ;;  %v8871_v57 = vld [vmem:[#allocation6 + $0x354] sm:$0xf0]  ;;  %v6075_v4 = vor.u32 %v8773_v59, %v6072_v60  ;;  %v6782_v59 = vld [vmem:[#allocation6 + $0x5e0] sm:$0xf] }
  0xe7   :  { %1442 = vmatpush.bf16.msra.mxu1 %v6183_v61  ;;  %1431 = vmatmul.bf16.vlgmr.msra.gmra.mxu3 %v9738_v33  ;;  %v6235_v61 = vor.u32 %v8813_v52, %v6232_v53  ;;  %v6455_v1 = vor.u32 %v8871_v57, %v6454_v56  ;;  %v6504_v53 = vld [vmem:[#allocation6 + $0x3b8] sm:$0xf0]  ;;  %v8918_v56 = vld [vmem:[#allocation6 + $0x4cc] sm:$0xf0] }
  0xe8   :  { %v8954_v60 = vld [vmem:[#allocation6 + $0x5ec] sm:$0xf0]  ;;  %v6507_v62 = vor.u32 %v8881_v48, %v6504_v53  ;;  %v6656_v48 = vld [vmem:[#allocation6 + $0x4f0] sm:$0xf0]  ;;  %v6718_v53 = vld [vmem:[#allocation6 + $0x560] sm:$0xf] }
  0xe9   :  { %1463 = vmatpush.bf16.msra.mxu0 %v6519_v5  ;;  %v6438_v5 = vld [vmem:[#allocation6 + $0x328] sm:$0xf] }
  0xea   :  { %1454 = vmatpush.bf16.msra.mxu2 %v6327_v8  ;;  %1476 = vmatpush.bf16.msrb.mxu3 %v6139_v9  ;;  %v8769_v8 = vld [vmem:[#allocation6 + $0x2c] sm:$0xf]  ;;  %v6056_v9 = vld [vmem:[#allocation6 + $0x38] sm:$0xf0] }
  0xeb   :  { %1443 = vmatpush.bf16.msra.mxu1 %v6167_v14  ;;  %v6439_v14 = vor.u32 %v8867_v6, %v6438_v5  ;;  %v6059_v17 = vor.u32 %v8769_v8, %v6056_v9  ;;  %v6488_v5 = vld [vmem:[#allocation6 + $0x398] sm:$0xf0]  ;;  %v6622_v6 = vld [vmem:[#allocation6 + $0x4a0] sm:$0xf]  ;;  %v8829_v8 = vld [vmem:[#allocation6 + $0x20c] sm:$0xf] }
  0xec   :  { %v6296_v9 = vld [vmem:[#allocation6 + $0x218] sm:$0xf0] }
  0xed   :  { %1464 = vmatpush.bf16.msra.mxu0 %v6503_v19  ;;  %v8863_v19 = vld [vmem:[#allocation6 + $0x314] sm:$0xf0]  ;;  %v6299_v15 = vor.u32 %v8829_v8, %v6296_v9  ;;  %v6686_v8 = vld [vmem:[#allocation6 + $0x520] sm:$0xf]  ;;  %v8930_v9 = vld [vmem:[#allocation6 + $0x52c] sm:$0xf0] }
  0xee   :  { %1455 = vmatpush.bf16.msra.mxu2 %v6311_v22  ;;  %1477 = vmatpush.bf16.msrb.mxu3 %v6123_v23  ;;  %v6040_v22 = vld [vmem:[#allocation6 + $0x18] sm:$0xf0]  ;;  %v8889_v23 = vld [vmem:[#allocation6 + $0x3ec] sm:$0xf] }
  0xef   :  { %1488 = vmatpush.bf16.msrb.mxu1 %v6283_v18  ;;  %v6422_v18 = vld [vmem:[#allocation6 + $0x308] sm:$0xf]  ;;  %v6043_v34 = vor.u32 %v8765_v20, %v6040_v22  ;;  %v6539_v35 = vor.u32 %v8889_v23, %v6536_v25  ;;  %v8869_v22 = vld [vmem:[#allocation6 + $0x34c] sm:$0xf]  ;;  %v6456_v23 = vld [vmem:[#allocation6 + $0x358] sm:$0xf0] }
  0xf0   :  { %1444 = vmatmul.bf16.vlgmr.msra.gmra.mxu1 %v9746_v47  ;;  %v6423_v30 = vor.u32 %v8863_v19, %v6422_v18  ;;  %v6606_v18 = vld [vmem:[#allocation6 + $0x480] sm:$0xf]  ;;  %v8910_v19 = vld [vmem:[#allocation6 + $0x48c] sm:$0xf0] }
  0xf1   :  { %1465 = vmatpush.bf16.msra.mxu0 %v6487_v36  ;;  %v6347_v36 = vor.u32 %v8841_v27, %v6344_v28  ;;  %v6607_v25 = vor.u32 %v8910_v19, %v6606_v18  ;;  %v8906_v27 = vld [vmem:[#allocation6 + $0x46c] sm:$0xf0]  ;;  %v8865_v28 = vld [vmem:[#allocation6 + $0x32c] sm:$0xf]  ;;  %v6862_v19 = vld [vmem:[#allocation6 + $0x680] sm:$0xf] }
  0xf2   :  { %1456 = vmatpush.bf16.msra.mxu2 %v6295_v39  ;;  %1478 = vmatpush.bf16.msrb.mxu3 %v6107_v40  ;;  %v8837_v40 = vld [vmem:[#allocation6 + $0x24c] sm:$0xf]  ;;  %v8926_v18 = vld [vmem:[#allocation6 + $0x50c] sm:$0xf0] }
  0xf3   :  { %1489 = vmatpush.bf16.msrb.mxu1 %v6267_v32  ;;  %v6184_v32 = vld [vmem:[#allocation6 + $0x138] sm:$0xf0]  ;;  %v6331_v52 = vor.u32 %v8837_v40, %v6328_v41  ;;  %v8898_v40 = vld [vmem:[#allocation6 + $0x42c] sm:$0xf0] }
  0xf4   :  { %1418 = vmatmul.bf16.vlgmr.msrb.gmra.mxu0 %v9763_v55  ;;  %v6187_v39 = vor.u32 %v8801_v31, %v6184_v32  ;;  %v6574_v32 = vld [vmem:[#allocation6 + $0x440] sm:$0xf] }
  0xf5   :  { %1457 = vmatmul.bf16.vlgmr.msra.gmra.mxu2 %v9753_v3  ;;  %1466 = vmatpush.bf16.msra.mxu0 %v6471_v51  ;;  %v6655_v51 = vor.u32 %v8922_v43, %v6654_v12  ;;  %v6734_v12 = vld [vmem:[#allocation6 + $0x580] sm:$0xf] }
  0xf6   :  { %1501 = vmatpush.bf16.msrb.mxu2 %v6411_v42  ;;  %1479 = vmatpush.bf16.msrb.mxu3 %v6091_v54  ;;  %v6168_v42 = vld [vmem:[#allocation6 + $0x118] sm:$0xf0]  ;;  %v6638_v54 = vld [vmem:[#allocation6 + $0x4c0] sm:$0xf] }
  0xf7   :  { %1490 = vmatpush.bf16.msrb.mxu1 %v6251_v45  ;;  %v6523_v45 = vor.u32 %v8885_v37, %v6520_v38  ;;  %v6171_v57 = vor.u32 %v8797_v49, %v6168_v42  ;;  %v6424_v37 = vld [vmem:[#allocation6 + $0x318] sm:$0xf0]  ;;  %v6542_v49 = vld [vmem:[#allocation6 + $0x400] sm:$0xf]  ;;  %v8894_v42 = vld [vmem:[#allocation6 + $0x40c] sm:$0xf0] }
  0xf8   :  { %v6543_v43 = vor.u32 %v8894_v42, %v6542_v49  ;;  %v8896_v49 = vld [vmem:[#allocation6 + $0x424] sm:$0xf]  ;;  %v6560_v42 = vld [vmem:[#allocation6 + $0x430] sm:$0xf0] }
  0xf9   :  { %1467 = vmatpush.bf16.msra.mxu0 %v6455_v1  ;;  %v6639_v1 = vor.u32 %v8918_v56, %v6638_v54  ;;  %v8938_v54 = vld [vmem:[#allocation6 + $0x56c] sm:$0xf0]  ;;  %v6910_v56 = vld [vmem:[#allocation6 + $0x6e0] sm:$0xf] }
  0xfa   :  { %1502 = vmatpush.bf16.msrb.mxu2 %v6395_v58  ;;  %1480 = vmatpush.bf16.msrb.mxu3 %v6075_v4  ;;  %v6312_v58 = vld [vmem:[#allocation6 + $0x238] sm:$0xf0] }
  0xfb   :  { %1491 = vmatpush.bf16.msrb.mxu1 %v6235_v61  ;;  %v6783_v61 = vor.u32 %v8954_v60, %v6782_v59  ;;  %v6315_v4 = vor.u32 %v8833_v46, %v6312_v58  ;;  %v8920_v46 = vld [vmem:[#allocation6 + $0x4e4] sm:$0xf]  ;;  %v8986_v58 = vld [vmem:[#allocation6 + $0x6ec] sm:$0xf0]  ;;  %v6640_v60 = vld [vmem:[#allocation6 + $0x4d0] sm:$0xf0] }
  0xfc   :  { %v8916_v59 = vld [vmem:[#allocation6 + $0x4c4] sm:$0xf] }
  0xfd   :  { %1468 = vmatpush.bf16.msra.mxu0 %v6439_v14  ;;  %v8946_v14 = vld [vmem:[#allocation6 + $0x5ac] sm:$0xf0] }
  0xfe   :  { %1503 = vmatpush.bf16.msrb.mxu2 %v6379_v7  ;;  %1481 = vmatpush.bf16.msrb.mxu3 %v6059_v17  ;;  %v8914_v7 = vld [vmem:[#allocation6 + $0x4ac] sm:$0xf0]  ;;  %v6472_v17 = vld [vmem:[#allocation6 + $0x378] sm:$0xf0]  ;;  %v6751_v20 = vor.u32 %v8946_v14, %v6750_v13  ;;  %v8908_v14 = vld [vmem:[#allocation6 + $0x484] sm:$0xf] }
  0xff   :  { %1492 = vmatpush.bf16.msrb.mxu1 %v6219_v10  ;;  %v6767_v10 = vor.u32 %v8950_v2, %v6766_v24  ;;  %v6623_v11 = vor.u32 %v8914_v7, %v6622_v6  ;;  %v8982_v2 = vld [vmem:[#allocation6 + $0x6cc] sm:$0xf0] }
 0x101   :  { %1469 = vmatpush.bf16.msra.mxu0 %v6423_v30  ;;  %v6440_v30 = vld [vmem:[#allocation6 + $0x338] sm:$0xf0] }
 0x102   :  { %1504 = vmatpush.bf16.msrb.mxu2 %v6363_v21  ;;  %1482 = vmatpush.bf16.msrb.mxu3 %v6043_v34  ;;  %v6475_v21 = vor.u32 %v8873_v16, %v6472_v17  ;;  %v8902_v34 = vld [vmem:[#allocation6 + $0x44c] sm:$0xf0]  ;;  %v6670_v17 = vld [vmem:[#allocation6 + $0x500] sm:$0xf] }
 0x103   :  { %1493 = vmatpush.bf16.msrb.mxu1 %v6203_v26  ;;  %v6590_v26 = vld [vmem:[#allocation6 + $0x460] sm:$0xf]  ;;  %v6575_v38 = vor.u32 %v8902_v34, %v6574_v32  ;;  %v8900_v34 = vld [vmem:[#allocation6 + $0x444] sm:$0xf] }
 0x104   :  { %1470 = vmatmul.bf16.vlgmr.msra.gmra.mxu0 %v9763_v55  ;;  %v6591_v31 = vor.u32 %v8906_v27, %v6590_v26  ;;  %v8952_v27 = vld [vmem:[#allocation6 + $0x5e4] sm:$0xf] }
 0x105   :  { %1514 = vmatpush.bf16.msrb.mxu0 %v6539_v35  ;;  %1483 = vmatmul.bf16.vlgmr.msrb.gmra.mxu3 %v9738_v33  ;;  %v6491_v33 = vor.u32 %v8877_v63, %v6488_v5  ;;  %v6443_v35 = vor.u32 %v8865_v28, %v6440_v30  ;;  %v8934_v63 = vld [vmem:[#allocation6 + $0x54c] sm:$0xf0]  ;;  %v6624_v5 = vld [vmem:[#allocation6 + $0x4b0] sm:$0xf0]  ;;  %v6846_v30 = vld [vmem:[#allocation6 + $0x660] sm:$0xf] }
 0x106   :  { %1505 = vmatpush.bf16.msrb.mxu2 %v6347_v36  ;;  %2304 = vmatpush.bf16.msra.mxu3 %v6655_v51  ;;  %v8861_v36 = vld [vmem:[#allocation6 + $0x30c] sm:$0xf] }
 0x107   :  { %1494 = vmatpush.bf16.msrb.mxu1 %v6187_v39  ;;  %v6558_v39 = vld [vmem:[#allocation6 + $0x420] sm:$0xf]  ;;  %v6427_v41 = vor.u32 %v8861_v36, %v6424_v37  ;;  %v8948_v36 = vld [vmem:[#allocation6 + $0x5c4] sm:$0xf] }
 0x109   :  { %1515 = vmatpush.bf16.msrb.mxu0 %v6523_v45  ;;  %v8942_v45 = vld [vmem:[#allocation6 + $0x58c] sm:$0xf0] }
 0x10a   :  { %1506 = vmatpush.bf16.msrb.mxu2 %v6331_v52  ;;  %2305 = vmatpush.bf16.msra.mxu3 %v6639_v1  ;;  %v6735_v51 = vor.u32 %v8942_v45, %v6734_v12  ;;  %v6659_v52 = vor.u32 %v8920_v46, %v6656_v48  ;;  %v6894_v1 = vld [vmem:[#allocation6 + $0x6c0] sm:$0xf]  ;;  %v8944_v12 = vld [vmem:[#allocation6 + $0x5a4] sm:$0xf]  ;;  %v6752_v45 = vld [vmem:[#allocation6 + $0x5b0] sm:$0xf0] }
 0x10b   :  { %1495 = vmatpush.bf16.msrb.mxu1 %v6171_v57  ;;  %v6719_v57 = vor.u32 %v8938_v54, %v6718_v53  ;;  %v6895_v6 = vor.u32 %v8982_v2, %v6894_v1  ;;  %v6755_v46 = vor.u32 %v8944_v12, %v6752_v45  ;;  %v6814_v48 = vld [vmem:[#allocation6 + $0x620] sm:$0xf]  ;;  %v8892_v53 = vld [vmem:[#allocation6 + $0x404] sm:$0xf]  ;;  %v6544_v54 = vld [vmem:[#allocation6 + $0x410] sm:$0xf0] }
 0x10c   :  { %v9018_v1 = vld [vmem:[#allocation6 + $0x7ec] sm:$0xf0]  ;;  %v6720_v2 = vld [vmem:[#allocation6 + $0x570] sm:$0xf0] }
 0x10d   :  { %1516 = vmatpush.bf16.msrb.mxu0 %v6507_v62  ;;  %v6702_v62 = vld [vmem:[#allocation6 + $0x540] sm:$0xf]  ;;  %v6848_v45 = vld [vmem:[#allocation6 + $0x670] sm:$0xf0] }
 0x10e   :  { %1496 = vmatmul.bf16.vlgmr.msrb.gmra.mxu1 %v9746_v47  ;;  %1507 = vmatpush.bf16.msrb.mxu2 %v6315_v4  ;;  %v6459_v47 = vor.u32 %v8869_v22, %v6456_v23  ;;  %v6703_v24 = vor.u32 %v8934_v63, %v6702_v62  ;;  %v8912_v4 = vld [vmem:[#allocation6 + $0x4a4] sm:$0xf]  ;;  %v6592_v23 = vld [vmem:[#allocation6 + $0x470] sm:$0xf0] }
 0x10f   :  { %2317 = vmatpush.bf16.msra.mxu1 %v6783_v61  ;;  %2306 = vmatpush.bf16.msra.mxu3 %v6623_v11  ;;  %v6643_v61 = vor.u32 %v8916_v59, %v6640_v60  ;;  %v6627_v7 = vor.u32 %v8912_v4, %v6624_v5  ;;  %v6687_v11 = vor.u32 %v8930_v9, %v6686_v8  ;;  %v8904_v22 = vld [vmem:[#allocation6 + $0x464] sm:$0xf]  ;;  %v6798_v60 = vld [vmem:[#allocation6 + $0x600] sm:$0xf]  ;;  %v6912_v8 = vld [vmem:[#allocation6 + $0x6f0] sm:$0xf0] }
 0x110   :  { %v6595_v26 = vor.u32 %v8904_v22, %v6592_v23  ;;  %v8928_v23 = vld [vmem:[#allocation6 + $0x524] sm:$0xf] }
 0x111   :  { %1517 = vmatpush.bf16.msrb.mxu0 %v6491_v33  ;;  %v8978_v33 = vld [vmem:[#allocation6 + $0x6ac] sm:$0xf0] }
 0x112   :  { %1508 = vmatpush.bf16.msrb.mxu2 %v6299_v15  ;;  %v6608_v15 = vld [vmem:[#allocation6 + $0x490] sm:$0xf0] }
 0x113   :  { %2318 = vmatpush.bf16.msra.mxu1 %v6767_v10  ;;  %2307 = vmatpush.bf16.msra.mxu3 %v6607_v25  ;;  %v6878_v10 = vld [vmem:[#allocation6 + $0x6a0] sm:$0xf]  ;;  %v6611_v16 = vor.u32 %v8908_v14, %v6608_v15  ;;  %v6704_v14 = vld [vmem:[#allocation6 + $0x550] sm:$0xf0]  ;;  %v8980_v15 = vld [vmem:[#allocation6 + $0x6c4] sm:$0xf] }
 0x114   :  { %v6879_v13 = vor.u32 %v8978_v33, %v6878_v10  ;;  %v7022_v10 = vld [vmem:[#allocation6 + $0x7c0] sm:$0xf]  ;;  %v9014_v33 = vld [vmem:[#allocation6 + $0x7cc] sm:$0xf0] }
 0x115   :  { %1509 = vmatmul.bf16.vlgmr.msrb.gmra.mxu2 %v9753_v3  ;;  %1518 = vmatpush.bf16.msrb.mxu0 %v6475_v21  ;;  %v6559_v3 = vor.u32 %v8898_v40, %v6558_v39  ;;  %v8974_v21 = vld [vmem:[#allocation6 + $0x68c] sm:$0xf0]  ;;  %v6830_v40 = vld [vmem:[#allocation6 + $0x640] sm:$0xf] }
 0x116   :  { %v6863_v25 = vor.u32 %v8974_v21, %v6862_v19  ;;  %v7006_v19 = vld [vmem:[#allocation6 + $0x7a0] sm:$0xf] }
 0x117   :  { %2319 = vmatpush.bf16.msra.mxu1 %v6751_v20  ;;  %2308 = vmatpush.bf16.msra.mxu3 %v6591_v31  ;;  %v6671_v20 = vor.u32 %v8926_v18, %v6670_v17  ;;  %v8970_v31 = vld [vmem:[#allocation6 + $0x66c] sm:$0xf0]  ;;  %v6896_v17 = vld [vmem:[#allocation6 + $0x6d0] sm:$0xf0] }
 0x118   :  { %v6847_v32 = vor.u32 %v8970_v31, %v6846_v30  ;;  %v6899_v18 = vor.u32 %v8980_v15, %v6896_v17  ;;  %v6990_v31 = vld [vmem:[#allocation6 + $0x780] sm:$0xf]  ;;  %v8956_v17 = vld [vmem:[#allocation6 + $0x604] sm:$0xf] }
 0x119   :  { %1519 = vmatpush.bf16.msrb.mxu0 %v6459_v47  ;;  %v6784_v47 = vld [vmem:[#allocation6 + $0x5f0] sm:$0xf0] }
 0x11a   :  { %v6787_v28 = vor.u32 %v8952_v27, %v6784_v47 }
 0x11b   :  { %2309 = vmatpush.bf16.msra.mxu3 %v6575_v38  ;;  %2320 = vmatpush.bf16.msra.mxu1 %v6735_v51  ;;  %v6768_v38 = vld [vmem:[#allocation6 + $0x5d0] sm:$0xf0]  ;;  %v8962_v51 = vld [vmem:[#allocation6 + $0x62c] sm:$0xf0] }
 0x11c   :  { %v6771_v39 = vor.u32 %v8948_v36, %v6768_v38  ;;  %v6672_v36 = vld [vmem:[#allocation6 + $0x510] sm:$0xf0] }
 0x11d   :  { %1520 = vmatpush.bf16.msrb.mxu0 %v6443_v35  ;;  %v6576_v35 = vld [vmem:[#allocation6 + $0x450] sm:$0xf0] }
 0x11e   :  { %v6579_v37 = vor.u32 %v8900_v34, %v6576_v35  ;;  %v8924_v35 = vld [vmem:[#allocation6 + $0x504] sm:$0xf] }
 0x11f   :  { %2310 = vmatpush.bf16.msra.mxu3 %v6559_v3  ;;  %2321 = vmatpush.bf16.msra.mxu1 %v6719_v57  ;;  %v6547_v57 = vor.u32 %v8892_v53, %v6544_v54  ;;  %v6675_v38 = vor.u32 %v8924_v35, %v6672_v36  ;;  %v6614_v35 = vld [vmem:[#allocation6 + $0x488] sm:$0xf] }
 0x121   :  { %1521 = vmatpush.bf16.msrb.mxu0 %v6427_v41  ;;  %v8966_v41 = vld [vmem:[#allocation6 + $0x64c] sm:$0xf0] }
 0x122   :  { %v6831_v3 = vor.u32 %v8966_v41, %v6830_v40 }
 0x123   :  { %2311 = vmatpush.bf16.msra.mxu3 %v6543_v43  ;;  %2322 = vmatpush.bf16.msra.mxu1 %v6703_v24  ;;  %v6563_v43 = vor.u32 %v8896_v49, %v6560_v42  ;;  %v8936_v24 = vld [vmem:[#allocation6 + $0x564] sm:$0xf]  ;;  %v9002_v49 = vld [vmem:[#allocation6 + $0x76c] sm:$0xf0] }
 0x124   :  { %1522 = vmatmul.bf16.vlgmr.msrb.gmra.mxu0 %v9763_v55  ;;  %v6911_v55 = vor.u32 %v8986_v58, %v6910_v56  ;;  %v8940_v56 = vld [vmem:[#allocation6 + $0x584] sm:$0xf]  ;;  %v6736_v58 = vld [vmem:[#allocation6 + $0x590] sm:$0xf0] }
 0x125   :  { %v6739_v59 = vor.u32 %v8940_v56, %v6736_v58  ;;  %v8968_v42 = vld [vmem:[#allocation6 + $0x664] sm:$0xf] }
 0x126   :  { %2330 = vmatpush.bf16.msra.mxu2 %v6911_v55  ;;  %v8958_v55 = vld [vmem:[#allocation6 + $0x60c] sm:$0xf0]  ;;  %v8964_v56 = vld [vmem:[#allocation6 + $0x644] sm:$0xf] }
 0x127   :  { %2356 = vmatpush.bf16.msrb.mxu3 %v6659_v52  ;;  %2323 = vmatpush.bf16.msra.mxu1 %v6687_v11  ;;  %v6815_v52 = vor.u32 %v8962_v51, %v6814_v48  ;;  %v6799_v63 = vor.u32 %v8958_v55, %v6798_v60  ;;  %v7023_v11 = vor.u32 %v9014_v33, %v7022_v10  ;;  %v6958_v51 = vld [vmem:[#allocation6 + $0x740] sm:$0xf]  ;;  %v6646_v10 = vld [vmem:[#allocation6 + $0x4c8] sm:$0xf] }
 0x128   :  { %v6851_v48 = vor.u32 %v8968_v42, %v6848_v45  ;;  %v8907_v45 = vld [vmem:[#allocation6 + $0x474] sm:$0xf0] }
 0x12a   :  { %2331 = vmatpush.bf16.msra.mxu2 %v6895_v6  ;;  %v6723_v6 = vor.u32 %v8936_v24, %v6720_v2 }
 0x12b   :  { %2357 = vmatpush.bf16.msrb.mxu3 %v6643_v61  ;;  %2324 = vmatpush.bf16.msra.mxu1 %v6671_v20  ;;  %v7038_v61 = vld [vmem:[#allocation6 + $0x7e0] sm:$0xf]  ;;  %v9010_v20 = vld [vmem:[#allocation6 + $0x7ac] sm:$0xf0] }
 0x12c   :  { %v7039_v5 = vor.u32 %v9018_v1, %v7038_v61  ;;  %v7007_v22 = vor.u32 %v9010_v20, %v7006_v19  ;;  %v6662_v61 = vld [vmem:[#allocation6 + $0x4e8] sm:$0xf]  ;;  %v8994_v1 = vld [vmem:[#allocation6 + $0x72c] sm:$0xf0]  ;;  %v9016_v19 = vld [vmem:[#allocation6 + $0x7e4] sm:$0xf] }
 0x12e   :  { %2332 = vmatpush.bf16.msra.mxu2 %v6879_v13  ;;  %2343 = vmatpush.bf16.msra.mxu0 %v7039_v5  ;;  %v8932_v13 = vld [vmem:[#allocation6 + $0x544] sm:$0xf]  ;;  %v8923_v5 = vld [vmem:[#allocation6 + $0x4f4] sm:$0xf0] }
 0x12f   :  { %2358 = vmatpush.bf16.msrb.mxu3 %v6627_v7  ;;  %2369 = vmatpush.bf16.msrb.mxu1 %v6787_v28  ;;  %v8984_v7 = vld [vmem:[#allocation6 + $0x6e4] sm:$0xf]  ;;  %v6880_v28 = vld [vmem:[#allocation6 + $0x6b0] sm:$0xf0]  ;;  %v6663_v33 = vor.u32 %v8923_v5, %v6662_v61  ;;  %v6774_v61 = vld [vmem:[#allocation6 + $0x5c8] sm:$0xf] }
 0x130   :  { %v6915_v9 = vor.u32 %v8984_v7, %v6912_v8  ;;  %v8960_v7 = vld [vmem:[#allocation6 + $0x624] sm:$0xf]  ;;  %v6816_v8 = vld [vmem:[#allocation6 + $0x630] sm:$0xf0] }
 0x132   :  { %2333 = vmatpush.bf16.msra.mxu2 %v6863_v25  ;;  %2344 = vmatpush.bf16.msra.mxu0 %v7023_v11  ;;  %v6688_v25 = vld [vmem:[#allocation6 + $0x530] sm:$0xf0]  ;;  %v8919_v11 = vld [vmem:[#allocation6 + $0x4d4] sm:$0xf0] }
 0x133   :  { %2359 = vmatpush.bf16.msrb.mxu3 %v6611_v16  ;;  %2370 = vmatpush.bf16.msrb.mxu1 %v6771_v39  ;;  %v6707_v16 = vor.u32 %v8932_v13, %v6704_v14  ;;  %v6691_v47 = vor.u32 %v8928_v23, %v6688_v25  ;;  %v6864_v39 = vld [vmem:[#allocation6 + $0x690] sm:$0xf0]  ;;  %v6926_v13 = vld [vmem:[#allocation6 + $0x700] sm:$0xf]  ;;  %v8990_v14 = vld [vmem:[#allocation6 + $0x70c] sm:$0xf0]  ;;  %v6647_v25 = vor.u32 %v8919_v11, %v6646_v10 }
 0x134   :  { %v6758_v10 = vld [vmem:[#allocation6 + $0x5a8] sm:$0xf]  ;;  %v8996_v11 = vld [vmem:[#allocation6 + $0x744] sm:$0xf] }
 0x136   :  { %2334 = vmatpush.bf16.msra.mxu2 %v6847_v32  ;;  %2345 = vmatpush.bf16.msra.mxu0 %v7007_v22  ;;  %v9006_v32 = vld [vmem:[#allocation6 + $0x78c] sm:$0xf0] }
 0x137   :  { %2360 = vmatpush.bf16.msrb.mxu3 %v6595_v26  ;;  %2371 = vmatpush.bf16.msrb.mxu1 %v6755_v46  ;;  %v8976_v26 = vld [vmem:[#allocation6 + $0x6a4] sm:$0xf]  ;;  %v6991_v34 = vor.u32 %v9006_v32, %v6990_v31 }
 0x138   :  { %v6883_v30 = vor.u32 %v8976_v26, %v6880_v28  ;;  %v6630_v26 = vld [vmem:[#allocation6 + $0x4a8] sm:$0xf]  ;;  %v9012_v28 = vld [vmem:[#allocation6 + $0x7c4] sm:$0xf] }
 0x13a   :  { %2335 = vmatpush.bf16.msra.mxu2 %v6831_v3  ;;  %2346 = vmatpush.bf16.msra.mxu0 %v6991_v34  ;;  %v6974_v3 = vld [vmem:[#allocation6 + $0x760] sm:$0xf] }
 0x13b   :  { %2361 = vmatpush.bf16.msrb.mxu3 %v6579_v37  ;;  %2372 = vmatpush.bf16.msrb.mxu1 %v6739_v59  ;;  %v8972_v37 = vld [vmem:[#allocation6 + $0x684] sm:$0xf] }
 0x13c   :  { %v6867_v41 = vor.u32 %v8972_v37, %v6864_v39  ;;  %v8911_v37 = vld [vmem:[#allocation6 + $0x494] sm:$0xf0]  ;;  %v7008_v39 = vld [vmem:[#allocation6 + $0x7b0] sm:$0xf0] }
 0x13d   :  { %v6615_v42 = vor.u32 %v8911_v37, %v6614_v35  ;;  %v8939_v37 = vld [vmem:[#allocation6 + $0x574] sm:$0xf0] }
 0x13e   :  { %2336 = vmatpush.bf16.msra.mxu2 %v6815_v52  ;;  %v8998_v52 = vld [vmem:[#allocation6 + $0x74c] sm:$0xf0] }
 0x13f   :  { %2362 = vmatpush.bf16.msrb.mxu3 %v6563_v43  ;;  %2373 = vmatpush.bf16.msrb.mxu1 %v6723_v6  ;;  %v6975_v43 = vor.u32 %v9002_v49, %v6974_v3  ;;  %v6959_v54 = vor.u32 %v8998_v52, %v6958_v51 }
 0x141   :  { %2347 = vmatpush.bf16.msra.mxu0 %v6975_v43  ;;  %v6598_v43 = vld [vmem:[#allocation6 + $0x468] sm:$0xf] }
 0x142   :  { %2337 = vmatpush.bf16.msra.mxu2 %v6799_v63  ;;  %v6942_v63 = vld [vmem:[#allocation6 + $0x720] sm:$0xf] }
 0x143   :  { %2363 = vmatpush.bf16.msrb.mxu3 %v6547_v57  ;;  %2374 = vmatpush.bf16.msrb.mxu1 %v6707_v16  ;;  %v6832_v57 = vld [vmem:[#allocation6 + $0x650] sm:$0xf0]  ;;  %v6943_v6 = vor.u32 %v8994_v1, %v6942_v63  ;;  %v6927_v16 = vor.u32 %v8990_v14, %v6926_v13  ;;  %v8951_v1 = vld [vmem:[#allocation6 + $0x5d4] sm:$0xf0] }
 0x144   :  { %v6835_v58 = vor.u32 %v8964_v56, %v6832_v57  ;;  %v6992_v56 = vld [vmem:[#allocation6 + $0x790] sm:$0xf0] }
 0x145   :  { %2348 = vmatpush.bf16.msra.mxu0 %v6959_v54  ;;  %v9004_v54 = vld [vmem:[#allocation6 + $0x784] sm:$0xf]  ;;  %v6960_v13 = vld [vmem:[#allocation6 + $0x750] sm:$0xf0] }
 0x146   :  { %2382 = vmatpush.bf16.msrb.mxu2 %v6915_v9  ;;  %v6963_v14 = vor.u32 %v8996_v11, %v6960_v13  ;;  %v6870_v11 = vld [vmem:[#allocation6 + $0x688] sm:$0xf]  ;;  %v8975_v13 = vld [vmem:[#allocation6 + $0x694] sm:$0xf0] }
 0x147   :  { %v9776_v62 = vpop.f32.mrf.mxu3  ;;  %2375 = vmatpush.bf16.msrb.mxu1 %v6691_v47  ;;  %v8915_v47 = vld [vmem:[#allocation6 + $0x4b4] sm:$0xf0] }
 0x148   :  { %v6631_v34 = vor.u32 %v8915_v47, %v6630_v26  ;;  %v6664_v26 = vld [vmem:[#allocation6 + $0x4f8] sm:$0xf0] }
 0x149   :  { %v1341_v4 = vpop.f32.mrf.mxu1  ;;  %2349 = vmatpush.bf16.msra.mxu0 %v6943_v6 }
 0x14a   :  { %2383 = vmatpush.bf16.msrb.mxu2 %v6899_v18  ;;  %v1342_v53 = vadd.f32 %v1341_v4, %v9776_v62  ;;  %v6819_v4 = vor.u32 %v8960_v7, %v6816_v8  ;;  %v6800_v18 = vld [vmem:[#allocation6 + $0x610] sm:$0xf0]  ;;  %v6775_v8 = vor.u32 %v8951_v1, %v6774_v61 }
 0x14b   :  { %2376 = vmatpush.bf16.msrb.mxu1 %v6675_v38  ;;  %v6803_v20 = vor.u32 %v8956_v17, %v6800_v18  ;;  %v9008_v38 = vld [vmem:[#allocation6 + $0x7a4] sm:$0xf]  ;;  %v6550_v18 = vld [vmem:[#allocation6 + $0x408] sm:$0xf] }
 0x14d   :  { %2350 = vmatpush.bf16.msra.mxu0 %v6927_v16 }
 0x14e   :  { %2384 = vmatpush.bf16.msrb.mxu2 %v6883_v30  ;;  %v7024_v30 = vld [vmem:[#allocation6 + $0x7d0] sm:$0xf0] }
 0x14f   :  { %v1330_v21 = vpop.f32.mrf.mxu3  ;;  %v7027_v31 = vor.u32 %v9012_v28, %v7024_v30 }
 0x150   :  { %v7040_v21 = vld [vmem:[#allocation6 + $0x7f0] sm:$0xf0] }
 0x151   :  { %v1343_v27 = vpop.f32.mrf.mxu1 }
 0x152   :  { %2385 = vmatpush.bf16.msrb.mxu2 %v6867_v41 }
 0x156   :  { %2386 = vmatpush.bf16.msrb.mxu2 %v6851_v48  ;;  %v6790_v48 = vld [vmem:[#allocation6 + $0x5e8] sm:$0xf] }
 0x157   :  { %v9778_v12 = vpop.f32.mrf.mxu3 }
 0x158   :  { %v1354_v40 = vpop.f32.mrf.mxu2 }
 0x159   :  { %v1393_v46 = vpop.f32.mrf.mxu1  ;;  %v1355_v59 = vadd.f32 %v1354_v40, %v1342_v53  ;;  %v7011_v40 = vor.u32 %v9008_v38, %v7008_v39  ;;  %v8955_v53 = vld [vmem:[#allocation6 + $0x5f4] sm:$0xf0] }
 0x15a   :  { %2387 = vmatpush.bf16.msrb.mxu2 %v6835_v58  ;;  %v1394_v36 = vadd.f32 %v1393_v46, %v9778_v12  ;;  %v6995_v12 = vor.u32 %v9004_v54, %v6992_v56  ;;  %v6599_v58 = vor.u32 %v8907_v45, %v6598_v43  ;;  %v8935_v54 = vld [vmem:[#allocation6 + $0x554] sm:$0xf0]  ;;  %v6902_v56 = vld [vmem:[#allocation6 + $0x6c8] sm:$0xf] }
 0x15e   :  { %2388 = vmatpush.bf16.msrb.mxu2 %v6819_v4  ;;  %v8899_v4 = vld [vmem:[#allocation6 + $0x434] sm:$0xf0] }
 0x15f   :  { %v1382_v2 = vpop.f32.mrf.mxu3 }
 0x160   :  { %v1356_v60 = vpop.f32.mrf.mxu2  ;;  %v6976_v2 = vld [vmem:[#allocation6 + $0x770] sm:$0xf0] }
 0x161   :  { %v1367_v55 = vpop.f32.mrf.mxu0  ;;  %v1395_v62 = vpop.f32.mrf.mxu1  ;;  %v6582_v60 = vld [vmem:[#allocation6 + $0x448] sm:$0xf] }
 0x162   :  { %v1368_v24 = vadd.f32 %v1367_v55, %v1355_v59  ;;  %2389 = vmatpush.bf16.msrb.mxu2 %v6803_v20  ;;  %v6791_v59 = vor.u32 %v8955_v53, %v6790_v48  ;;  %v8903_v55 = vld [vmem:[#allocation6 + $0x454] sm:$0xf0]  ;;  %v6566_v62 = vld [vmem:[#allocation6 + $0x428] sm:$0xf] }
 0x163   :  { %v6583_v7 = vor.u32 %v8903_v55, %v6582_v60  ;;  %v6567_v16 = vor.u32 %v8899_v4, %v6566_v62  ;;  %v6742_v20 = vld [vmem:[#allocation6 + $0x588] sm:$0xf] }
 0x164   :  { %v9782_v9 = vadd.f32 %v1368_v24, %v9733_v29  ;;  %v7043_v29 = vor.u32 %v9016_v19, %v7040_v21  ;;  %v9000_v24 = vld [vmem:[#allocation6 + $0x764] sm:$0xf]  ;;  %v8895_v19 = vld [vmem:[#allocation6 + $0x414] sm:$0xf0]  ;;  %v6710_v53 = vld [vmem:[#allocation6 + $0x548] sm:$0xf] }
 0x165   :  { %v6979_v5 = vor.u32 %v9000_v24, %v6976_v2  ;;  %v6711_v55 = vor.u32 %v8935_v54, %v6710_v53  ;;  %v6694_v24 = vld [vmem:[#allocation6 + $0x528] sm:$0xf]  ;;  %v8931_v2 = vld [vmem:[#allocation6 + $0x534] sm:$0xf0]  ;;  %v8893_v53 = vld [vmem:[#allocation6 + $0x40c] sm:$0xf] }
 0x166   :  { %v9786_v15 = vpack.c.bf16 %v9782_v9, %v9782_v9  ;;  %2395 = vmatpush.bf16.msrb.mxu0 %v7043_v29  ;;  %v8992_v29 = vld [vmem:[#allocation6 + $0x724] sm:$0xf]  ;;  %v6552_v54 = vld [vmem:[#allocation6 + $0x418] sm:$0xf0] }
 0x168   :  { %v1406_v22 = vpop.f32.mrf.mxu2  ;;  %2312 = vmatmul.bf16.vlgmr.msra.gmra.mxu3 %v9786_v15 }
 0x169   :  { %2408 = vmatpush.bf16.msra.mxu3 %v6663_v33  ;;  %v1369_v23 = vpop.f32.mrf.mxu0  ;;  %v1407_v41 = vadd.f32 %v1406_v22, %v1394_v36  ;;  %v8947_v33 = vld [vmem:[#allocation6 + $0x5b4] sm:$0xf0]  ;;  %v6726_v36 = vld [vmem:[#allocation6 + $0x568] sm:$0xf] }
 0x16a   :  { %v9789_v27 = vpop.f32.mrf.mxu3  ;;  %2396 = vmatpush.bf16.msrb.mxu0 %v7027_v31  ;;  %v6759_v17 = vor.u32 %v8947_v33, %v6758_v10  ;;  %v8943_v22 = vld [vmem:[#allocation6 + $0x594] sm:$0xf0]  ;;  %v6944_v23 = vld [vmem:[#allocation6 + $0x730] sm:$0xf0]  ;;  %v6727_v45 = vor.u32 %v8939_v37, %v6726_v36  ;;  %v6678_v10 = vld [vmem:[#allocation6 + $0x508] sm:$0xf] }
 0x16b   :  { %v6947_v47 = vor.u32 %v8992_v29, %v6944_v23  ;;  %v6743_v35 = vor.u32 %v8943_v22, %v6742_v20  ;;  %v8927_v33 = vld [vmem:[#allocation6 + $0x514] sm:$0xf0]  ;;  %v6792_v20 = vld [vmem:[#allocation6 + $0x5f8] sm:$0xf0]  ;;  %v6871_v22 = vor.u32 %v8975_v13, %v6870_v11  ;;  %v6854_v23 = vld [vmem:[#allocation6 + $0x668] sm:$0xf] }
 0x16c   :  { %v6838_v37 = vld [vmem:[#allocation6 + $0x648] sm:$0xf] }
 0x16d   :  { %v1445_v32 = vpop.f32.mrf.mxu1  ;;  %2409 = vmatpush.bf16.msra.mxu3 %v6647_v25  ;;  %v8921_v25 = vld [vmem:[#allocation6 + $0x4ec] sm:$0xf] }
 0x16e   :  { %2397 = vmatpush.bf16.msrb.mxu0 %v7011_v40  ;;  %v1446_v21 = vadd.f32 %v1445_v32, %v9789_v27  ;;  %v6667_v39 = vor.u32 %v8921_v25, %v6664_v26  ;;  %v6918_v40 = vld [vmem:[#allocation6 + $0x6e8] sm:$0xf]  ;;  %v8988_v27 = vld [vmem:[#allocation6 + $0x704] sm:$0xf]  ;;  %v6928_v32 = vld [vmem:[#allocation6 + $0x710] sm:$0xf0] }
 0x16f   :  { %v8971_v26 = vld [vmem:[#allocation6 + $0x674] sm:$0xf0] }
 0x170   :  { %v1408_v3 = vpop.f32.mrf.mxu2 }
 0x171   :  { %2410 = vmatpush.bf16.msra.mxu3 %v6631_v34  ;;  %v1419_v49 = vpop.f32.mrf.mxu0  ;;  %v6551_v34 = vor.u32 %v8895_v19, %v6550_v18  ;;  %v8917_v3 = vld [vmem:[#allocation6 + $0x4cc] sm:$0xf] }
 0x172   :  { %v1420_v51 = vadd.f32 %v1419_v49, %v1407_v41  ;;  %v1434_v52 = vpop.f32.mrf.mxu3  ;;  %2398 = vmatpush.bf16.msrb.mxu0 %v6995_v12  ;;  %v8987_v41 = vld [vmem:[#allocation6 + $0x6f4] sm:$0xf0]  ;;  %v6648_v49 = vld [vmem:[#allocation6 + $0x4d8] sm:$0xf0]  ;;  %v8953_v19 = vld [vmem:[#allocation6 + $0x5ec] sm:$0xf] }
 0x173   :  { %v6651_v52 = vor.u32 %v8917_v3, %v6648_v49  ;;  %v8983_v12 = vld [vmem:[#allocation6 + $0x6d4] sm:$0xf0]  ;;  %v6795_v25 = vor.u32 %v8953_v19, %v6792_v20  ;;  %v8981_v19 = vld [vmem:[#allocation6 + $0x6cc] sm:$0xf]  ;;  %v6904_v20 = vld [vmem:[#allocation6 + $0x6d8] sm:$0xf0] }
 0x174   :  { %v9793_v46 = vadd.f32 %v1420_v51, %v9741_v44  ;;  %v6919_v51 = vor.u32 %v8987_v41, %v6918_v40  ;;  %v6903_v61 = vor.u32 %v8983_v12, %v6902_v56  ;;  %v8897_v40 = vld [vmem:[#allocation6 + $0x42c] sm:$0xf]  ;;  %v6760_v41 = vld [vmem:[#allocation6 + $0x5b8] sm:$0xf0] }
 0x175   :  { %v1447_v57 = vpop.f32.mrf.mxu1  ;;  %2411 = vmatpush.bf16.msra.mxu3 %v6615_v42  ;;  %v6931_v42 = vor.u32 %v8988_v27, %v6928_v32  ;;  %v6568_v27 = vld [vmem:[#allocation6 + $0x438] sm:$0xf0]  ;;  %v8945_v32 = vld [vmem:[#allocation6 + $0x5ac] sm:$0xf] }
 0x176   :  { %v9797_v63 = vpack.c.bf16 %v9793_v46, %v9793_v46  ;;  %2399 = vmatpush.bf16.msrb.mxu0 %v6979_v5  ;;  %v8913_v57 = vld [vmem:[#allocation6 + $0x4ac] sm:$0xf]  ;;  %v6886_v5 = vld [vmem:[#allocation6 + $0x6a8] sm:$0xf]  ;;  %v6571_v49 = vor.u32 %v8897_v40, %v6568_v27  ;;  %v6744_v12 = vld [vmem:[#allocation6 + $0x598] sm:$0xf0] }
 0x177   :  { %v8941_v56 = vld [vmem:[#allocation6 + $0x58c] sm:$0xf]  ;;  %v6872_v40 = vld [vmem:[#allocation6 + $0x698] sm:$0xf0] }
 0x178   :  { %v1458_v6 = vpop.f32.mrf.mxu2  ;;  %2325 = vmatmul.bf16.vlgmr.msra.gmra.mxu1 %v9797_v63  ;;  %2364 = vmatmul.bf16.vlgmr.msrb.gmra.mxu3 %v9786_v15 }
 0x179   :  { %2412 = vmatpush.bf16.msra.mxu3 %v6599_v58  ;;  %2421 = vmatpush.bf16.msra.mxu1 %v6791_v59  ;;  %v1421_v44 = vpop.f32.mrf.mxu0  ;;  %v1459_v28 = vadd.f32 %v1458_v6, %v1446_v21  ;;  %v6632_v58 = vld [vmem:[#allocation6 + $0x4b8] sm:$0xf0]  ;;  %v8979_v6 = vld [vmem:[#allocation6 + $0x6b4] sm:$0xf0]  ;;  %v6679_v21 = vor.u32 %v8927_v33, %v6678_v10 }
 0x17a   :  { %2400 = vmatpush.bf16.msrb.mxu0 %v6963_v14  ;;  %v6635_v1 = vor.u32 %v8913_v57, %v6632_v58  ;;  %v8909_v44 = vld [vmem:[#allocation6 + $0x48c] sm:$0xf]  ;;  %v6887_v62 = vor.u32 %v8979_v6, %v6886_v5  ;;  %v6747_v5 = vor.u32 %v8941_v56, %v6744_v12  ;;  %v6840_v12 = vld [vmem:[#allocation6 + $0x658] sm:$0xf0] }
 0x17b   :  { %v8905_v14 = vld [vmem:[#allocation6 + $0x46c] sm:$0xf] }
 0x17c   :  { %v8937_v6 = vld [vmem:[#allocation6 + $0x56c] sm:$0xf] }
 0x17d   :  { %2413 = vmatpush.bf16.msra.mxu3 %v6583_v7  ;;  %2422 = vmatpush.bf16.msra.mxu1 %v6775_v8  ;;  %v6616_v7 = vld [vmem:[#allocation6 + $0x498] sm:$0xf0]  ;;  %v6695_v8 = vor.u32 %v8931_v2, %v6694_v24  ;;  %v8959_v24 = vld [vmem:[#allocation6 + $0x614] sm:$0xf0]  ;;  %v8965_v56 = vld [vmem:[#allocation6 + $0x64c] sm:$0xf] }
 0x17e   :  { %2401 = vmatpush.bf16.msrb.mxu0 %v6947_v47  ;;  %v6619_v4 = vor.u32 %v8909_v44, %v6616_v7  ;;  %v8901_v47 = vld [vmem:[#allocation6 + $0x44c] sm:$0xf]  ;;  %v6728_v44 = vld [vmem:[#allocation6 + $0x578] sm:$0xf0] }
 0x17f   :  { %v8985_v7 = vld [vmem:[#allocation6 + $0x6ec] sm:$0xf]  ;;  %v6731_v11 = vor.u32 %v8937_v6, %v6728_v44  ;;  %v6808_v6 = vld [vmem:[#allocation6 + $0x618] sm:$0xf0] }
 0x180   :  { %v1460_v30 = vpop.f32.mrf.mxu2  ;;  %v9017_v44 = vld [vmem:[#allocation6 + $0x7ec] sm:$0xf] }
 0x181   :  { %2414 = vmatpush.bf16.msra.mxu3 %v6567_v16  ;;  %2423 = vmatpush.bf16.msra.mxu1 %v6759_v17  ;;  %v1471_v31 = vpop.f32.mrf.mxu0  ;;  %v6600_v16 = vld [vmem:[#allocation6 + $0x478] sm:$0xf0]  ;;  %v8949_v30 = vld [vmem:[#allocation6 + $0x5cc] sm:$0xf] }
 0x182   :  { %v1472_v38 = vadd.f32 %v1471_v31, %v1459_v28  ;;  %2402 = vmatpush.bf16.msrb.mxu0 %v6931_v42  ;;  %v6603_v29 = vor.u32 %v8905_v14, %v6600_v16  ;;  %v6584_v28 = vld [vmem:[#allocation6 + $0x458] sm:$0xf0]  ;;  %v6822_v42 = vld [vmem:[#allocation6 + $0x628] sm:$0xf]  ;;  %v9015_v16 = vld [vmem:[#allocation6 + $0x7d4] sm:$0xf0] }
 0x183   :  { %v6776_v31 = vld [vmem:[#allocation6 + $0x5d8] sm:$0xf0]  ;;  %v6587_v36 = vor.u32 %v8901_v47, %v6584_v28  ;;  %v7030_v14 = vld [vmem:[#allocation6 + $0x7c8] sm:$0xf]  ;;  %v8977_v28 = vld [vmem:[#allocation6 + $0x6ac] sm:$0xf] }
 0x184   :  { %v9803_v43 = vadd.f32 %v1472_v38, %v9749_v0  ;;  %v6779_v38 = vor.u32 %v8949_v30, %v6776_v31  ;;  %v6696_v47 = vld [vmem:[#allocation6 + $0x538] sm:$0xf0] }
 0x185   :  { %2415 = vmatpush.bf16.msra.mxu3 %v6551_v34  ;;  %2424 = vmatpush.bf16.msra.mxu1 %v6743_v35  ;;  %v6855_v35 = vor.u32 %v8971_v26, %v6854_v23  ;;  %v7014_v23 = vld [vmem:[#allocation6 + $0x7a8] sm:$0xf]  ;;  %v8929_v26 = vld [vmem:[#allocation6 + $0x52c] sm:$0xf]  ;;  %v6888_v30 = vld [vmem:[#allocation6 + $0x6b8] sm:$0xf0] }
 0x186   :  { %v9807_v48 = vpack.c.bf16 %v9803_v43, %v9803_v43 }
 0x188   :  { %v9809_v59 = vpop.f32.mrf.mxu3  ;;  %2338 = vmatmul.bf16.vlgmr.msra.gmra.mxu2 %v9807_v48  ;;  %2377 = vmatmul.bf16.vlgmr.msrb.gmra.mxu1 %v9797_v63 }
 0x189   :  { %2460 = vmatpush.bf16.msrb.mxu3 %v6667_v39  ;;  %2425 = vmatpush.bf16.msra.mxu1 %v6727_v45  ;;  %v1473_v60 = vpop.f32.mrf.mxu0  ;;  %v8967_v39 = vld [vmem:[#allocation6 + $0x654] sm:$0xf0] }
 0x18a   :  { %2416 = vmatmul.bf16.vlgmr.msra.gmra.mxu3 %v9786_v15  ;;  %2434 = vmatpush.bf16.msra.mxu2 %v6919_v51  ;;  %v6839_v3 = vor.u32 %v8967_v39, %v6838_v37  ;;  %v6763_v51 = vor.u32 %v8945_v32, %v6760_v41  ;;  %v8925_v37 = vld [vmem:[#allocation6 + $0x50c] sm:$0xf] }
 0x18b   :  { %v9811_v0 = vpop.f32.mrf.mxu1  ;;  %v8973_v39 = vld [vmem:[#allocation6 + $0x68c] sm:$0xf] }
 0x18c   :  { %v1498_v45 = vadd.f32 %v9811_v0, %v9809_v59  ;;  %v7046_v59 = vld [vmem:[#allocation6 + $0x7e8] sm:$0xf]  ;;  %v9019_v0 = vld [vmem:[#allocation6 + $0x7f4] sm:$0xf0]  ;;  %v6875_v41 = vor.u32 %v8973_v39, %v6872_v40  ;;  %v9038_v39 = vld [vmem:[#allocation6 + $0x88c] sm:$0xf0] }
 0x18d   :  { %2461 = vmatpush.bf16.msrb.mxu3 %v6651_v52  ;;  %2426 = vmatpush.bf16.msra.mxu1 %v6711_v55  ;;  %v8963_v52 = vld [vmem:[#allocation6 + $0x634] sm:$0xf0]  ;;  %v7047_v10 = vor.u32 %v9019_v0, %v7046_v59  ;;  %v8957_v0 = vld [vmem:[#allocation6 + $0x60c] sm:$0xf] }
 0x18e   :  { %2435 = vmatpush.bf16.msra.mxu2 %v6903_v61  ;;  %v6823_v55 = vor.u32 %v8963_v52, %v6822_v42  ;;  %v6555_v61 = vor.u32 %v8893_v53, %v6552_v54  ;;  %v8969_v42 = vld [vmem:[#allocation6 + $0x66c] sm:$0xf]  ;;  %v6966_v53 = vld [vmem:[#allocation6 + $0x748] sm:$0xf]  ;;  %v8999_v54 = vld [vmem:[#allocation6 + $0x754] sm:$0xf0] }
 0x18f   :  { %v8991_v59 = vld [vmem:[#allocation6 + $0x714] sm:$0xf0] }
 0x190   :  { %v1486_v17 = vpop.f32.mrf.mxu3 }
 0x191   :  { %2462 = vmatpush.bf16.msrb.mxu3 %v6635_v1  ;;  %2427 = vmatpush.bf16.msra.mxu1 %v6695_v8  ;;  %v6806_v1 = vld [vmem:[#allocation6 + $0x608] sm:$0xf]  ;;  %v6920_v8 = vld [vmem:[#allocation6 + $0x6f8] sm:$0xf0]  ;;  %v8933_v17 = vld [vmem:[#allocation6 + $0x54c] sm:$0xf] }
 0x192   :  { %2436 = vmatpush.bf16.msra.mxu2 %v6887_v62  ;;  %v6923_v13 = vor.u32 %v8985_v7, %v6920_v8  ;;  %v7048_v7 = vld [vmem:[#allocation6 + $0x7f8] sm:$0xf0] }
 0x193   :  { %v1499_v18 = vpop.f32.mrf.mxu1 }
 0x194   :  { %v6712_v18 = vld [vmem:[#allocation6 + $0x558] sm:$0xf0] }
 0x195   :  { %2463 = vmatpush.bf16.msrb.mxu3 %v6619_v4  ;;  %2428 = vmatpush.bf16.msra.mxu1 %v6679_v21  ;;  %v6807_v4 = vor.u32 %v8959_v24, %v6806_v1  ;;  %v7031_v21 = vor.u32 %v9015_v16, %v7030_v14  ;;  %v6824_v1 = vld [vmem:[#allocation6 + $0x638] sm:$0xf0]  ;;  %v9009_v14 = vld [vmem:[#allocation6 + $0x7ac] sm:$0xf] }
 0x196   :  { %2437 = vmatpush.bf16.msra.mxu2 %v6871_v22  ;;  %v6715_v22 = vor.u32 %v8933_v17, %v6712_v18  ;;  %v7016_v16 = vld [vmem:[#allocation6 + $0x7b8] sm:$0xf0]  ;;  %v9005_v18 = vld [vmem:[#allocation6 + $0x78c] sm:$0xf] }
 0x197   :  { %v7019_v17 = vor.u32 %v9009_v14, %v7016_v16  ;;  %v7422_v14 = vld [vmem:[#allocation6 + $0xae0] sm:$0xf] }
 0x198   :  { %v1510_v34 = vpop.f32.mrf.mxu2  ;;  %2390 = vmatmul.bf16.vlgmr.msrb.gmra.mxu2 %v9807_v48  ;;  %2429 = vmatmul.bf16.vlgmr.msra.gmra.mxu1 %v9797_v63 }
 0x199   :  { %2464 = vmatpush.bf16.msrb.mxu3 %v6603_v29  ;;  %2473 = vmatpush.bf16.msrb.mxu1 %v6795_v25  ;;  %v1511_v57 = vadd.f32 %v1510_v34, %v1498_v45  ;;  %v6907_v29 = vor.u32 %v8981_v19, %v6904_v20  ;;  %v9011_v25 = vld [vmem:[#allocation6 + $0x7b4] sm:$0xf0]  ;;  %v6891_v34 = vor.u32 %v8977_v28, %v6888_v30  ;;  %v6856_v45 = vld [vmem:[#allocation6 + $0x678] sm:$0xf0]  ;;  %v8997_v30 = vld [vmem:[#allocation6 + $0x74c] sm:$0xf] }
 0x19a   :  { %2438 = vmatpush.bf16.msra.mxu2 %v6855_v35  ;;  %v7015_v31 = vor.u32 %v9011_v25, %v7014_v23  ;;  %v6998_v35 = vld [vmem:[#allocation6 + $0x788] sm:$0xf]  ;;  %v6859_v52 = vor.u32 %v8969_v42, %v6856_v45  ;;  %v7000_v19 = vld [vmem:[#allocation6 + $0x798] sm:$0xf0]  ;;  %v9034_v42 = vld [vmem:[#allocation6 + $0x86c] sm:$0xf0] }
 0x19b   :  { %v7003_v20 = vor.u32 %v9005_v18, %v7000_v19  ;;  %v6984_v23 = vld [vmem:[#allocation6 + $0x778] sm:$0xf0]  ;;  %v7294_v45 = vld [vmem:[#allocation6 + $0x9e0] sm:$0xf]  ;;  %v9044_v18 = vld [vmem:[#allocation6 + $0x8c4] sm:$0xf] }
 0x19c   :  { %v7152_v19 = vld [vmem:[#allocation6 + $0x8d0] sm:$0xf0] }
 0x19d   :  { %2465 = vmatpush.bf16.msrb.mxu3 %v6587_v36  ;;  %2474 = vmatpush.bf16.msrb.mxu1 %v6779_v38  ;;  %v9007_v36 = vld [vmem:[#allocation6 + $0x794] sm:$0xf0]  ;;  %v6680_v38 = vld [vmem:[#allocation6 + $0x518] sm:$0xf0] }
 0x19e   :  { %2439 = vmatpush.bf16.msra.mxu2 %v6839_v3  ;;  %v6999_v27 = vor.u32 %v9007_v36, %v6998_v35  ;;  %v6683_v32 = vor.u32 %v8925_v37, %v6680_v38  ;;  %v6982_v3 = vld [vmem:[#allocation6 + $0x768] sm:$0xf]  ;;  %v7134_v35 = vld [vmem:[#allocation6 + $0x8a0] sm:$0xf]  ;;  %v9042_v36 = vld [vmem:[#allocation6 + $0x8ac] sm:$0xf0] }
 0x19f   :  { %v7135_v37 = vor.u32 %v9042_v36, %v7134_v35  ;;  %v7118_v38 = vld [vmem:[#allocation6 + $0x880] sm:$0xf] }
 0x1a0   :  { %v1512_v58 = vpop.f32.mrf.mxu2  ;;  %v7390_v35 = vld [vmem:[#allocation6 + $0xaa0] sm:$0xf] }
 0x1a1   :  { %v1523_v60 = vpop.f32.mrf.mxu0  ;;  %2466 = vmatpush.bf16.msrb.mxu3 %v6571_v49  ;;  %2475 = vmatpush.bf16.msrb.mxu1 %v6763_v51  ;;  %v9003_v49 = vld [vmem:[#allocation6 + $0x774] sm:$0xf0]  ;;  %v6843_v58 = vor.u32 %v8965_v56, %v6840_v12  ;;  %v7278_v12 = vld [vmem:[#allocation6 + $0x9c0] sm:$0xf] }
 0x1a2   :  { %v1524_v2 = vadd.f32 %v1523_v60, %v1511_v57  ;;  %2440 = vmatpush.bf16.msra.mxu2 %v6823_v55  ;;  %v6983_v51 = vor.u32 %v9003_v49, %v6982_v3  ;;  %v6967_v57 = vor.u32 %v8999_v54, %v6966_v53  ;;  %v6950_v60 = vld [vmem:[#allocation6 + $0x728] sm:$0xf]  ;;  %v8995_v55 = vld [vmem:[#allocation6 + $0x734] sm:$0xf0]  ;;  %v7102_v49 = vld [vmem:[#allocation6 + $0x860] sm:$0xf] }
 0x1a3   :  { %v6951_v24 = vor.u32 %v8995_v55, %v6950_v60  ;;  %v7086_v53 = vld [vmem:[#allocation6 + $0x840] sm:$0xf]  ;;  %v9030_v54 = vld [vmem:[#allocation6 + $0x84c] sm:$0xf0] }
 0x1a4   :  { %v9821_v62 = vadd.f32 %v1524_v2, %v9759_v50  ;;  %v7070_v55 = vld [vmem:[#allocation6 + $0x820] sm:$0xf] }
 0x1a5   :  { %2467 = vmatpush.bf16.msrb.mxu3 %v6555_v61  ;;  %2476 = vmatpush.bf16.msrb.mxu1 %v6747_v5  ;;  %v8961_v61 = vld [vmem:[#allocation6 + $0x62c] sm:$0xf]  ;;  %v6934_v5 = vld [vmem:[#allocation6 + $0x708] sm:$0xf] }
 0x1a6   :  { %v9825_v33 = vpack.c.bf16 %v9821_v62, %v9821_v62  ;;  %2441 = vmatpush.bf16.msra.mxu2 %v6807_v4  ;;  %v6827_v2 = vor.u32 %v8961_v61, %v6824_v1  ;;  %v6935_v8 = vor.u32 %v8991_v59, %v6934_v5  ;;  %v7051_v4 = vor.u32 %v9017_v44, %v7048_v7  ;;  %v9026_v61 = vld [vmem:[#allocation6 + $0x82c] sm:$0xf0]  ;;  %v7262_v1 = vld [vmem:[#allocation6 + $0x9a0] sm:$0xf] }
 0x1a7   :  { %v7054_v5 = vld [vmem:[#allocation6 + $0x800] sm:$0xf]  ;;  %v9022_v59 = vld [vmem:[#allocation6 + $0x80c] sm:$0xf0] }
 0x1a8   :  { %2351 = vmatmul.bf16.vlgmr.msra.gmra.mxu0 %v9825_v33  ;;  %2468 = vmatmul.bf16.vlgmr.msrb.gmra.mxu3 %v9786_v15  ;;  %v6699_v15 = vor.u32 %v8929_v26, %v6696_v47  ;;  %v9046_v26 = vld [vmem:[#allocation6 + $0x8cc] sm:$0xf0]  ;;  %v7055_v7 = vor.u32 %v9022_v59, %v7054_v5  ;;  %v7280_v5 = vld [vmem:[#allocation6 + $0x9d0] sm:$0xf0] }
 0x1a9   :  { %2447 = vmatpush.bf16.msra.mxu0 %v7047_v10  ;;  %v1525_v50 = vpop.f32.mrf.mxu0  ;;  %2477 = vmatpush.bf16.msrb.mxu1 %v6731_v11  ;;  %v9013_v10 = vld [vmem:[#allocation6 + $0x7cc] sm:$0xf]  ;;  %v7032_v11 = vld [vmem:[#allocation6 + $0x7d8] sm:$0xf0]  ;;  %v9070_v44 = vld [vmem:[#allocation6 + $0x98c] sm:$0xf0] }
 0x1aa   :  { %2486 = vmatpush.bf16.msrb.mxu2 %v6923_v13  ;;  %v7035_v13 = vor.u32 %v9013_v10, %v7032_v11  ;;  %v7166_v50 = vld [vmem:[#allocation6 + $0x8e0] sm:$0xf] }
 0x1ab   :  { %2442 = vmatmul.bf16.vlgmr.msra.gmra.mxu2 %v9807_v48  ;;  %v7230_v11 = vld [vmem:[#allocation6 + $0x960] sm:$0xf] }
 0x1ad   :  { %2448 = vmatpush.bf16.msra.mxu0 %v7031_v21  ;;  %2478 = vmatpush.bf16.msrb.mxu1 %v6715_v22  ;;  %v9050_v21 = vld [vmem:[#allocation6 + $0x8ec] sm:$0xf0]  ;;  %v7150_v22 = vld [vmem:[#allocation6 + $0x8c0] sm:$0xf] }
 0x1ae   :  { %2487 = vmatpush.bf16.msrb.mxu2 %v6907_v29  ;;  %v9001_v29 = vld [vmem:[#allocation6 + $0x76c] sm:$0xf]  ;;  %v7167_v25 = vor.u32 %v9050_v21, %v7166_v50  ;;  %v7151_v47 = vor.u32 %v9046_v26, %v7150_v22  ;;  %v7155_v50 = vor.u32 %v9044_v18, %v7152_v19  ;;  %v7214_v21 = vld [vmem:[#allocation6 + $0x940] sm:$0xf]  ;;  %v9062_v22 = vld [vmem:[#allocation6 + $0x94c] sm:$0xf0] }
 0x1af   :  { %v6987_v28 = vor.u32 %v9001_v29, %v6984_v23  ;;  %v7406_v29 = vld [vmem:[#allocation6 + $0xac0] sm:$0xf]  ;;  %v9110_v23 = vld [vmem:[#allocation6 + $0xacc] sm:$0xf0] }
 0x1b0   :  { %3289 = vmatpush.bf16.msra.mxu3 %v7167_v25  ;;  %v7215_v25 = vor.u32 %v9062_v22, %v7214_v21  ;;  %v7407_v26 = vor.u32 %v9110_v23, %v7406_v29  ;;  %v9090_v18 = vld [vmem:[#allocation6 + $0xa2c] sm:$0xf0]  ;;  %v9068_v21 = vld [vmem:[#allocation6 + $0x984] sm:$0xf]  ;;  %v7248_v29 = vld [vmem:[#allocation6 + $0x990] sm:$0xf0] }
 0x1b1   :  { %2449 = vmatpush.bf16.msra.mxu0 %v7015_v31  ;;  %2479 = vmatpush.bf16.msrb.mxu1 %v6699_v15  ;;  %v6968_v31 = vld [vmem:[#allocation6 + $0x758] sm:$0xf0]  ;;  %v8993_v15 = vld [vmem:[#allocation6 + $0x72c] sm:$0xf]  ;;  %v7251_v23 = vor.u32 %v9068_v21, %v7248_v29  ;;  %v9126_v29 = vld [vmem:[#allocation6 + $0xb4c] sm:$0xf0] }
 0x1b2   :  { %2488 = vmatpush.bf16.msrb.mxu2 %v6891_v34  ;;  %v6952_v34 = vld [vmem:[#allocation6 + $0x738] sm:$0xf0] }
 0x1b3   :  { %v6955_v40 = vor.u32 %v8993_v15, %v6952_v34  ;;  %v7198_v15 = vld [vmem:[#allocation6 + $0x920] sm:$0xf]  ;;  %v9058_v34 = vld [vmem:[#allocation6 + $0x92c] sm:$0xf0] }
 0x1b4   :  { %3290 = vmatpush.bf16.msra.mxu3 %v7151_v47  ;;  %v9040_v47 = vld [vmem:[#allocation6 + $0x8a4] sm:$0xf]  ;;  %v7199_v36 = vor.u32 %v9058_v34, %v7198_v15  ;;  %v7232_v15 = vld [vmem:[#allocation6 + $0x970] sm:$0xf0] }
 0x1b5   :  { %2450 = vmatpush.bf16.msra.mxu0 %v6999_v27  ;;  %2480 = vmatpush.bf16.msrb.mxu1 %v6683_v32  ;;  %v8989_v27 = vld [vmem:[#allocation6 + $0x70c] sm:$0xf]  ;;  %v6936_v32 = vld [vmem:[#allocation6 + $0x718] sm:$0xf0] }
 0x1b6   :  { %2489 = vmatpush.bf16.msrb.mxu2 %v6875_v41  ;;  %v7119_v41 = vor.u32 %v9038_v39, %v7118_v38  ;;  %v6939_v3 = vor.u32 %v8989_v27, %v6936_v32  ;;  %v9036_v38 = vld [vmem:[#allocation6 + $0x884] sm:$0xf]  ;;  %v7120_v39 = vld [vmem:[#allocation6 + $0x890] sm:$0xf0]  ;;  %v7182_v32 = vld [vmem:[#allocation6 + $0x900] sm:$0xf] }
 0x1b7   :  { %v7123_v27 = vor.u32 %v9036_v38, %v7120_v39  ;;  %v7424_v38 = vld [vmem:[#allocation6 + $0xaf0] sm:$0xf0] }
 0x1b8   :  { %2403 = vmatmul.bf16.vlgmr.msrb.gmra.mxu0 %v9825_v33  ;;  %2481 = vmatmul.bf16.vlgmr.msrb.gmra.mxu1 %v9797_v63  ;;  %v6811_v63 = vor.u32 %v8957_v0, %v6808_v6  ;;  %v7246_v6 = vld [vmem:[#allocation6 + $0x980] sm:$0xf] }
 0x1b9   :  { %2451 = vmatpush.bf16.msra.mxu0 %v6983_v51  ;;  %3291 = vmatpush.bf16.msra.mxu3 %v7135_v37  ;;  %v7103_v51 = vor.u32 %v9034_v42, %v7102_v49  ;;  %v9106_v37 = vld [vmem:[#allocation6 + $0xaac] sm:$0xf0] }
 0x1ba   :  { %2490 = vmatpush.bf16.msrb.mxu2 %v6859_v52  ;;  %v9082_v52 = vld [vmem:[#allocation6 + $0x9ec] sm:$0xf0] }
 0x1bb   :  { %v7295_v56 = vor.u32 %v9082_v52, %v7294_v45  ;;  %v9102_v49 = vld [vmem:[#allocation6 + $0xa8c] sm:$0xf0]  ;;  %v7104_v52 = vld [vmem:[#allocation6 + $0x870] sm:$0xf0] }
 0x1bd   :  { %2452 = vmatpush.bf16.msra.mxu0 %v6967_v57  ;;  %3292 = vmatpush.bf16.msra.mxu3 %v7119_v41  ;;  %v9078_v57 = vld [vmem:[#allocation6 + $0x9cc] sm:$0xf0] }
 0x1be   :  { %2491 = vmatpush.bf16.msrb.mxu2 %v6843_v58  ;;  %v7087_v58 = vor.u32 %v9030_v54, %v7086_v53  ;;  %3302 = vmatpush.bf16.msra.mxu1 %v7295_v56  ;;  %v7279_v60 = vor.u32 %v9078_v57, %v7278_v12  ;;  %v9054_v41 = vld [vmem:[#allocation6 + $0x90c] sm:$0xf0]  ;;  %v9080_v53 = vld [vmem:[#allocation6 + $0x9e4] sm:$0xf]  ;;  %v7296_v12 = vld [vmem:[#allocation6 + $0x9f0] sm:$0xf0] }
 0x1bf   :  { %v7183_v42 = vor.u32 %v9054_v41, %v7182_v32  ;;  %v7299_v57 = vor.u32 %v9080_v53, %v7296_v12  ;;  %v7534_v32 = vld [vmem:[#allocation6 + $0xbc0] sm:$0xf]  ;;  %v9142_v41 = vld [vmem:[#allocation6 + $0xbcc] sm:$0xf0] }
 0x1c0   :  { %v9138_v12 = vld [vmem:[#allocation6 + $0xbac] sm:$0xf0] }
 0x1c1   :  { %2453 = vmatpush.bf16.msra.mxu0 %v6951_v24  ;;  %3293 = vmatpush.bf16.msra.mxu3 %v7103_v51  ;;  %v7071_v24 = vor.u32 %v9026_v61, %v7070_v55  ;;  %v9032_v51 = vld [vmem:[#allocation6 + $0x864] sm:$0xf]  ;;  %v9098_v55 = vld [vmem:[#allocation6 + $0xa6c] sm:$0xf0] }
 0x1c2   :  { %2492 = vmatpush.bf16.msrb.mxu2 %v6827_v2  ;;  %3303 = vmatpush.bf16.msra.mxu1 %v7279_v60  ;;  %v9074_v2 = vld [vmem:[#allocation6 + $0x9ac] sm:$0xf0]  ;;  %v7107_v56 = vor.u32 %v9032_v51, %v7104_v52  ;;  %v7358_v60 = vld [vmem:[#allocation6 + $0xa60] sm:$0xf]  ;;  %v9028_v61 = vld [vmem:[#allocation6 + $0x844] sm:$0xf] }
 0x1c3   :  { %v7263_v0 = vor.u32 %v9074_v2, %v7262_v1  ;;  %v7359_v1 = vor.u32 %v9098_v55, %v7358_v60  ;;  %v9076_v2 = vld [vmem:[#allocation6 + $0x9c4] sm:$0xf]  ;;  %v7408_v52 = vld [vmem:[#allocation6 + $0xad0] sm:$0xf0] }
 0x1c4   :  { %v7200_v60 = vld [vmem:[#allocation6 + $0x930] sm:$0xf0]  ;;  %v9104_v55 = vld [vmem:[#allocation6 + $0xaa4] sm:$0xf] }
 0x1c5   :  { %2454 = vmatpush.bf16.msra.mxu0 %v6935_v8  ;;  %3294 = vmatpush.bf16.msra.mxu3 %v7087_v58  ;;  %v7247_v8 = vor.u32 %v9070_v44, %v7246_v6  ;;  %v7342_v6 = vld [vmem:[#allocation6 + $0xa40] sm:$0xf]  ;;  %v9094_v44 = vld [vmem:[#allocation6 + $0xa4c] sm:$0xf0] }
 0x1c6   :  { %2493 = vmatpush.bf16.msrb.mxu2 %v6811_v63  ;;  %3304 = vmatpush.bf16.msra.mxu1 %v7263_v0  ;;  %v9048_v63 = vld [vmem:[#allocation6 + $0x8e4] sm:$0xf]  ;;  %v7283_v0 = vor.u32 %v9076_v2, %v7280_v5 }
 0x1c8   :  { %2455 = vmatmul.bf16.vlgmr.msra.gmra.mxu0 %v9825_v33 }
 0x1c9   :  { %2499 = vmatpush.bf16.msrb.mxu0 %v7051_v4  ;;  %2494 = vmatmul.bf16.vlgmr.msrb.gmra.mxu2 %v9807_v48  ;;  %v6971_v48 = vor.u32 %v8997_v30, %v6968_v31  ;;  %v7168_v4 = vld [vmem:[#allocation6 + $0x8f0] sm:$0xf0] }
 0x1ca   :  { %3295 = vmatpush.bf16.msra.mxu3 %v7071_v24  ;;  %3305 = vmatpush.bf16.msra.mxu1 %v7247_v8  ;;  %v7088_v24 = vld [vmem:[#allocation6 + $0x850] sm:$0xf0]  ;;  %v9024_v8 = vld [vmem:[#allocation6 + $0x824] sm:$0xf] }
 0x1cb   :  { %v7091_v59 = vor.u32 %v9028_v61, %v7088_v24  ;;  %v7392_v24 = vld [vmem:[#allocation6 + $0xab0] sm:$0xf0] }
 0x1cc   :  { %v7395_v5 = vor.u32 %v9104_v55, %v7392_v24  ;;  %v9043_v24 = vld [vmem:[#allocation6 + $0x8b4] sm:$0xf0] }
 0x1cd   :  { %2500 = vmatpush.bf16.msrb.mxu0 %v7035_v13  ;;  %v9066_v13 = vld [vmem:[#allocation6 + $0x96c] sm:$0xf0] }
 0x1ce   :  { %3296 = vmatpush.bf16.msra.mxu3 %v7055_v7  ;;  %v7231_v16 = vor.u32 %v9066_v13, %v7230_v11  ;;  %v7343_v7 = vor.u32 %v9094_v44, %v7342_v6  ;;  %v7264_v13 = vld [vmem:[#allocation6 + $0x9b0] sm:$0xf0]  ;;  %v9134_v6 = vld [vmem:[#allocation6 + $0xb8c] sm:$0xf0] }
 0x1d0   :  { %3306 = vmatpush.bf16.msra.mxu1 %v7231_v16 }
 0x1d1   :  { %2501 = vmatpush.bf16.msrb.mxu0 %v7019_v17  ;;  %v9114_v17 = vld [vmem:[#allocation6 + $0xaec] sm:$0xf0] }
 0x1d4   :  { %3307 = vmatpush.bf16.msra.mxu1 %v7215_v25  ;;  %v7310_v25 = vld [vmem:[#allocation6 + $0xa00] sm:$0xf] }
 0x1d5   :  { %2502 = vmatpush.bf16.msrb.mxu0 %v7003_v20  ;;  %v7423_v20 = vor.u32 %v9114_v17, %v7422_v14  ;;  %v7326_v17 = vld [vmem:[#allocation6 + $0xa20] sm:$0xf] }
 0x1d6   :  { %v7327_v19 = vor.u32 %v9090_v18, %v7326_v17  ;;  %v9096_v18 = vld [vmem:[#allocation6 + $0xa64] sm:$0xf] }
 0x1d7   :  { %3315 = vmatpush.bf16.msra.mxu2 %v7423_v20  ;;  %v9020_v20 = vld [vmem:[#allocation6 + $0x804] sm:$0xf] }
 0x1d8   :  { %3308 = vmatpush.bf16.msra.mxu1 %v7199_v36 }
 0x1d9   :  { %2503 = vmatpush.bf16.msrb.mxu0 %v6987_v28  ;;  %v7136_v28 = vld [vmem:[#allocation6 + $0x8b0] sm:$0xf0] }
 0x1da   :  { %v7139_v31 = vor.u32 %v9040_v47, %v7136_v28  ;;  %v7550_v47 = vld [vmem:[#allocation6 + $0xbe0] sm:$0xf] }
 0x1db   :  { %3316 = vmatpush.bf16.msra.mxu2 %v7407_v26  ;;  %v9086_v26 = vld [vmem:[#allocation6 + $0xa0c] sm:$0xf0] }
 0x1dc   :  { %3309 = vmatpush.bf16.msra.mxu1 %v7183_v42  ;;  %v7311_v28 = vor.u32 %v9086_v26, %v7310_v25  ;;  %v7216_v42 = vld [vmem:[#allocation6 + $0x950] sm:$0xf0]  ;;  %v9092_v25 = vld [vmem:[#allocation6 + $0xa44] sm:$0xf] }
 0x1dd   :  { %2504 = vmatpush.bf16.msrb.mxu0 %v6971_v48  ;;  %v7344_v26 = vld [vmem:[#allocation6 + $0xa50] sm:$0xf0] }
 0x1e0   :  { %3354 = vmatpush.bf16.msrb.mxu1 %v7299_v57 }
 0x1e1   :  { %2505 = vmatpush.bf16.msrb.mxu0 %v6955_v40  ;;  %v7391_v40 = vor.u32 %v9106_v37, %v7390_v35  ;;  %v9112_v37 = vld [vmem:[#allocation6 + $0xae4] sm:$0xf] }
 0x1e3   :  { %3317 = vmatpush.bf16.msra.mxu2 %v7391_v40  ;;  %v7427_v40 = vor.u32 %v9112_v37, %v7424_v38  ;;  %v9088_v37 = vld [vmem:[#allocation6 + $0xa24] sm:$0xf]  ;;  %v7328_v38 = vld [vmem:[#allocation6 + $0xa30] sm:$0xf0] }
 0x1e4   :  { %3355 = vmatpush.bf16.msrb.mxu1 %v7283_v0  ;;  %v7502_v0 = vld [vmem:[#allocation6 + $0xb80] sm:$0xf] }
 0x1e5   :  { %2506 = vmatpush.bf16.msrb.mxu0 %v6939_v3  ;;  %v7374_v3 = vld [vmem:[#allocation6 + $0xa80] sm:$0xf]  ;;  %v7503_v44 = vor.u32 %v9134_v6, %v7502_v0 }
 0x1e6   :  { %v7375_v45 = vor.u32 %v9102_v49, %v7374_v3  ;;  %v7535_v3 = vor.u32 %v9142_v41, %v7534_v32  ;;  %v9060_v49 = vld [vmem:[#allocation6 + $0x944] sm:$0xf]  ;;  %v7174_v32 = vld [vmem:[#allocation6 + $0x8e8] sm:$0xf]  ;;  %v9051_v41 = vld [vmem:[#allocation6 + $0x8f4] sm:$0xf0] }
 0x1e7   :  { %v7219_v51 = vor.u32 %v9060_v49, %v7216_v42 }
 0x1e8   :  { %2507 = vmatmul.bf16.vlgmr.msrb.gmra.mxu0 %v9825_v33  ;;  %v7171_v33 = vor.u32 %v9048_v63, %v7168_v4  ;;  %3318 = vmatpush.bf16.msra.mxu2 %v7375_v45  ;;  %v7072_v63 = vld [vmem:[#allocation6 + $0x830] sm:$0xf0]  ;;  %v9072_v4 = vld [vmem:[#allocation6 + $0x9a4] sm:$0xf] }
 0x1e9   :  { %v7075_v11 = vor.u32 %v9024_v8, %v7072_v63  ;;  %v7267_v14 = vor.u32 %v9072_v4, %v7264_v13  ;;  %v9108_v45 = vld [vmem:[#allocation6 + $0xac4] sm:$0xf]  ;;  %v7184_v8 = vld [vmem:[#allocation6 + $0x910] sm:$0xf0]  ;;  %v7486_v13 = vld [vmem:[#allocation6 + $0xb60] sm:$0xf] }
 0x1ea   :  { %3341 = vmatpush.bf16.msrb.mxu3 %v7171_v33  ;;  %v7411_v53 = vor.u32 %v9108_v45, %v7408_v52  ;;  %v9100_v63 = vld [vmem:[#allocation6 + $0xa84] sm:$0xf] }
 0x1eb   :  { %v9835_v10 = vpop.f32.mrf.mxu3  ;;  %3356 = vmatpush.bf16.msrb.mxu1 %v7267_v14  ;;  %v9130_v14 = vld [vmem:[#allocation6 + $0xb6c] sm:$0xf0]  ;;  %v9084_v45 = vld [vmem:[#allocation6 + $0xa04] sm:$0xf] }
 0x1ec   :  { %3319 = vmatpush.bf16.msra.mxu2 %v7359_v1  ;;  %v7487_v17 = vor.u32 %v9130_v14, %v7486_v13  ;;  %v9144_v52 = vld [vmem:[#allocation6 + $0xbe4] sm:$0xf] }
 0x1ee   :  { %3342 = vmatpush.bf16.msrb.mxu3 %v7155_v50  ;;  %v7056_v50 = vld [vmem:[#allocation6 + $0x810] sm:$0xf0] }
 0x1ef   :  { %v7059_v22 = vor.u32 %v9020_v20, %v7056_v50  ;;  %3357 = vmatpush.bf16.msrb.mxu1 %v7251_v23 }
 0x1f0   :  { %3320 = vmatpush.bf16.msra.mxu2 %v7343_v7  ;;  %v9052_v7 = vld [vmem:[#allocation6 + $0x904] sm:$0xf] }
 0x1f1   :  { %v7187_v4 = vor.u32 %v9052_v7, %v7184_v8  ;;  %v7126_v7 = vld [vmem:[#allocation6 + $0x888] sm:$0xf] }
 0x1f2   :  { %3343 = vmatpush.bf16.msrb.mxu3 %v7139_v31  ;;  %v9064_v31 = vld [vmem:[#allocation6 + $0x964] sm:$0xf] }
 0x1f3   :  { %v2315_v30 = vpop.f32.mrf.mxu3  ;;  %v7235_v36 = vor.u32 %v9064_v31, %v7232_v15  ;;  %v7454_v31 = vld [vmem:[#allocation6 + $0xb20] sm:$0xf]  ;;  %v9122_v15 = vld [vmem:[#allocation6 + $0xb2c] sm:$0xf0] }
 0x1f4   :  { %3321 = vmatpush.bf16.msra.mxu2 %v7327_v19  ;;  %v9146_v30 = vld [vmem:[#allocation6 + $0xbec] sm:$0xf0]  ;;  %v7360_v19 = vld [vmem:[#allocation6 + $0xa70] sm:$0xf0] }
 0x1f5   :  { %v9837_v48 = vpop.f32.mrf.mxu1  ;;  %v7551_v35 = vor.u32 %v9146_v30, %v7550_v47  ;;  %3358 = vmatpush.bf16.msrb.mxu1 %v7235_v36  ;;  %v7363_v50 = vor.u32 %v9096_v18, %v7360_v19  ;;  %v7455_v36 = vor.u32 %v9122_v15, %v7454_v31  ;;  %v7110_v19 = vld [vmem:[#allocation6 + $0x868] sm:$0xf]  ;;  %v9031_v31 = vld [vmem:[#allocation6 + $0x854] sm:$0xf0] }
 0x1f6   :  { %3344 = vmatpush.bf16.msrb.mxu3 %v7123_v27  ;;  %v2327_v47 = vadd.f32 %v9837_v48, %v9835_v10  ;;  %v7438_v10 = vld [vmem:[#allocation6 + $0xb00] sm:$0xf]  ;;  %v9118_v48 = vld [vmem:[#allocation6 + $0xb0c] sm:$0xf0]  ;;  %v7286_v15 = vld [vmem:[#allocation6 + $0x9c8] sm:$0xf] }
 0x1f7   :  { %3328 = vmatpush.bf16.msra.mxu0 %v7551_v35  ;;  %v7439_v42 = vor.u32 %v9118_v48, %v7438_v10  ;;  %v7270_v10 = vld [vmem:[#allocation6 + $0x9a8] sm:$0xf] }
 0x1f8   :  { %3322 = vmatpush.bf16.msra.mxu2 %v7311_v28  ;;  %v7347_v28 = vor.u32 %v9092_v25, %v7344_v26 }
 0x1f9   :  { %3359 = vmatpush.bf16.msrb.mxu1 %v7219_v51  ;;  %v7312_v51 = vld [vmem:[#allocation6 + $0xa10] sm:$0xf0] }
 0x1fa   :  { %3345 = vmatpush.bf16.msrb.mxu3 %v7107_v56  ;;  %v7518_v56 = vld [vmem:[#allocation6 + $0xba0] sm:$0xf] }
 0x1fb   :  { %v9839_v54 = vpop.f32.mrf.mxu3  ;;  %3329 = vmatpush.bf16.msra.mxu0 %v7535_v3  ;;  %v7519_v57 = vor.u32 %v9138_v12, %v7518_v56  ;;  %v7331_v3 = vor.u32 %v9088_v37, %v7328_v38  ;;  %v7158_v56 = vld [vmem:[#allocation6 + $0x8c8] sm:$0xf]  ;;  %v9047_v12 = vld [vmem:[#allocation6 + $0x8d4] sm:$0xf0]  ;;  %v9128_v37 = vld [vmem:[#allocation6 + $0xb64] sm:$0xf] }
 0x1fc   :  { %3367 = vmatpush.bf16.msrb.mxu2 %v7427_v40  ;;  %v7488_v38 = vld [vmem:[#allocation6 + $0xb70] sm:$0xf0] }
 0x1fd   :  { %v2328_v58 = vpop.f32.mrf.mxu1 }
 0x1fe   :  { %3346 = vmatpush.bf16.msrb.mxu3 %v7091_v59  ;;  %v9056_v58 = vld [vmem:[#allocation6 + $0x924] sm:$0xf] }
 0x1ff   :  { %v7203_v1 = vor.u32 %v9056_v58, %v7200_v60  ;;  %3330 = vmatpush.bf16.msra.mxu0 %v7519_v57  ;;  %v7315_v57 = vor.u32 %v9084_v45, %v7312_v51  ;;  %v7552_v58 = vld [vmem:[#allocation6 + $0xbf0] sm:$0xf0] }
 0x200   :  { %3368 = vmatpush.bf16.msrb.mxu2 %v7411_v53  ;;  %v7472_v45 = vld [vmem:[#allocation6 + $0xb50] sm:$0xf0] }
 0x201   :  { %3360 = vmatpush.bf16.msrb.mxu1 %v7203_v1  ;;  %v7142_v1 = vld [vmem:[#allocation6 + $0x8a8] sm:$0xf] }
 0x202   :  { %3347 = vmatpush.bf16.msrb.mxu3 %v7075_v11 }
 0x203   :  { %v2367_v33 = vpop.f32.mrf.mxu3  ;;  %3331 = vmatpush.bf16.msra.mxu0 %v7503_v44  ;;  %v7143_v44 = vor.u32 %v9043_v24, %v7142_v1  ;;  %v7456_v1 = vld [vmem:[#allocation6 + $0xb30] sm:$0xf0]  ;;  %v9049_v24 = vld [vmem:[#allocation6 + $0x8ec] sm:$0xf] }
 0x204   :  { %3369 = vmatpush.bf16.msrb.mxu2 %v7395_v5  ;;  %v7376_v33 = vld [vmem:[#allocation6 + $0xa90] sm:$0xf0] }
 0x205   :  { %v9841_v16 = vpop.f32.mrf.mxu1  ;;  %v7379_v11 = vor.u32 %v9100_v63, %v7376_v33  ;;  %3361 = vmatpush.bf16.msrb.mxu1 %v7187_v4  ;;  %v7536_v5 = vld [vmem:[#allocation6 + $0xbd0] sm:$0xf0]  ;;  %v9039_v63 = vld [vmem:[#allocation6 + $0x894] sm:$0xf0]  ;;  %v9136_v4 = vld [vmem:[#allocation6 + $0xba4] sm:$0xf] }
 0x206   :  { %3348 = vmatpush.bf16.msrb.mxu3 %v7059_v22  ;;  %v7470_v22 = vld [vmem:[#allocation6 + $0xb40] sm:$0xf]  ;;  %v2379_v8 = vadd.f32 %v9841_v16, %v9839_v54  ;;  %v7520_v33 = vld [vmem:[#allocation6 + $0xbb0] sm:$0xf0]  ;;  %v7127_v18 = vor.u32 %v9039_v63, %v7126_v7  ;;  %v9132_v54 = vld [vmem:[#allocation6 + $0xb84] sm:$0xf] }
 0x207   :  { %3332 = vmatpush.bf16.msra.mxu0 %v7487_v17  ;;  %v7471_v23 = vor.u32 %v9126_v29, %v7470_v22  ;;  %v7523_v13 = vor.u32 %v9136_v4, %v7520_v33  ;;  %v7504_v16 = vld [vmem:[#allocation6 + $0xb90] sm:$0xf0]  ;;  %v7238_v63 = vld [vmem:[#allocation6 + $0x968] sm:$0xf]  ;;  %v9067_v4 = vld [vmem:[#allocation6 + $0x974] sm:$0xf0] }
 0x208   :  { %3370 = vmatpush.bf16.msrb.mxu2 %v7379_v11  ;;  %v7507_v26 = vor.u32 %v9132_v54, %v7504_v16  ;;  %v7222_v54 = vld [vmem:[#allocation6 + $0x948] sm:$0xf]  ;;  %v9063_v16 = vld [vmem:[#allocation6 + $0x954] sm:$0xf0] }
 0x20b   :  { %v9843_v34 = vpop.f32.mrf.mxu2  ;;  %3333 = vmatpush.bf16.msra.mxu0 %v7471_v23  ;;  %v9083_v23 = vld [vmem:[#allocation6 + $0x9f4] sm:$0xf0] }
 0x20c   :  { %3371 = vmatpush.bf16.msrb.mxu2 %v7363_v50  ;;  %v2340_v30 = vadd.f32 %v9843_v34, %v2327_v47  ;;  %v7175_v34 = vor.u32 %v9051_v41, %v7174_v32  ;;  %v9035_v50 = vld [vmem:[#allocation6 + $0x874] sm:$0xf0]  ;;  %v7078_v41 = vld [vmem:[#allocation6 + $0x828] sm:$0xf] }
 0x20d   :  { %v9845_v39 = vpop.f32.mrf.mxu3  ;;  %v2380_v27 = vpop.f32.mrf.mxu1 }
 0x20f   :  { %3334 = vmatpush.bf16.msra.mxu0 %v7455_v36  ;;  %v9079_v36 = vld [vmem:[#allocation6 + $0x9d4] sm:$0xf0] }
 0x210   :  { %3372 = vmatpush.bf16.msrb.mxu2 %v7347_v28  ;;  %v7287_v32 = vor.u32 %v9079_v36, %v7286_v15 }
 0x213   :  { %v2341_v61 = vpop.f32.mrf.mxu2  ;;  %3335 = vmatpush.bf16.msra.mxu0 %v7439_v42  ;;  %v9124_v42 = vld [vmem:[#allocation6 + $0xb44] sm:$0xf] }
 0x214   :  { %3373 = vmatpush.bf16.msrb.mxu2 %v7331_v3  ;;  %v7159_v61 = vor.u32 %v9047_v12, %v7158_v56  ;;  %v9027_v3 = vld [vmem:[#allocation6 + $0x834] sm:$0xf0]  ;;  %v7475_v51 = vor.u32 %v9124_v42, %v7472_v45  ;;  %v7062_v12 = vld [vmem:[#allocation6 + $0x808] sm:$0xf] }
 0x215   :  { %v2419_v2 = vpop.f32.mrf.mxu3  ;;  %v9847_v59 = vpop.f32.mrf.mxu1  ;;  %v7382_v42 = vld [vmem:[#allocation6 + $0xa88] sm:$0xf]  ;;  %v9103_v45 = vld [vmem:[#allocation6 + $0xa94] sm:$0xf0] }
 0x216   :  { %v9140_v2 = vld [vmem:[#allocation6 + $0xbc4] sm:$0xf] }
 0x217   :  { %v7539_v6 = vor.u32 %v9140_v2, %v7536_v5  ;;  %v7176_v2 = vld [vmem:[#allocation6 + $0x8f8] sm:$0xf0] }
 0x218   :  { %3374 = vmatpush.bf16.msrb.mxu2 %v7315_v57  ;;  %v9023_v57 = vld [vmem:[#allocation6 + $0x814] sm:$0xf0] }
 0x219   :  { %v7063_v7 = vor.u32 %v9023_v57, %v7062_v12  ;;  %v9081_v12 = vld [vmem:[#allocation6 + $0x9ec] sm:$0xf]  ;;  %v7304_v57 = vld [vmem:[#allocation6 + $0x9f8] sm:$0xf0] }
 0x21b   :  { %v9849_v20 = vpop.f32.mrf.mxu2 }
 0x21c   :  { %v2392_v14 = vadd.f32 %v9849_v20, %v2379_v8  ;;  %v7111_v20 = vor.u32 %v9035_v50, %v7110_v19 }
 0x21d   :  { %v2432_v21 = vpop.f32.mrf.mxu1 }
 0x21e   :  { %v7302_v21 = vld [vmem:[#allocation6 + $0x9e8] sm:$0xf] }
 0x21f   :  { %v7303_v28 = vor.u32 %v9083_v23, %v7302_v21 }
 0x223   :  { %v2393_v27 = vpop.f32.mrf.mxu2 }
 0x225   :  { %v2352_v35 = vpop.f32.mrf.mxu0 }
 0x226   :  { %v2353_v40 = vadd.f32 %v2352_v35, %v2340_v30  ;;  %v7094_v30 = vld [vmem:[#allocation6 + $0x848] sm:$0xf] }
 0x227   :  { %v7095_v27 = vor.u32 %v9031_v31, %v7094_v30  ;;  %v7223_v31 = vor.u32 %v9063_v16, %v7222_v54  ;;  %v7064_v54 = vld [vmem:[#allocation6 + $0x818] sm:$0xf0]  ;;  %v9069_v16 = vld [vmem:[#allocation6 + $0x98c] sm:$0xf] }
 0x228   :  { %v9855_v49 = vadd.f32 %v2353_v40, %v9782_v9  ;;  %v7555_v9 = vor.u32 %v9144_v52, %v7552_v58  ;;  %v7491_v40 = vor.u32 %v9128_v37, %v7488_v38  ;;  %v7079_v52 = vor.u32 %v9027_v3, %v7078_v41  ;;  %v7254_v58 = vld [vmem:[#allocation6 + $0x988] sm:$0xf]  ;;  %v9059_v38 = vld [vmem:[#allocation6 + $0x934] sm:$0xf0] }
 0x229   :  { %v7206_v37 = vld [vmem:[#allocation6 + $0x928] sm:$0xf] }
 0x22a   :  { %v9859_v53 = vpack.c.bf16 %v9855_v49, %v9855_v49  ;;  %3380 = vmatpush.bf16.msrb.mxu0 %v7555_v9  ;;  %v2431_v9 = vadd.f32 %v9847_v59, %v9845_v39  ;;  %v9116_v39 = vld [vmem:[#allocation6 + $0xb04] sm:$0xf]  ;;  %v7440_v59 = vld [vmem:[#allocation6 + $0xb10] sm:$0xf0]  ;;  %v7207_v41 = vor.u32 %v9059_v38, %v7206_v37  ;;  %v9065_v38 = vld [vmem:[#allocation6 + $0x96c] sm:$0xf] }
 0x22b   :  { %v9861_v60 = vpop.f32.mrf.mxu3  ;;  %v7443_v19 = vor.u32 %v9116_v39, %v7440_v59  ;;  %v9073_v39 = vld [vmem:[#allocation6 + $0x9ac] sm:$0xf]  ;;  %v7272_v59 = vld [vmem:[#allocation6 + $0x9b8] sm:$0xf0] }
 0x22c   :  { %3297 = vmatmul.bf16.vlgmr.msra.gmra.mxu3 %v9859_v53 }
 0x22d   :  { %3393 = vmatpush.bf16.msra.mxu3 %v7175_v34  ;;  %v2354_v55 = vpop.f32.mrf.mxu0  ;;  %v9075_v34 = vld [vmem:[#allocation6 + $0x9b4] sm:$0xf0] }
 0x22e   :  { %v9864_v0 = vpop.f32.mrf.mxu2  ;;  %3381 = vmatpush.bf16.msrb.mxu0 %v7539_v6  ;;  %v7271_v56 = vor.u32 %v9075_v34, %v7270_v10  ;;  %v9071_v55 = vld [vmem:[#allocation6 + $0x994] sm:$0xf0] }
 0x22f   :  { %v2444_v6 = vadd.f32 %v9864_v0, %v2431_v9  ;;  %v7255_v8 = vor.u32 %v9071_v55, %v7254_v58  ;;  %v7239_v0 = vor.u32 %v9067_v4, %v7238_v63  ;;  %v9055_v34 = vld [vmem:[#allocation6 + $0x914] sm:$0xf0]  ;;  %v7383_v9 = vor.u32 %v9103_v45, %v7382_v42  ;;  %v7350_v63 = vld [vmem:[#allocation6 + $0xa48] sm:$0xf]  ;;  %v9061_v45 = vld [vmem:[#allocation6 + $0x94c] sm:$0xf] }
 0x230   :  { %v9143_v42 = vld [vmem:[#allocation6 + $0xbd4] sm:$0xf0] }
 0x231   :  { %3394 = vmatpush.bf16.msra.mxu3 %v7159_v61  ;;  %v9120_v61 = vld [vmem:[#allocation6 + $0xb24] sm:$0xf] }
 0x232   :  { %3382 = vmatpush.bf16.msrb.mxu0 %v7523_v13  ;;  %v7459_v5 = vor.u32 %v9120_v61, %v7456_v1  ;;  %v7430_v13 = vld [vmem:[#allocation6 + $0xae8] sm:$0xf]  ;;  %v7307_v1 = vor.u32 %v9081_v12, %v7304_v57 }
 0x233   :  { %v2471_v11 = vpop.f32.mrf.mxu3  ;;  %v7366_v61 = vld [vmem:[#allocation6 + $0xa68] sm:$0xf] }
 0x234   :  { %v7179_v11 = vor.u32 %v9049_v24, %v7176_v2  ;;  %v9099_v24 = vld [vmem:[#allocation6 + $0xa74] sm:$0xf0]  ;;  %v9029_v2 = vld [vmem:[#allocation6 + $0x84c] sm:$0xf] }
 0x235   :  { %3395 = vmatpush.bf16.msra.mxu3 %v7143_v44  ;;  %v2404_v17 = vpop.f32.mrf.mxu0  ;;  %v9869_v29 = vpop.f32.mrf.mxu1 }
 0x236   :  { %v2405_v22 = vadd.f32 %v2404_v17, %v2392_v14  ;;  %v2445_v25 = vpop.f32.mrf.mxu2  ;;  %3383 = vmatpush.bf16.msrb.mxu0 %v7507_v26  ;;  %v9115_v14 = vld [vmem:[#allocation6 + $0xaf4] sm:$0xf0]  ;;  %v9045_v17 = vld [vmem:[#allocation6 + $0x8cc] sm:$0xf] }
 0x237   :  { %v7414_v25 = vld [vmem:[#allocation6 + $0xac8] sm:$0xf]  ;;  %v9111_v26 = vld [vmem:[#allocation6 + $0xad4] sm:$0xf0] }
 0x238   :  { %v9872_v47 = vadd.f32 %v2405_v22, %v9793_v46  ;;  %v7431_v22 = vor.u32 %v9115_v14, %v7430_v13  ;;  %v7415_v15 = vor.u32 %v9111_v26, %v7414_v25  ;;  %v7080_v13 = vld [vmem:[#allocation6 + $0x838] sm:$0xf0] }
 0x239   :  { %3396 = vmatpush.bf16.msra.mxu3 %v7127_v18  ;;  %v7160_v18 = vld [vmem:[#allocation6 + $0x8d8] sm:$0xf0] }
 0x23a   :  { %v9876_v35 = vpack.c.bf16 %v9872_v47, %v9872_v47  ;;  %3384 = vmatpush.bf16.msrb.mxu0 %v7491_v40  ;;  %v7163_v23 = vor.u32 %v9045_v17, %v7160_v18  ;;  %v7398_v40 = vld [vmem:[#allocation6 + $0xaa8] sm:$0xf]  ;;  %v7256_v25 = vld [vmem:[#allocation6 + $0x998] sm:$0xf0] }
 0x23b   :  { %v7334_v18 = vld [vmem:[#allocation6 + $0xa28] sm:$0xf]  ;;  %v7259_v37 = vor.u32 %v9069_v16, %v7256_v25  ;;  %v7352_v16 = vld [vmem:[#allocation6 + $0xa58] sm:$0xf0] }
 0x23c   :  { %3310 = vmatmul.bf16.vlgmr.msra.gmra.mxu1 %v9876_v35  ;;  %3349 = vmatmul.bf16.vlgmr.msrb.gmra.mxu3 %v9859_v53 }
 0x23d   :  { %3397 = vmatpush.bf16.msra.mxu3 %v7111_v20  ;;  %3406 = vmatpush.bf16.msra.mxu1 %v7303_v28  ;;  %v2406_v46 = vpop.f32.mrf.mxu0  ;;  %v2484_v48 = vpop.f32.mrf.mxu1  ;;  %v9041_v20 = vld [vmem:[#allocation6 + $0x8ac] sm:$0xf]  ;;  %v7144_v28 = vld [vmem:[#allocation6 + $0x8b8] sm:$0xf0] }
 0x23e   :  { %3385 = vmatpush.bf16.msrb.mxu0 %v7475_v51  ;;  %v7147_v36 = vor.u32 %v9041_v20, %v7144_v28  ;;  %v9107_v46 = vld [vmem:[#allocation6 + $0xab4] sm:$0xf0]  ;;  %v7190_v48 = vld [vmem:[#allocation6 + $0x908] sm:$0xf]  ;;  %v9033_v51 = vld [vmem:[#allocation6 + $0x86c] sm:$0xf] }
 0x23f   :  { %v7399_v3 = vor.u32 %v9107_v46, %v7398_v40  ;;  %v7191_v58 = vor.u32 %v9055_v34, %v7190_v48  ;;  %v7240_v40 = vld [vmem:[#allocation6 + $0x978] sm:$0xf0]  ;;  %v9113_v46 = vld [vmem:[#allocation6 + $0xaec] sm:$0xf]  ;;  %v7542_v34 = vld [vmem:[#allocation6 + $0xbc8] sm:$0xf] }
 0x240   :  { %v7543_v12 = vor.u32 %v9143_v42, %v7542_v34  ;;  %v9137_v34 = vld [vmem:[#allocation6 + $0xbac] sm:$0xf]  ;;  %v7528_v42 = vld [vmem:[#allocation6 + $0xbb8] sm:$0xf0] }
 0x241   :  { %3398 = vmatpush.bf16.msra.mxu3 %v7095_v27  ;;  %3407 = vmatpush.bf16.msra.mxu1 %v7287_v32  ;;  %v9037_v27 = vld [vmem:[#allocation6 + $0x88c] sm:$0xf]  ;;  %v7128_v32 = vld [vmem:[#allocation6 + $0x898] sm:$0xf0] }
 0x242   :  { %3386 = vmatpush.bf16.msrb.mxu0 %v7459_v5  ;;  %v7131_v10 = vor.u32 %v9037_v27, %v7128_v32  ;;  %v7096_v5 = vld [vmem:[#allocation6 + $0x858] sm:$0xf0] }
 0x243   :  { %v7432_v27 = vld [vmem:[#allocation6 + $0xaf8] sm:$0xf0] }
 0x244   :  { %v7435_v48 = vor.u32 %v9113_v46, %v7432_v27  ;;  %v7560_v46 = vld [vmem:[#allocation6 + $0xbf8] sm:$0xf0] }
 0x245   :  { %3399 = vmatpush.bf16.msra.mxu3 %v7079_v52  ;;  %3408 = vmatpush.bf16.msra.mxu1 %v7271_v56  ;;  %v2456_v44 = vpop.f32.mrf.mxu0  ;;  %v7112_v52 = vld [vmem:[#allocation6 + $0x878] sm:$0xf0] }
 0x246   :  { %v2457_v33 = vadd.f32 %v2456_v44, %v2444_v6  ;;  %3387 = vmatpush.bf16.msrb.mxu0 %v7443_v19  ;;  %v7115_v55 = vor.u32 %v9033_v51, %v7112_v52  ;;  %v9077_v6 = vld [vmem:[#allocation6 + $0x9cc] sm:$0xf]  ;;  %v7288_v44 = vld [vmem:[#allocation6 + $0x9d8] sm:$0xf0]  ;;  %v2483_v19 = vadd.f32 %v9869_v29, %v9861_v60  ;;  %v7558_v60 = vld [vmem:[#allocation6 + $0xbe8] sm:$0xf] }
 0x247   :  { %v7291_v4 = vor.u32 %v9077_v6, %v7288_v44  ;;  %v9147_v29 = vld [vmem:[#allocation6 + $0xbf4] sm:$0xf0]  ;;  %v7224_v51 = vld [vmem:[#allocation6 + $0x958] sm:$0xf0]  ;;  %v9109_v52 = vld [vmem:[#allocation6 + $0xacc] sm:$0xf] }
 0x248   :  { %v9884_v50 = vadd.f32 %v2457_v33, %v9803_v43  ;;  %v9095_v33 = vld [vmem:[#allocation6 + $0xa54] sm:$0xf0]  ;;  %v7227_v57 = vor.u32 %v9061_v45, %v7224_v51  ;;  %v7510_v44 = vld [vmem:[#allocation6 + $0xb88] sm:$0xf]  ;;  %v7531_v45 = vor.u32 %v9137_v34, %v7528_v42  ;;  %v9133_v51 = vld [vmem:[#allocation6 + $0xb8c] sm:$0xf] }
 0x249   :  { %3400 = vmatpush.bf16.msra.mxu3 %v7063_v7  ;;  %3409 = vmatpush.bf16.msra.mxu1 %v7255_v8  ;;  %v7367_v7 = vor.u32 %v9099_v24, %v7366_v61  ;;  %v7099_v8 = vor.u32 %v9029_v2, %v7096_v5  ;;  %v7351_v14 = vor.u32 %v9095_v33, %v7350_v63  ;;  %v9057_v61 = vld [vmem:[#allocation6 + $0x92c] sm:$0xf]  ;;  %v7400_v2 = vld [vmem:[#allocation6 + $0xab8] sm:$0xf0]  ;;  %v7934_v34 = vld [vmem:[#allocation6 + $0xee0] sm:$0xf] }
 0x24a   :  { %v9888_v21 = vpack.c.bf16 %v9884_v50, %v9884_v50  ;;  %v9105_v24 = vld [vmem:[#allocation6 + $0xaac] sm:$0xf]  ;;  %v7192_v63 = vld [vmem:[#allocation6 + $0x918] sm:$0xf0] }
 0x24b   :  { %v7403_v6 = vor.u32 %v9105_v24, %v7400_v2  ;;  %v7384_v33 = vld [vmem:[#allocation6 + $0xa98] sm:$0xf0]  ;;  %v9125_v2 = vld [vmem:[#allocation6 + $0xb4c] sm:$0xf] }
 0x24c   :  { %v9890_v30 = vpop.f32.mrf.mxu2  ;;  %3323 = vmatmul.bf16.vlgmr.msra.gmra.mxu2 %v9888_v21  ;;  %3362 = vmatmul.bf16.vlgmr.msrb.gmra.mxu1 %v9876_v35 }
 0x24d   :  { %3445 = vmatpush.bf16.msrb.mxu3 %v7179_v11  ;;  %3410 = vmatpush.bf16.msra.mxu1 %v7239_v0  ;;  %v2458_v43 = vpop.f32.mrf.mxu0  ;;  %v9025_v11 = vld [vmem:[#allocation6 + $0x82c] sm:$0xf]  ;;  %v7275_v0 = vor.u32 %v9073_v39, %v7272_v59  ;;  %v2496_v26 = vadd.f32 %v9890_v30, %v2483_v19  ;;  %v7494_v59 = vld [vmem:[#allocation6 + $0xb68] sm:$0xf] }
 0x24e   :  { %3401 = vmatmul.bf16.vlgmr.msra.gmra.mxu3 %v9859_v53  ;;  %3419 = vmatpush.bf16.msra.mxu2 %v7431_v22  ;;  %v7083_v17 = vor.u32 %v9025_v11, %v7080_v13  ;;  %v9091_v22 = vld [vmem:[#allocation6 + $0xa34] sm:$0xf0] }
 0x24f   :  { %v7335_v28 = vor.u32 %v9091_v22, %v7334_v18  ;;  %v7368_v18 = vld [vmem:[#allocation6 + $0xa78] sm:$0xf0]  ;;  %v7478_v22 = vld [vmem:[#allocation6 + $0xb48] sm:$0xf] }
 0x251   :  { %3446 = vmatpush.bf16.msrb.mxu3 %v7163_v23  ;;  %3411 = vmatpush.bf16.msra.mxu1 %v7223_v31  ;;  %v9021_v23 = vld [vmem:[#allocation6 + $0x80c] sm:$0xf]  ;;  %v7318_v31 = vld [vmem:[#allocation6 + $0xa08] sm:$0xf] }
 0x252   :  { %3420 = vmatpush.bf16.msra.mxu2 %v7415_v15  ;;  %v7067_v43 = vor.u32 %v9021_v23, %v7064_v54  ;;  %v9087_v15 = vld [vmem:[#allocation6 + $0xa14] sm:$0xf0]  ;;  %v9093_v54 = vld [vmem:[#allocation6 + $0xa4c] sm:$0xf] }
 0x253   :  { %v7319_v30 = vor.u32 %v9087_v15, %v7318_v31  ;;  %v9127_v23 = vld [vmem:[#allocation6 + $0xb54] sm:$0xf0]  ;;  %v7336_v31 = vld [vmem:[#allocation6 + $0xa38] sm:$0xf0] }
 0x254   :  { %v2497_v56 = vpop.f32.mrf.mxu2  ;;  %v7479_v25 = vor.u32 %v9127_v23, %v7478_v22  ;;  %v7598_v22 = vld [vmem:[#allocation6 + $0xc40] sm:$0xf]  ;;  %v9158_v23 = vld [vmem:[#allocation6 + $0xc4c] sm:$0xf0] }
 0x255   :  { %3447 = vmatpush.bf16.msrb.mxu3 %v7147_v36  ;;  %3412 = vmatpush.bf16.msra.mxu1 %v7207_v41  ;;  %v7559_v41 = vor.u32 %v9147_v29, %v7558_v60  ;;  %v7416_v56 = vld [vmem:[#allocation6 + $0xad8] sm:$0xf0]  ;;  %v9119_v60 = vld [vmem:[#allocation6 + $0xb14] sm:$0xf0]  ;;  %v9085_v29 = vld [vmem:[#allocation6 + $0xa0c] sm:$0xf] }
 0x256   :  { %3421 = vmatpush.bf16.msra.mxu2 %v7399_v3 }
 0x259   :  { %3448 = vmatpush.bf16.msrb.mxu3 %v7131_v10  ;;  %3413 = vmatpush.bf16.msra.mxu1 %v7191_v58  ;;  %v7243_v10 = vor.u32 %v9065_v38, %v7240_v40  ;;  %v7419_v58 = vor.u32 %v9109_v52, %v7416_v56  ;;  %v7320_v38 = vld [vmem:[#allocation6 + $0xa18] sm:$0xf0]  ;;  %v9145_v40 = vld [vmem:[#allocation6 + $0xbec] sm:$0xf] }
 0x25a   :  { %3422 = vmatpush.bf16.msra.mxu2 %v7383_v9  ;;  %v7526_v9 = vld [vmem:[#allocation6 + $0xba8] sm:$0xf]  ;;  %v7512_v52 = vld [vmem:[#allocation6 + $0xb98] sm:$0xf0] }
 0x25b   :  { %v7515_v56 = vor.u32 %v9133_v51, %v7512_v52  ;;  %v9172_v51 = vld [vmem:[#allocation6 + $0xcc4] sm:$0xf]  ;;  %v7664_v52 = vld [vmem:[#allocation6 + $0xcd0] sm:$0xf0] }
 0x25c   :  { %3375 = vmatmul.bf16.vlgmr.msrb.gmra.mxu2 %v9888_v21  ;;  %3414 = vmatmul.bf16.vlgmr.msra.gmra.mxu1 %v9876_v35 }
 0x25d   :  { %3449 = vmatpush.bf16.msrb.mxu3 %v7115_v55  ;;  %3458 = vmatpush.bf16.msrb.mxu1 %v7307_v1  ;;  %v9139_v55 = vld [vmem:[#allocation6 + $0xbb4] sm:$0xf0]  ;;  %v7208_v1 = vld [vmem:[#allocation6 + $0x938] sm:$0xf0] }
 0x25e   :  { %3423 = vmatpush.bf16.msra.mxu2 %v7367_v7  ;;  %v7527_v5 = vor.u32 %v9139_v55, %v7526_v9  ;;  %v9135_v7 = vld [vmem:[#allocation6 + $0xb94] sm:$0xf0]  ;;  %v7496_v9 = vld [vmem:[#allocation6 + $0xb78] sm:$0xf0] }
 0x25f   :  { %v7511_v11 = vor.u32 %v9135_v7, %v7510_v44  ;;  %v7646_v44 = vld [vmem:[#allocation6 + $0xca0] sm:$0xf]  ;;  %v9170_v7 = vld [vmem:[#allocation6 + $0xcac] sm:$0xf0] }
 0x261   :  { %3450 = vmatpush.bf16.msrb.mxu3 %v7099_v8  ;;  %3459 = vmatpush.bf16.msrb.mxu1 %v7291_v4  ;;  %v9053_v8 = vld [vmem:[#allocation6 + $0x90c] sm:$0xf] }
 0x262   :  { %3424 = vmatpush.bf16.msra.mxu2 %v7351_v14  ;;  %v9101_v4 = vld [vmem:[#allocation6 + $0xa8c] sm:$0xf]  ;;  %v7195_v13 = vor.u32 %v9053_v8, %v7192_v63  ;;  %v9131_v14 = vld [vmem:[#allocation6 + $0xb74] sm:$0xf0]  ;;  %v7647_v8 = vor.u32 %v9170_v7, %v7646_v44  ;;  %v7630_v63 = vld [vmem:[#allocation6 + $0xc80] sm:$0xf] }
 0x263   :  { %v7387_v39 = vor.u32 %v9101_v4, %v7384_v33  ;;  %v7495_v19 = vor.u32 %v9131_v14, %v7494_v59  ;;  %v9166_v4 = vld [vmem:[#allocation6 + $0xc8c] sm:$0xf0]  ;;  %v7614_v14 = vld [vmem:[#allocation6 + $0xc60] sm:$0xf] }
 0x264   :  { %v7902_v44 = vld [vmem:[#allocation6 + $0xea0] sm:$0xf] }
 0x265   :  { %v2508_v20 = vpop.f32.mrf.mxu0  ;;  %3451 = vmatpush.bf16.msrb.mxu3 %v7083_v17  ;;  %3460 = vmatpush.bf16.msrb.mxu1 %v7275_v0  ;;  %v9097_v17 = vld [vmem:[#allocation6 + $0xa6c] sm:$0xf] }
 0x266   :  { %v2509_v36 = vadd.f32 %v2508_v20, %v2496_v26  ;;  %3425 = vmatpush.bf16.msra.mxu2 %v7335_v28  ;;  %v7371_v0 = vor.u32 %v9097_v17, %v7368_v18  ;;  %v7355_v26 = vor.u32 %v9093_v54, %v7352_v16  ;;  %v7462_v20 = vld [vmem:[#allocation6 + $0xb28] sm:$0xf]  ;;  %v9123_v28 = vld [vmem:[#allocation6 + $0xb34] sm:$0xf0]  ;;  %v9162_v17 = vld [vmem:[#allocation6 + $0xc6c] sm:$0xf0] }
 0x267   :  { %v7463_v15 = vor.u32 %v9123_v28, %v7462_v20  ;;  %v7806_v18 = vld [vmem:[#allocation6 + $0xde0] sm:$0xf] }
 0x268   :  { %v9901_v32 = vadd.f32 %v2509_v36, %v9821_v62  ;;  %v7790_v16 = vld [vmem:[#allocation6 + $0xdc0] sm:$0xf] }
 0x269   :  { %3452 = vmatpush.bf16.msrb.mxu3 %v7067_v43  ;;  %3461 = vmatpush.bf16.msrb.mxu1 %v7259_v37  ;;  %v9089_v43 = vld [vmem:[#allocation6 + $0xa2c] sm:$0xf]  ;;  %v7446_v37 = vld [vmem:[#allocation6 + $0xb08] sm:$0xf]  ;;  %v7582_v28 = vld [vmem:[#allocation6 + $0xc20] sm:$0xf] }
 0x26a   :  { %v9905_v3 = vpack.c.bf16 %v9901_v32, %v9901_v32  ;;  %3426 = vmatpush.bf16.msra.mxu2 %v7319_v30  ;;  %v7339_v36 = vor.u32 %v9089_v43, %v7336_v31  ;;  %v7447_v27 = vor.u32 %v9119_v60, %v7446_v37  ;;  %v7563_v30 = vor.u32 %v9145_v40, %v7560_v46  ;;  %v9154_v43 = vld [vmem:[#allocation6 + $0xc2c] sm:$0xf0]  ;;  %v7774_v31 = vld [vmem:[#allocation6 + $0xda0] sm:$0xf] }
 0x26b   :  { %v7566_v37 = vld [vmem:[#allocation6 + $0xc00] sm:$0xf]  ;;  %v9150_v60 = vld [vmem:[#allocation6 + $0xc0c] sm:$0xf0] }
 0x26c   :  { %3336 = vmatmul.bf16.vlgmr.msra.gmra.mxu0 %v9905_v3  ;;  %3453 = vmatmul.bf16.vlgmr.msrb.gmra.mxu3 %v9859_v53  ;;  %v7211_v53 = vor.u32 %v9057_v61, %v7208_v1  ;;  %v9174_v61 = vld [vmem:[#allocation6 + $0xccc] sm:$0xf0]  ;;  %v7567_v46 = vor.u32 %v9150_v60, %v7566_v37  ;;  %v7792_v37 = vld [vmem:[#allocation6 + $0xdd0] sm:$0xf0] }
 0x26d   :  { %3432 = vmatpush.bf16.msra.mxu0 %v7559_v41  ;;  %v2510_v62 = vpop.f32.mrf.mxu0  ;;  %3462 = vmatpush.bf16.msrb.mxu1 %v7243_v10  ;;  %v9141_v41 = vld [vmem:[#allocation6 + $0xbcc] sm:$0xf]  ;;  %v7544_v10 = vld [vmem:[#allocation6 + $0xbd8] sm:$0xf0]  ;;  %v9198_v40 = vld [vmem:[#allocation6 + $0xd8c] sm:$0xf0] }
 0x26e   :  { %3471 = vmatpush.bf16.msrb.mxu2 %v7435_v48  ;;  %v7547_v48 = vor.u32 %v9141_v41, %v7544_v10  ;;  %v7678_v62 = vld [vmem:[#allocation6 + $0xce0] sm:$0xf] }
 0x26f   :  { %3427 = vmatmul.bf16.vlgmr.msra.gmra.mxu2 %v9888_v21  ;;  %v7742_v10 = vld [vmem:[#allocation6 + $0xd60] sm:$0xf] }
 0x271   :  { %3433 = vmatpush.bf16.msra.mxu0 %v7543_v12  ;;  %3463 = vmatpush.bf16.msrb.mxu1 %v7227_v57  ;;  %v9178_v12 = vld [vmem:[#allocation6 + $0xcec] sm:$0xf0]  ;;  %v7662_v57 = vld [vmem:[#allocation6 + $0xcc0] sm:$0xf] }
 0x272   :  { %3472 = vmatpush.bf16.msrb.mxu2 %v7419_v58  ;;  %v9129_v58 = vld [vmem:[#allocation6 + $0xb6c] sm:$0xf]  ;;  %v7679_v55 = vor.u32 %v9178_v12, %v7678_v62  ;;  %v7663_v1 = vor.u32 %v9174_v61, %v7662_v57  ;;  %v7667_v62 = vor.u32 %v9172_v51, %v7664_v52  ;;  %v7726_v12 = vld [vmem:[#allocation6 + $0xd40] sm:$0xf]  ;;  %v9190_v57 = vld [vmem:[#allocation6 + $0xd4c] sm:$0xf0] }
 0x273   :  { %v7499_v24 = vor.u32 %v9129_v58, %v7496_v9  ;;  %v7918_v58 = vld [vmem:[#allocation6 + $0xec0] sm:$0xf]  ;;  %v9238_v9 = vld [vmem:[#allocation6 + $0xecc] sm:$0xf0] }
 0x274   :  { %4274 = vmatpush.bf16.msra.mxu3 %v7679_v55  ;;  %v7727_v55 = vor.u32 %v9190_v57, %v7726_v12  ;;  %v7919_v61 = vor.u32 %v9238_v9, %v7918_v58  ;;  %v9218_v51 = vld [vmem:[#allocation6 + $0xe2c] sm:$0xf0]  ;;  %v9196_v12 = vld [vmem:[#allocation6 + $0xd84] sm:$0xf]  ;;  %v7760_v58 = vld [vmem:[#allocation6 + $0xd90] sm:$0xf0] }
 0x275   :  { %3434 = vmatpush.bf16.msra.mxu0 %v7527_v5  ;;  %3464 = vmatpush.bf16.msrb.mxu1 %v7211_v53  ;;  %v7480_v5 = vld [vmem:[#allocation6 + $0xb58] sm:$0xf0]  ;;  %v9121_v53 = vld [vmem:[#allocation6 + $0xb2c] sm:$0xf]  ;;  %v7763_v9 = vor.u32 %v9196_v12, %v7760_v58  ;;  %v9254_v58 = vld [vmem:[#allocation6 + $0xf4c] sm:$0xf0] }
 0x276   :  { %3473 = vmatpush.bf16.msrb.mxu2 %v7403_v6  ;;  %v7464_v6 = vld [vmem:[#allocation6 + $0xb38] sm:$0xf0] }
 0x277   :  { %v7467_v33 = vor.u32 %v9121_v53, %v7464_v6  ;;  %v7710_v53 = vld [vmem:[#allocation6 + $0xd20] sm:$0xf]  ;;  %v9186_v6 = vld [vmem:[#allocation6 + $0xd2c] sm:$0xf0] }
 0x278   :  { %4275 = vmatpush.bf16.msra.mxu3 %v7663_v1  ;;  %v9168_v1 = vld [vmem:[#allocation6 + $0xca4] sm:$0xf]  ;;  %v7711_v7 = vor.u32 %v9186_v6, %v7710_v53  ;;  %v7744_v53 = vld [vmem:[#allocation6 + $0xd70] sm:$0xf0] }
 0x279   :  { %3435 = vmatpush.bf16.msra.mxu0 %v7511_v11  ;;  %3465 = vmatpush.bf16.msrb.mxu1 %v7195_v13  ;;  %v9117_v11 = vld [vmem:[#allocation6 + $0xb0c] sm:$0xf]  ;;  %v7448_v13 = vld [vmem:[#allocation6 + $0xb18] sm:$0xf0] }
 0x27a   :  { %3474 = vmatpush.bf16.msrb.mxu2 %v7387_v39  ;;  %v7631_v39 = vor.u32 %v9166_v4, %v7630_v63  ;;  %v7451_v59 = vor.u32 %v9117_v11, %v7448_v13  ;;  %v9164_v63 = vld [vmem:[#allocation6 + $0xc84] sm:$0xf]  ;;  %v7632_v4 = vld [vmem:[#allocation6 + $0xc90] sm:$0xf0]  ;;  %v7694_v13 = vld [vmem:[#allocation6 + $0xd00] sm:$0xf] }
 0x27b   :  { %v7635_v11 = vor.u32 %v9164_v63, %v7632_v4  ;;  %v7936_v63 = vld [vmem:[#allocation6 + $0xef0] sm:$0xf0] }
 0x27c   :  { %3388 = vmatmul.bf16.vlgmr.msrb.gmra.mxu0 %v9905_v3  ;;  %3466 = vmatmul.bf16.vlgmr.msrb.gmra.mxu1 %v9876_v35  ;;  %v7323_v35 = vor.u32 %v9085_v29, %v7320_v38  ;;  %v7758_v38 = vld [vmem:[#allocation6 + $0xd80] sm:$0xf] }
 0x27d   :  { %3436 = vmatpush.bf16.msra.mxu0 %v7495_v19  ;;  %4276 = vmatpush.bf16.msra.mxu3 %v7647_v8  ;;  %v7615_v19 = vor.u32 %v9162_v17, %v7614_v14  ;;  %v9234_v8 = vld [vmem:[#allocation6 + $0xeac] sm:$0xf0] }
 0x27e   :  { %3475 = vmatpush.bf16.msrb.mxu2 %v7371_v0  ;;  %v9210_v0 = vld [vmem:[#allocation6 + $0xdec] sm:$0xf0] }
 0x27f   :  { %v7807_v54 = vor.u32 %v9210_v0, %v7806_v18  ;;  %v9230_v14 = vld [vmem:[#allocation6 + $0xe8c] sm:$0xf0]  ;;  %v7616_v0 = vld [vmem:[#allocation6 + $0xc70] sm:$0xf0] }
 0x281   :  { %3437 = vmatpush.bf16.msra.mxu0 %v7479_v25  ;;  %4277 = vmatpush.bf16.msra.mxu3 %v7631_v39  ;;  %v9206_v25 = vld [vmem:[#allocation6 + $0xdcc] sm:$0xf0] }
 0x282   :  { %3476 = vmatpush.bf16.msrb.mxu2 %v7355_v26  ;;  %v7599_v26 = vor.u32 %v9158_v23, %v7598_v22  ;;  %4287 = vmatpush.bf16.msra.mxu1 %v7807_v54  ;;  %v7791_v20 = vor.u32 %v9206_v25, %v7790_v16  ;;  %v9182_v39 = vld [vmem:[#allocation6 + $0xd0c] sm:$0xf0]  ;;  %v9208_v22 = vld [vmem:[#allocation6 + $0xde4] sm:$0xf]  ;;  %v7808_v16 = vld [vmem:[#allocation6 + $0xdf0] sm:$0xf0] }
 0x283   :  { %v7695_v17 = vor.u32 %v9182_v39, %v7694_v13  ;;  %v7811_v25 = vor.u32 %v9208_v22, %v7808_v16  ;;  %v8046_v13 = vld [vmem:[#allocation6 + $0xfc0] sm:$0xf]  ;;  %v9270_v39 = vld [vmem:[#allocation6 + $0xfcc] sm:$0xf0] }
 0x284   :  { %v9266_v16 = vld [vmem:[#allocation6 + $0xfac] sm:$0xf0] }
 0x285   :  { %3438 = vmatpush.bf16.msra.mxu0 %v7463_v15  ;;  %4278 = vmatpush.bf16.msra.mxu3 %v7615_v19  ;;  %v7583_v15 = vor.u32 %v9154_v43, %v7582_v28  ;;  %v9160_v19 = vld [vmem:[#allocation6 + $0xc64] sm:$0xf]  ;;  %v9226_v28 = vld [vmem:[#allocation6 + $0xe6c] sm:$0xf0] }
 0x286   :  { %3477 = vmatpush.bf16.msrb.mxu2 %v7339_v36  ;;  %4288 = vmatpush.bf16.msra.mxu1 %v7791_v20  ;;  %v9202_v36 = vld [vmem:[#allocation6 + $0xdac] sm:$0xf0]  ;;  %v7619_v54 = vor.u32 %v9160_v19, %v7616_v0  ;;  %v7870_v20 = vld [vmem:[#allocation6 + $0xe60] sm:$0xf]  ;;  %v9156_v43 = vld [vmem:[#allocation6 + $0xc44] sm:$0xf] }
 0x287   :  { %v7775_v29 = vor.u32 %v9202_v36, %v7774_v31  ;;  %v7871_v31 = vor.u32 %v9226_v28, %v7870_v20  ;;  %v9204_v36 = vld [vmem:[#allocation6 + $0xdc4] sm:$0xf]  ;;  %v7920_v0 = vld [vmem:[#allocation6 + $0xed0] sm:$0xf0] }
 0x288   :  { %v7712_v20 = vld [vmem:[#allocation6 + $0xd30] sm:$0xf0]  ;;  %v9232_v28 = vld [vmem:[#allocation6 + $0xea4] sm:$0xf] }
 0x289   :  { %3439 = vmatpush.bf16.msra.mxu0 %v7447_v27  ;;  %4279 = vmatpush.bf16.msra.mxu3 %v7599_v26  ;;  %v7759_v27 = vor.u32 %v9198_v40, %v7758_v38  ;;  %v7854_v38 = vld [vmem:[#allocation6 + $0xe40] sm:$0xf]  ;;  %v9222_v40 = vld [vmem:[#allocation6 + $0xe4c] sm:$0xf0] }
 0x28a   :  { %3478 = vmatpush.bf16.msrb.mxu2 %v7323_v35  ;;  %4289 = vmatpush.bf16.msra.mxu1 %v7775_v29  ;;  %v9176_v35 = vld [vmem:[#allocation6 + $0xce4] sm:$0xf]  ;;  %v7795_v29 = vor.u32 %v9204_v36, %v7792_v37 }
 0x28c   :  { %3440 = vmatmul.bf16.vlgmr.msra.gmra.mxu0 %v9905_v3 }
 0x28d   :  { %3484 = vmatpush.bf16.msrb.mxu0 %v7563_v30  ;;  %3479 = vmatmul.bf16.vlgmr.msrb.gmra.mxu2 %v9888_v21  ;;  %v7483_v21 = vor.u32 %v9125_v2, %v7480_v5  ;;  %v7680_v30 = vld [vmem:[#allocation6 + $0xcf0] sm:$0xf0] }
 0x28e   :  { %4280 = vmatpush.bf16.msra.mxu3 %v7583_v15  ;;  %4290 = vmatpush.bf16.msra.mxu1 %v7759_v27  ;;  %v7600_v15 = vld [vmem:[#allocation6 + $0xc50] sm:$0xf0]  ;;  %v9152_v27 = vld [vmem:[#allocation6 + $0xc24] sm:$0xf] }
 0x28f   :  { %v7603_v60 = vor.u32 %v9156_v43, %v7600_v15  ;;  %v7904_v15 = vld [vmem:[#allocation6 + $0xeb0] sm:$0xf0] }
 0x290   :  { %v7907_v37 = vor.u32 %v9232_v28, %v7904_v15  ;;  %v9171_v15 = vld [vmem:[#allocation6 + $0xcb4] sm:$0xf0] }
 0x291   :  { %3485 = vmatpush.bf16.msrb.mxu0 %v7547_v48  ;;  %v9194_v48 = vld [vmem:[#allocation6 + $0xd6c] sm:$0xf0] }
 0x292   :  { %4281 = vmatpush.bf16.msra.mxu3 %v7567_v46  ;;  %v7743_v42 = vor.u32 %v9194_v48, %v7742_v10  ;;  %v7855_v46 = vor.u32 %v9222_v40, %v7854_v38  ;;  %v7776_v48 = vld [vmem:[#allocation6 + $0xdb0] sm:$0xf0]  ;;  %v9262_v38 = vld [vmem:[#allocation6 + $0xf8c] sm:$0xf0] }
 0x294   :  { %4291 = vmatpush.bf16.msra.mxu1 %v7743_v42 }
 0x295   :  { %3486 = vmatpush.bf16.msrb.mxu0 %v7531_v45  ;;  %v9242_v45 = vld [vmem:[#allocation6 + $0xeec] sm:$0xf0] }
 0x298   :  { %4292 = vmatpush.bf16.msra.mxu1 %v7727_v55  ;;  %v7822_v55 = vld [vmem:[#allocation6 + $0xe00] sm:$0xf] }
 0x299   :  { %3487 = vmatpush.bf16.msrb.mxu0 %v7515_v56  ;;  %v7935_v56 = vor.u32 %v9242_v45, %v7934_v34  ;;  %v7838_v45 = vld [vmem:[#allocation6 + $0xe20] sm:$0xf] }
 0x29a   :  { %v7839_v52 = vor.u32 %v9218_v51, %v7838_v45  ;;  %v9224_v51 = vld [vmem:[#allocation6 + $0xe64] sm:$0xf] }
 0x29b   :  { %4300 = vmatpush.bf16.msra.mxu2 %v7935_v56  ;;  %v9148_v56 = vld [vmem:[#allocation6 + $0xc04] sm:$0xf] }
 0x29c   :  { %4293 = vmatpush.bf16.msra.mxu1 %v7711_v7 }
 0x29d   :  { %3488 = vmatpush.bf16.msrb.mxu0 %v7499_v24  ;;  %v7648_v24 = vld [vmem:[#allocation6 + $0xcb0] sm:$0xf0] }
 0x29e   :  { %v7651_v5 = vor.u32 %v9168_v1, %v7648_v24  ;;  %v8062_v1 = vld [vmem:[#allocation6 + $0xfe0] sm:$0xf] }
 0x29f   :  { %4301 = vmatpush.bf16.msra.mxu2 %v7919_v61  ;;  %v9214_v61 = vld [vmem:[#allocation6 + $0xe0c] sm:$0xf0] }
 0x2a0   :  { %4294 = vmatpush.bf16.msra.mxu1 %v7695_v17  ;;  %v7823_v24 = vor.u32 %v9214_v61, %v7822_v55  ;;  %v7728_v17 = vld [vmem:[#allocation6 + $0xd50] sm:$0xf0]  ;;  %v9220_v55 = vld [vmem:[#allocation6 + $0xe44] sm:$0xf] }
 0x2a1   :  { %3489 = vmatpush.bf16.msrb.mxu0 %v7483_v21  ;;  %v7856_v61 = vld [vmem:[#allocation6 + $0xe50] sm:$0xf0] }
 0x2a4   :  { %4339 = vmatpush.bf16.msrb.mxu1 %v7811_v25 }
 0x2a5   :  { %3490 = vmatpush.bf16.msrb.mxu0 %v7467_v33  ;;  %v7903_v33 = vor.u32 %v9234_v8, %v7902_v44  ;;  %v9240_v8 = vld [vmem:[#allocation6 + $0xee4] sm:$0xf] }
 0x2a7   :  { %4302 = vmatpush.bf16.msra.mxu2 %v7903_v33  ;;  %v7939_v33 = vor.u32 %v9240_v8, %v7936_v63  ;;  %v9216_v8 = vld [vmem:[#allocation6 + $0xe24] sm:$0xf]  ;;  %v7840_v63 = vld [vmem:[#allocation6 + $0xe30] sm:$0xf0] }
 0x2a8   :  { %4340 = vmatpush.bf16.msrb.mxu1 %v7795_v29  ;;  %v8014_v29 = vld [vmem:[#allocation6 + $0xf80] sm:$0xf] }
 0x2a9   :  { %3491 = vmatpush.bf16.msrb.mxu0 %v7451_v59  ;;  %v7886_v59 = vld [vmem:[#allocation6 + $0xe80] sm:$0xf]  ;;  %v8015_v40 = vor.u32 %v9262_v38, %v8014_v29 }
 0x2aa   :  { %v7887_v18 = vor.u32 %v9230_v14, %v7886_v59  ;;  %v8047_v59 = vor.u32 %v9270_v39, %v8046_v13  ;;  %v9188_v14 = vld [vmem:[#allocation6 + $0xd44] sm:$0xf]  ;;  %v7686_v13 = vld [vmem:[#allocation6 + $0xce8] sm:$0xf]  ;;  %v9179_v39 = vld [vmem:[#allocation6 + $0xcf4] sm:$0xf0] }
 0x2ab   :  { %v7731_v19 = vor.u32 %v9188_v14, %v7728_v17 }
 0x2ac   :  { %3492 = vmatmul.bf16.vlgmr.msrb.gmra.mxu0 %v9905_v3  ;;  %v7683_v3 = vor.u32 %v9176_v35, %v7680_v30  ;;  %4303 = vmatpush.bf16.msra.mxu2 %v7887_v18  ;;  %v7584_v35 = vld [vmem:[#allocation6 + $0xc30] sm:$0xf0]  ;;  %v9200_v30 = vld [vmem:[#allocation6 + $0xda4] sm:$0xf] }
 0x2ad   :  { %v7587_v10 = vor.u32 %v9152_v27, %v7584_v35  ;;  %v7779_v34 = vor.u32 %v9200_v30, %v7776_v48  ;;  %v9236_v18 = vld [vmem:[#allocation6 + $0xec4] sm:$0xf]  ;;  %v7696_v27 = vld [vmem:[#allocation6 + $0xd10] sm:$0xf0]  ;;  %v7998_v48 = vld [vmem:[#allocation6 + $0xf60] sm:$0xf] }
 0x2ae   :  { %4326 = vmatpush.bf16.msrb.mxu3 %v7683_v3  ;;  %v7923_v22 = vor.u32 %v9236_v18, %v7920_v0  ;;  %v9228_v35 = vld [vmem:[#allocation6 + $0xe84] sm:$0xf] }
 0x2af   :  { %v9915_v41 = vpop.f32.mrf.mxu3  ;;  %4341 = vmatpush.bf16.msrb.mxu1 %v7779_v34  ;;  %v9258_v34 = vld [vmem:[#allocation6 + $0xf6c] sm:$0xf0]  ;;  %v9212_v18 = vld [vmem:[#allocation6 + $0xe04] sm:$0xf] }
 0x2b0   :  { %4304 = vmatpush.bf16.msra.mxu2 %v7871_v31  ;;  %v7999_v45 = vor.u32 %v9258_v34, %v7998_v48  ;;  %v9272_v0 = vld [vmem:[#allocation6 + $0xfe4] sm:$0xf] }
 0x2b2   :  { %4327 = vmatpush.bf16.msrb.mxu3 %v7667_v62  ;;  %v7568_v62 = vld [vmem:[#allocation6 + $0xc10] sm:$0xf0] }
 0x2b3   :  { %v7571_v57 = vor.u32 %v9148_v56, %v7568_v62  ;;  %4342 = vmatpush.bf16.msrb.mxu1 %v7763_v9 }
 0x2b4   :  { %4305 = vmatpush.bf16.msra.mxu2 %v7855_v46  ;;  %v9180_v46 = vld [vmem:[#allocation6 + $0xd04] sm:$0xf] }
 0x2b5   :  { %v7699_v30 = vor.u32 %v9180_v46, %v7696_v27  ;;  %v7638_v46 = vld [vmem:[#allocation6 + $0xc88] sm:$0xf] }
 0x2b6   :  { %4328 = vmatpush.bf16.msrb.mxu3 %v7651_v5  ;;  %v9192_v5 = vld [vmem:[#allocation6 + $0xd64] sm:$0xf] }
 0x2b7   :  { %v3300_v2 = vpop.f32.mrf.mxu3  ;;  %v7747_v7 = vor.u32 %v9192_v5, %v7744_v53  ;;  %v7966_v5 = vld [vmem:[#allocation6 + $0xf20] sm:$0xf]  ;;  %v9250_v53 = vld [vmem:[#allocation6 + $0xf2c] sm:$0xf0] }
 0x2b8   :  { %4306 = vmatpush.bf16.msra.mxu2 %v7839_v52  ;;  %v9274_v2 = vld [vmem:[#allocation6 + $0xfec] sm:$0xf0]  ;;  %v7872_v52 = vld [vmem:[#allocation6 + $0xe70] sm:$0xf0] }
 0x2b9   :  { %v9917_v21 = vpop.f32.mrf.mxu1  ;;  %v8063_v44 = vor.u32 %v9274_v2, %v8062_v1  ;;  %4343 = vmatpush.bf16.msrb.mxu1 %v7747_v7  ;;  %v7875_v62 = vor.u32 %v9224_v51, %v7872_v52  ;;  %v7967_v7 = vor.u32 %v9250_v53, %v7966_v5  ;;  %v7622_v52 = vld [vmem:[#allocation6 + $0xc68] sm:$0xf]  ;;  %v9159_v5 = vld [vmem:[#allocation6 + $0xc54] sm:$0xf0] }
 0x2ba   :  { %4329 = vmatpush.bf16.msrb.mxu3 %v7635_v11  ;;  %v3312_v1 = vadd.f32 %v9917_v21, %v9915_v41  ;;  %v7950_v41 = vld [vmem:[#allocation6 + $0xf00] sm:$0xf]  ;;  %v9246_v21 = vld [vmem:[#allocation6 + $0xf0c] sm:$0xf0]  ;;  %v7798_v53 = vld [vmem:[#allocation6 + $0xdc8] sm:$0xf] }
 0x2bb   :  { %4313 = vmatpush.bf16.msra.mxu0 %v8063_v44  ;;  %v7951_v17 = vor.u32 %v9246_v21, %v7950_v41  ;;  %v7782_v41 = vld [vmem:[#allocation6 + $0xda8] sm:$0xf] }
 0x2bc   :  { %4307 = vmatpush.bf16.msra.mxu2 %v7823_v24  ;;  %v7859_v24 = vor.u32 %v9220_v55, %v7856_v61 }
 0x2bd   :  { %4344 = vmatpush.bf16.msrb.mxu1 %v7731_v19  ;;  %v7824_v19 = vld [vmem:[#allocation6 + $0xe10] sm:$0xf0] }
 0x2be   :  { %4330 = vmatpush.bf16.msrb.mxu3 %v7619_v54  ;;  %v8030_v54 = vld [vmem:[#allocation6 + $0xfa0] sm:$0xf] }
 0x2bf   :  { %v9919_v23 = vpop.f32.mrf.mxu3  ;;  %4314 = vmatpush.bf16.msra.mxu0 %v8047_v59  ;;  %v8031_v25 = vor.u32 %v9266_v16, %v8030_v54  ;;  %v7843_v59 = vor.u32 %v9216_v8, %v7840_v63  ;;  %v7670_v54 = vld [vmem:[#allocation6 + $0xcc8] sm:$0xf]  ;;  %v9175_v16 = vld [vmem:[#allocation6 + $0xcd4] sm:$0xf0]  ;;  %v9256_v8 = vld [vmem:[#allocation6 + $0xf64] sm:$0xf] }
 0x2c0   :  { %4352 = vmatpush.bf16.msrb.mxu2 %v7939_v33  ;;  %v8000_v63 = vld [vmem:[#allocation6 + $0xf70] sm:$0xf0] }
 0x2c1   :  { %v3313_v26 = vpop.f32.mrf.mxu1 }
 0x2c2   :  { %4331 = vmatpush.bf16.msrb.mxu3 %v7603_v60  ;;  %v9184_v26 = vld [vmem:[#allocation6 + $0xd24] sm:$0xf] }
 0x2c3   :  { %v7715_v31 = vor.u32 %v9184_v26, %v7712_v20  ;;  %4315 = vmatpush.bf16.msra.mxu0 %v8031_v25  ;;  %v7827_v25 = vor.u32 %v9212_v18, %v7824_v19  ;;  %v8064_v26 = vld [vmem:[#allocation6 + $0xff0] sm:$0xf0] }
 0x2c4   :  { %4353 = vmatpush.bf16.msrb.mxu2 %v7923_v22  ;;  %v7984_v18 = vld [vmem:[#allocation6 + $0xf50] sm:$0xf0] }
 0x2c5   :  { %4345 = vmatpush.bf16.msrb.mxu1 %v7715_v31  ;;  %v7654_v31 = vld [vmem:[#allocation6 + $0xca8] sm:$0xf] }
 0x2c6   :  { %4332 = vmatpush.bf16.msrb.mxu3 %v7587_v10 }
 0x2c7   :  { %v3352_v3 = vpop.f32.mrf.mxu3  ;;  %4316 = vmatpush.bf16.msra.mxu0 %v8015_v40  ;;  %v7655_v40 = vor.u32 %v9171_v15, %v7654_v31  ;;  %v7968_v31 = vld [vmem:[#allocation6 + $0xf30] sm:$0xf0]  ;;  %v9177_v15 = vld [vmem:[#allocation6 + $0xcec] sm:$0xf] }
 0x2c8   :  { %4354 = vmatpush.bf16.msrb.mxu2 %v7907_v37  ;;  %v7888_v3 = vld [vmem:[#allocation6 + $0xe90] sm:$0xf0] }
 0x2c9   :  { %v9921_v42 = vpop.f32.mrf.mxu1  ;;  %v7891_v10 = vor.u32 %v9228_v35, %v7888_v3  ;;  %4346 = vmatpush.bf16.msrb.mxu1 %v7699_v30  ;;  %v8048_v37 = vld [vmem:[#allocation6 + $0xfd0] sm:$0xf0]  ;;  %v9167_v35 = vld [vmem:[#allocation6 + $0xc94] sm:$0xf0]  ;;  %v9264_v30 = vld [vmem:[#allocation6 + $0xfa4] sm:$0xf] }
 0x2ca   :  { %4333 = vmatpush.bf16.msrb.mxu3 %v7571_v57  ;;  %v7982_v57 = vld [vmem:[#allocation6 + $0xf40] sm:$0xf]  ;;  %v3364_v27 = vadd.f32 %v9921_v42, %v9919_v23  ;;  %v8032_v3 = vld [vmem:[#allocation6 + $0xfb0] sm:$0xf0]  ;;  %v7639_v51 = vor.u32 %v9167_v35, %v7638_v46  ;;  %v9260_v23 = vld [vmem:[#allocation6 + $0xf84] sm:$0xf] }
 0x2cb   :  { %4317 = vmatpush.bf16.msra.mxu0 %v7999_v45  ;;  %v7983_v9 = vor.u32 %v9254_v58, %v7982_v57  ;;  %v8035_v48 = vor.u32 %v9264_v30, %v8032_v3  ;;  %v8016_v42 = vld [vmem:[#allocation6 + $0xf90] sm:$0xf0]  ;;  %v7750_v35 = vld [vmem:[#allocation6 + $0xd68] sm:$0xf]  ;;  %v9195_v30 = vld [vmem:[#allocation6 + $0xd74] sm:$0xf0] }
 0x2cc   :  { %4355 = vmatpush.bf16.msrb.mxu2 %v7891_v10  ;;  %v8019_v61 = vor.u32 %v9260_v23, %v8016_v42  ;;  %v7734_v23 = vld [vmem:[#allocation6 + $0xd48] sm:$0xf]  ;;  %v9191_v42 = vld [vmem:[#allocation6 + $0xd54] sm:$0xf0] }
 0x2cf   :  { %v9923_v6 = vpop.f32.mrf.mxu2  ;;  %4318 = vmatpush.bf16.msra.mxu0 %v7983_v9  ;;  %v9211_v9 = vld [vmem:[#allocation6 + $0xdf4] sm:$0xf0] }
 0x2d0   :  { %4356 = vmatpush.bf16.msrb.mxu2 %v7875_v62  ;;  %v3325_v2 = vadd.f32 %v9923_v6, %v3312_v1  ;;  %v7687_v6 = vor.u32 %v9179_v39, %v7686_v13  ;;  %v9163_v62 = vld [vmem:[#allocation6 + $0xc74] sm:$0xf0]  ;;  %v7590_v39 = vld [vmem:[#allocation6 + $0xc28] sm:$0xf] }
 0x2d1   :  { %v9925_v4 = vpop.f32.mrf.mxu3  ;;  %v3365_v11 = vpop.f32.mrf.mxu1 }
 0x2d3   :  { %4319 = vmatpush.bf16.msra.mxu0 %v7967_v7  ;;  %v9207_v7 = vld [vmem:[#allocation6 + $0xdd4] sm:$0xf0] }
 0x2d4   :  { %4357 = vmatpush.bf16.msrb.mxu2 %v7859_v24  ;;  %v7799_v13 = vor.u32 %v9207_v7, %v7798_v53 }
 0x2d7   :  { %v3326_v43 = vpop.f32.mrf.mxu2  ;;  %4320 = vmatpush.bf16.msra.mxu0 %v7951_v17  ;;  %v9252_v17 = vld [vmem:[#allocation6 + $0xf44] sm:$0xf] }
 0x2d8   :  { %4358 = vmatpush.bf16.msrb.mxu2 %v7843_v59  ;;  %v7671_v43 = vor.u32 %v9175_v16, %v7670_v54  ;;  %v9155_v59 = vld [vmem:[#allocation6 + $0xc34] sm:$0xf0]  ;;  %v7987_v19 = vor.u32 %v9252_v17, %v7984_v18  ;;  %v7574_v16 = vld [vmem:[#allocation6 + $0xc08] sm:$0xf] }
 0x2d9   :  { %v3404_v36 = vpop.f32.mrf.mxu3  ;;  %v9927_v60 = vpop.f32.mrf.mxu1  ;;  %v7894_v17 = vld [vmem:[#allocation6 + $0xe88] sm:$0xf]  ;;  %v9231_v18 = vld [vmem:[#allocation6 + $0xe94] sm:$0xf0] }
 0x2da   :  { %v9268_v36 = vld [vmem:[#allocation6 + $0xfc4] sm:$0xf] }
 0x2db   :  { %v8051_v38 = vor.u32 %v9268_v36, %v8048_v37  ;;  %v7688_v36 = vld [vmem:[#allocation6 + $0xcf8] sm:$0xf0] }
 0x2dc   :  { %4359 = vmatpush.bf16.msrb.mxu2 %v7827_v25  ;;  %v9151_v25 = vld [vmem:[#allocation6 + $0xc14] sm:$0xf0] }
 0x2dd   :  { %v7575_v46 = vor.u32 %v9151_v25, %v7574_v16  ;;  %v9209_v16 = vld [vmem:[#allocation6 + $0xdec] sm:$0xf]  ;;  %v7816_v25 = vld [vmem:[#allocation6 + $0xdf8] sm:$0xf0] }
 0x2df   :  { %v9929_v56 = vpop.f32.mrf.mxu2 }
 0x2e0   :  { %v3377_v34 = vadd.f32 %v9929_v56, %v3364_v27  ;;  %v7623_v56 = vor.u32 %v9163_v62, %v7622_v52 }
 0x2e1   :  { %v3417_v12 = vpop.f32.mrf.mxu1 }
 0x2e2   :  { %v7814_v12 = vld [vmem:[#allocation6 + $0xde8] sm:$0xf] }
 0x2e3   :  { %v7815_v24 = vor.u32 %v9211_v9, %v7814_v12 }
 0x2e7   :  { %v3378_v11 = vpop.f32.mrf.mxu2 }
 0x2e9   :  { %v3337_v44 = vpop.f32.mrf.mxu0 }
 0x2ea   :  { %v3338_v33 = vadd.f32 %v3337_v44, %v3325_v2  ;;  %v7606_v2 = vld [vmem:[#allocation6 + $0xc48] sm:$0xf] }
 0x2eb   :  { %v7607_v11 = vor.u32 %v9159_v5, %v7606_v2  ;;  %v7735_v5 = vor.u32 %v9191_v42, %v7734_v23  ;;  %v7576_v23 = vld [vmem:[#allocation6 + $0xc18] sm:$0xf0]  ;;  %v9197_v42 = vld [vmem:[#allocation6 + $0xd8c] sm:$0xf] }
 0x2ec   :  { %v9935_v14 = vadd.f32 %v3338_v33, %v9855_v49  ;;  %v8067_v49 = vor.u32 %v9272_v0, %v8064_v26  ;;  %v8003_v33 = vor.u32 %v9256_v8, %v8000_v63  ;;  %v7591_v0 = vor.u32 %v9155_v59, %v7590_v39  ;;  %v7766_v26 = vld [vmem:[#allocation6 + $0xd88] sm:$0xf]  ;;  %v9187_v63 = vld [vmem:[#allocation6 + $0xd34] sm:$0xf0] }
 0x2ed   :  { %v7718_v8 = vld [vmem:[#allocation6 + $0xd28] sm:$0xf] }
 0x2ee   :  { %v9939_v22 = vpack.c.bf16 %v9935_v14, %v9935_v14  ;;  %4365 = vmatpush.bf16.msrb.mxu0 %v8067_v49  ;;  %v3416_v49 = vadd.f32 %v9927_v60, %v9925_v4  ;;  %v9244_v4 = vld [vmem:[#allocation6 + $0xf04] sm:$0xf]  ;;  %v7952_v60 = vld [vmem:[#allocation6 + $0xf10] sm:$0xf0]  ;;  %v7719_v39 = vor.u32 %v9187_v63, %v7718_v8  ;;  %v9193_v63 = vld [vmem:[#allocation6 + $0xd6c] sm:$0xf] }
 0x2ef   :  { %v9941_v20 = vpop.f32.mrf.mxu3  ;;  %v7955_v52 = vor.u32 %v9244_v4, %v7952_v60  ;;  %v9201_v4 = vld [vmem:[#allocation6 + $0xdac] sm:$0xf]  ;;  %v7784_v60 = vld [vmem:[#allocation6 + $0xdb8] sm:$0xf0] }
 0x2f0   :  { %4282 = vmatmul.bf16.vlgmr.msra.gmra.mxu3 %v9939_v22 }
 0x2f1   :  { %4378 = vmatpush.bf16.msra.mxu3 %v7687_v6  ;;  %v3339_v28 = vpop.f32.mrf.mxu0  ;;  %v9203_v6 = vld [vmem:[#allocation6 + $0xdb4] sm:$0xf0] }
 0x2f2   :  { %v9944_v29 = vpop.f32.mrf.mxu2  ;;  %4366 = vmatpush.bf16.msrb.mxu0 %v8051_v38  ;;  %v7783_v54 = vor.u32 %v9203_v6, %v7782_v41  ;;  %v9199_v28 = vld [vmem:[#allocation6 + $0xd94] sm:$0xf0] }
 0x2f3   :  { %v3429_v38 = vadd.f32 %v9944_v29, %v3416_v49  ;;  %v7767_v27 = vor.u32 %v9199_v28, %v7766_v26  ;;  %v7751_v29 = vor.u32 %v9195_v30, %v7750_v35  ;;  %v9183_v6 = vld [vmem:[#allocation6 + $0xd14] sm:$0xf0]  ;;  %v7895_v49 = vor.u32 %v9231_v18, %v7894_v17  ;;  %v7862_v35 = vld [vmem:[#allocation6 + $0xe48] sm:$0xf]  ;;  %v9189_v18 = vld [vmem:[#allocation6 + $0xd4c] sm:$0xf] }
 0x2f4   :  { %v9271_v17 = vld [vmem:[#allocation6 + $0xfd4] sm:$0xf0] }
 0x2f5   :  { %4379 = vmatpush.bf16.msra.mxu3 %v7671_v43  ;;  %v9248_v43 = vld [vmem:[#allocation6 + $0xf24] sm:$0xf] }
 0x2f6   :  { %4367 = vmatpush.bf16.msrb.mxu0 %v8035_v48  ;;  %v7971_v37 = vor.u32 %v9248_v43, %v7968_v31  ;;  %v7942_v48 = vld [vmem:[#allocation6 + $0xee8] sm:$0xf]  ;;  %v7819_v31 = vor.u32 %v9209_v16, %v7816_v25 }
 0x2f7   :  { %v3456_v10 = vpop.f32.mrf.mxu3  ;;  %v7878_v43 = vld [vmem:[#allocation6 + $0xe68] sm:$0xf] }
 0x2f8   :  { %v7691_v10 = vor.u32 %v9177_v15, %v7688_v36  ;;  %v9227_v15 = vld [vmem:[#allocation6 + $0xe74] sm:$0xf0]  ;;  %v9157_v36 = vld [vmem:[#allocation6 + $0xc4c] sm:$0xf] }
 0x2f9   :  { %4380 = vmatpush.bf16.msra.mxu3 %v7655_v40  ;;  %v3389_v45 = vpop.f32.mrf.mxu0  ;;  %v9949_v58 = vpop.f32.mrf.mxu1 }
 0x2fa   :  { %v3390_v57 = vadd.f32 %v3389_v45, %v3377_v34  ;;  %v3430_v55 = vpop.f32.mrf.mxu2  ;;  %4368 = vmatpush.bf16.msrb.mxu0 %v8019_v61  ;;  %v9243_v34 = vld [vmem:[#allocation6 + $0xef4] sm:$0xf0]  ;;  %v9173_v45 = vld [vmem:[#allocation6 + $0xccc] sm:$0xf] }
 0x2fb   :  { %v7926_v55 = vld [vmem:[#allocation6 + $0xec8] sm:$0xf]  ;;  %v9239_v61 = vld [vmem:[#allocation6 + $0xed4] sm:$0xf0] }
 0x2fc   :  { %v9952_v1 = vadd.f32 %v3390_v57, %v9872_v47  ;;  %v7943_v57 = vor.u32 %v9243_v34, %v7942_v48  ;;  %v7927_v53 = vor.u32 %v9239_v61, %v7926_v55  ;;  %v7592_v48 = vld [vmem:[#allocation6 + $0xc38] sm:$0xf0] }
 0x2fd   :  { %4381 = vmatpush.bf16.msra.mxu3 %v7639_v51  ;;  %v7672_v51 = vld [vmem:[#allocation6 + $0xcd8] sm:$0xf0] }
 0x2fe   :  { %v9956_v44 = vpack.c.bf16 %v9952_v1, %v9952_v1  ;;  %4369 = vmatpush.bf16.msrb.mxu0 %v8003_v33  ;;  %v7675_v9 = vor.u32 %v9173_v45, %v7672_v51  ;;  %v7910_v33 = vld [vmem:[#allocation6 + $0xea8] sm:$0xf]  ;;  %v7768_v55 = vld [vmem:[#allocation6 + $0xd98] sm:$0xf0] }
 0x2ff   :  { %v7846_v51 = vld [vmem:[#allocation6 + $0xe28] sm:$0xf]  ;;  %v7771_v8 = vor.u32 %v9197_v42, %v7768_v55  ;;  %v7864_v42 = vld [vmem:[#allocation6 + $0xe58] sm:$0xf0] }
 0x300   :  { %4295 = vmatmul.bf16.vlgmr.msra.gmra.mxu1 %v9956_v44  ;;  %4334 = vmatmul.bf16.vlgmr.msrb.gmra.mxu3 %v9939_v22 }
 0x301   :  { %4382 = vmatpush.bf16.msra.mxu3 %v7623_v56  ;;  %4391 = vmatpush.bf16.msra.mxu1 %v7815_v24  ;;  %v3391_v47 = vpop.f32.mrf.mxu0  ;;  %v3469_v21 = vpop.f32.mrf.mxu1  ;;  %v9169_v56 = vld [vmem:[#allocation6 + $0xcac] sm:$0xf]  ;;  %v7656_v24 = vld [vmem:[#allocation6 + $0xcb8] sm:$0xf0] }
 0x302   :  { %4370 = vmatpush.bf16.msrb.mxu0 %v7987_v19  ;;  %v7659_v7 = vor.u32 %v9169_v56, %v7656_v24  ;;  %v9235_v47 = vld [vmem:[#allocation6 + $0xeb4] sm:$0xf0]  ;;  %v7702_v21 = vld [vmem:[#allocation6 + $0xd08] sm:$0xf]  ;;  %v9161_v19 = vld [vmem:[#allocation6 + $0xc6c] sm:$0xf] }
 0x303   :  { %v7911_v59 = vor.u32 %v9235_v47, %v7910_v33  ;;  %v7703_v26 = vor.u32 %v9183_v6, %v7702_v21  ;;  %v7752_v33 = vld [vmem:[#allocation6 + $0xd78] sm:$0xf0]  ;;  %v9241_v47 = vld [vmem:[#allocation6 + $0xeec] sm:$0xf]  ;;  %v8054_v6 = vld [vmem:[#allocation6 + $0xfc8] sm:$0xf] }
 0x304   :  { %v8055_v16 = vor.u32 %v9271_v17, %v8054_v6  ;;  %v9265_v6 = vld [vmem:[#allocation6 + $0xfac] sm:$0xf]  ;;  %v8040_v17 = vld [vmem:[#allocation6 + $0xfb8] sm:$0xf0] }
 0x305   :  { %4383 = vmatpush.bf16.msra.mxu3 %v7607_v11  ;;  %4392 = vmatpush.bf16.msra.mxu1 %v7799_v13  ;;  %v9165_v11 = vld [vmem:[#allocation6 + $0xc8c] sm:$0xf]  ;;  %v7640_v13 = vld [vmem:[#allocation6 + $0xc98] sm:$0xf0] }
 0x306   :  { %4371 = vmatpush.bf16.msrb.mxu0 %v7971_v37  ;;  %v7643_v41 = vor.u32 %v9165_v11, %v7640_v13  ;;  %v7608_v37 = vld [vmem:[#allocation6 + $0xc58] sm:$0xf0] }
 0x307   :  { %v7944_v11 = vld [vmem:[#allocation6 + $0xef8] sm:$0xf0] }
 0x308   :  { %v7947_v21 = vor.u32 %v9241_v47, %v7944_v11  ;;  %v8072_v47 = vld [vmem:[#allocation6 + $0xff8] sm:$0xf0] }
 0x309   :  { %4384 = vmatpush.bf16.msra.mxu3 %v7591_v0  ;;  %4393 = vmatpush.bf16.msra.mxu1 %v7783_v54  ;;  %v3441_v40 = vpop.f32.mrf.mxu0  ;;  %v7624_v0 = vld [vmem:[#allocation6 + $0xc78] sm:$0xf0] }
 0x30a   :  { %v3442_v3 = vadd.f32 %v3441_v40, %v3429_v38  ;;  %4372 = vmatpush.bf16.msrb.mxu0 %v7955_v52  ;;  %v7627_v28 = vor.u32 %v9161_v19, %v7624_v0  ;;  %v9205_v38 = vld [vmem:[#allocation6 + $0xdcc] sm:$0xf]  ;;  %v7800_v40 = vld [vmem:[#allocation6 + $0xdd8] sm:$0xf0]  ;;  %v3468_v52 = vadd.f32 %v9949_v58, %v9941_v20  ;;  %v8070_v20 = vld [vmem:[#allocation6 + $0xfe8] sm:$0xf] }
 0x30b   :  { %v7803_v30 = vor.u32 %v9205_v38, %v7800_v40  ;;  %v9275_v58 = vld [vmem:[#allocation6 + $0xff4] sm:$0xf0]  ;;  %v7736_v19 = vld [vmem:[#allocation6 + $0xd58] sm:$0xf0]  ;;  %v9237_v0 = vld [vmem:[#allocation6 + $0xecc] sm:$0xf] }
 0x30c   :  { %v9964_v62 = vadd.f32 %v3442_v3, %v9884_v50  ;;  %v9223_v3 = vld [vmem:[#allocation6 + $0xe54] sm:$0xf0]  ;;  %v7739_v25 = vor.u32 %v9189_v18, %v7736_v19  ;;  %v8022_v40 = vld [vmem:[#allocation6 + $0xf88] sm:$0xf]  ;;  %v8043_v18 = vor.u32 %v9265_v6, %v8040_v17  ;;  %v9261_v19 = vld [vmem:[#allocation6 + $0xf8c] sm:$0xf] }
 0x30d   :  { %4385 = vmatpush.bf16.msra.mxu3 %v7575_v46  ;;  %4394 = vmatpush.bf16.msra.mxu1 %v7767_v27  ;;  %v7879_v46 = vor.u32 %v9227_v15, %v7878_v43  ;;  %v7611_v27 = vor.u32 %v9157_v36, %v7608_v37  ;;  %v7863_v34 = vor.u32 %v9223_v3, %v7862_v35  ;;  %v9185_v43 = vld [vmem:[#allocation6 + $0xd2c] sm:$0xf]  ;;  %v7912_v36 = vld [vmem:[#allocation6 + $0xeb8] sm:$0xf0] }
 0x30e   :  { %v9968_v12 = vpack.c.bf16 %v9964_v62, %v9964_v62  ;;  %v9233_v15 = vld [vmem:[#allocation6 + $0xeac] sm:$0xf]  ;;  %v7704_v35 = vld [vmem:[#allocation6 + $0xd18] sm:$0xf0] }
 0x30f   :  { %v7915_v38 = vor.u32 %v9233_v15, %v7912_v36  ;;  %v7896_v3 = vld [vmem:[#allocation6 + $0xe98] sm:$0xf0]  ;;  %v9249_v15 = vld [vmem:[#allocation6 + $0xf2c] sm:$0xf] }
 0x310   :  { %v9970_v2 = vpop.f32.mrf.mxu2  ;;  %4308 = vmatmul.bf16.vlgmr.msra.gmra.mxu2 %v9968_v12  ;;  %4347 = vmatmul.bf16.vlgmr.msrb.gmra.mxu1 %v9956_v44  ;;  %v9281_v36 = vld [vmem:[#allocation7 + $0x28] sm:$0xff]  ;;  %v9295_v17 = vld [vmem:[#allocation7 + $0x98] sm:$0xff] }
 0x311   :  { %4430 = vmatpush.bf16.msrb.mxu3 %v7691_v10  ;;  %4395 = vmatpush.bf16.msra.mxu1 %v7751_v29  ;;  %v3443_v50 = vpop.f32.mrf.mxu0  ;;  %v9153_v10 = vld [vmem:[#allocation6 + $0xc2c] sm:$0xf]  ;;  %v7787_v29 = vor.u32 %v9201_v4, %v7784_v60  ;;  %v3481_v61 = vadd.f32 %v9970_v2, %v3468_v52  ;;  %v8006_v60 = vld [vmem:[#allocation6 + $0xf68] sm:$0xf] }
 0x312   :  { %4386 = vmatmul.bf16.vlgmr.msra.gmra.mxu3 %v9939_v22  ;;  %4404 = vmatpush.bf16.msra.mxu2 %v7943_v57  ;;  %v7595_v45 = vor.u32 %v9153_v10, %v7592_v48  ;;  %v9219_v57 = vld [vmem:[#allocation6 + $0xe34] sm:$0xf0] }
 0x313   :  { %v7847_v24 = vor.u32 %v9219_v57, %v7846_v51  ;;  %v7880_v51 = vld [vmem:[#allocation6 + $0xe78] sm:$0xf0]  ;;  %v7990_v57 = vld [vmem:[#allocation6 + $0xf48] sm:$0xf] }
 0x315   :  { %4431 = vmatpush.bf16.msrb.mxu3 %v7675_v9  ;;  %4396 = vmatpush.bf16.msra.mxu1 %v7735_v5  ;;  %v9149_v9 = vld [vmem:[#allocation6 + $0xc0c] sm:$0xf]  ;;  %v7830_v5 = vld [vmem:[#allocation6 + $0xe08] sm:$0xf] }
 0x316   :  { %4405 = vmatpush.bf16.msra.mxu2 %v7927_v53  ;;  %v7579_v50 = vor.u32 %v9149_v9, %v7576_v23  ;;  %v9215_v53 = vld [vmem:[#allocation6 + $0xe14] sm:$0xf0]  ;;  %v9221_v23 = vld [vmem:[#allocation6 + $0xe4c] sm:$0xf] }
 0x317   :  { %v7831_v2 = vor.u32 %v9215_v53, %v7830_v5  ;;  %v9255_v9 = vld [vmem:[#allocation6 + $0xf54] sm:$0xf0]  ;;  %v7848_v5 = vld [vmem:[#allocation6 + $0xe38] sm:$0xf0] }
 0x318   :  { %v3482_v54 = vpop.f32.mrf.mxu2  ;;  %v7991_v55 = vor.u32 %v9255_v9, %v7990_v57  ;;  %v9299_v57 = vld [vmem:[#allocation7 + $0xb8] sm:$0xff]  ;;  %v8302_v9 = vld [vmem:[#allocation10 + $0xc0] sm:$0xf] }
 0x319   :  { %4432 = vmatpush.bf16.msrb.mxu3 %v7659_v7  ;;  %4397 = vmatpush.bf16.msra.mxu1 %v7719_v39  ;;  %v8071_v39 = vor.u32 %v9275_v58, %v8070_v20  ;;  %v7928_v54 = vld [vmem:[#allocation6 + $0xed8] sm:$0xf0]  ;;  %v9247_v20 = vld [vmem:[#allocation6 + $0xf14] sm:$0xf0]  ;;  %v9213_v58 = vld [vmem:[#allocation6 + $0xe0c] sm:$0xf] }
 0x31a   :  { %4406 = vmatpush.bf16.msra.mxu2 %v7911_v59 }
 0x31d   :  { %4433 = vmatpush.bf16.msrb.mxu3 %v7643_v41  ;;  %4398 = vmatpush.bf16.msra.mxu1 %v7703_v26  ;;  %v7755_v41 = vor.u32 %v9193_v63, %v7752_v33  ;;  %v7931_v26 = vor.u32 %v9237_v0, %v7928_v54  ;;  %v7832_v63 = vld [vmem:[#allocation6 + $0xe18] sm:$0xf0]  ;;  %v9273_v33 = vld [vmem:[#allocation6 + $0xfec] sm:$0xf] }
 0x31e   :  { %4407 = vmatpush.bf16.msra.mxu2 %v7895_v49  ;;  %v8038_v49 = vld [vmem:[#allocation6 + $0xfa8] sm:$0xf]  ;;  %v8024_v0 = vld [vmem:[#allocation6 + $0xf98] sm:$0xf0] }
 0x31f   :  { %v8027_v54 = vor.u32 %v9261_v19, %v8024_v0  ;;  %v9318_v19 = vld [vmem:[#allocation10 + $0x4c] sm:$0xf0] }
 0x320   :  { %4360 = vmatmul.bf16.vlgmr.msrb.gmra.mxu2 %v9968_v12  ;;  %4399 = vmatmul.bf16.vlgmr.msra.gmra.mxu1 %v9956_v44 }
 0x321   :  { %4434 = vmatpush.bf16.msrb.mxu3 %v7627_v28  ;;  %4443 = vmatpush.bf16.msrb.mxu1 %v7819_v31  ;;  %v9267_v28 = vld [vmem:[#allocation6 + $0xfb4] sm:$0xf0]  ;;  %v7720_v31 = vld [vmem:[#allocation6 + $0xd38] sm:$0xf0] }
 0x322   :  { %4408 = vmatpush.bf16.msra.mxu2 %v7879_v46  ;;  %v8039_v37 = vor.u32 %v9267_v28, %v8038_v49  ;;  %v9263_v46 = vld [vmem:[#allocation6 + $0xf94] sm:$0xf0]  ;;  %v9253_v28 = vld [vmem:[#allocation6 + $0xf4c] sm:$0xf] }
 0x323   :  { %v8023_v10 = vor.u32 %v9263_v46, %v8022_v40  ;;  %v9280_v40 = vld [vmem:[#allocation7 + $0x20] sm:$0xff] }
 0x325   :  { %4435 = vmatpush.bf16.msrb.mxu3 %v7611_v27  ;;  %4444 = vmatpush.bf16.msrb.mxu1 %v7803_v30  ;;  %v9181_v27 = vld [vmem:[#allocation6 + $0xd0c] sm:$0xf] }
 0x326   :  { %4409 = vmatpush.bf16.msra.mxu2 %v7863_v34  ;;  %v9229_v30 = vld [vmem:[#allocation6 + $0xe8c] sm:$0xf]  ;;  %v7707_v48 = vor.u32 %v9181_v27, %v7704_v35  ;;  %v9259_v34 = vld [vmem:[#allocation6 + $0xf74] sm:$0xf0] }
 0x327   :  { %v7899_v4 = vor.u32 %v9229_v30, %v7896_v3  ;;  %v8007_v52 = vor.u32 %v9259_v34, %v8006_v60  ;;  %v9279_v27 = vld [vmem:[#allocation7 + $0x18] sm:$0xff]  ;;  %v9290_v30 = vld [vmem:[#allocation7 + $0x70] sm:$0xff]  ;;  %v9288_v60 = vld [vmem:[#allocation7 + $0x60] sm:$0xff] }
 0x328   :  { %v9291_v35 = vld [vmem:[#allocation7 + $0x78] sm:$0xff]  ;;  %v9278_v3 = vld [vmem:[#allocation7 + $0x10] sm:$0xff]  ;;  %v8318_v34 = vld [vmem:[#allocation10 + $0xe0] sm:$0xf] }
 0x329   :  { %v3493_v56 = vpop.f32.mrf.mxu0  ;;  %4436 = vmatpush.bf16.msrb.mxu3 %v7595_v45  ;;  %4445 = vmatpush.bf16.msrb.mxu1 %v7787_v29  ;;  %v9225_v45 = vld [vmem:[#allocation6 + $0xe6c] sm:$0xf] }
 0x32a   :  { %v3494_v7 = vadd.f32 %v3493_v56, %v3481_v61  ;;  %4410 = vmatpush.bf16.msra.mxu2 %v7847_v24  ;;  %v7883_v29 = vor.u32 %v9225_v45, %v7880_v51  ;;  %v7867_v61 = vor.u32 %v9221_v23, %v7864_v42  ;;  %v7974_v56 = vld [vmem:[#allocation6 + $0xf28] sm:$0xf]  ;;  %v9251_v24 = vld [vmem:[#allocation6 + $0xf34] sm:$0xf0]  ;;  %v9338_v45 = vld [vmem:[#allocation10 + $0xec] sm:$0xf0] }
 0x32b   :  { %v7975_v53 = vor.u32 %v9251_v24, %v7974_v56  ;;  %v9298_v42 = vld [vmem:[#allocation7 + $0xb0] sm:$0xff] }
 0x32c   :  { %v9981_v13 = vadd.f32 %v3494_v7, %v9901_v32  ;;  %v9330_v56 = vld [vmem:[#allocation10 + $0xac] sm:$0xf0] }
 0x32d   :  { %4437 = vmatpush.bf16.msrb.mxu3 %v7579_v50  ;;  %4446 = vmatpush.bf16.msrb.mxu1 %v7771_v8  ;;  %v9217_v50 = vld [vmem:[#allocation6 + $0xe2c] sm:$0xf]  ;;  %v7958_v8 = vld [vmem:[#allocation6 + $0xf08] sm:$0xf] }
 0x32e   :  { %v9985_v59 = vpack.c.bf16 %v9981_v13, %v9981_v13  ;;  %4411 = vmatpush.bf16.msra.mxu2 %v7831_v2  ;;  %v7851_v7 = vor.u32 %v9217_v50, %v7848_v5  ;;  %v7959_v11 = vor.u32 %v9247_v20, %v7958_v8  ;;  %v8075_v2 = vor.u32 %v9273_v33, %v8072_v47  ;;  %v8270_v8 = vld [vmem:[#allocation10 + $0x80] sm:$0xf]  ;;  %v9326_v20 = vld [vmem:[#allocation10 + $0x8c] sm:$0xf0] }
 0x32f   :  { %v9296_v33 = vld [vmem:[#allocation7 + $0xa0] sm:$0xff] }
 0x330   :  { %4321 = vmatmul.bf16.vlgmr.msra.gmra.mxu0 %v9985_v59  ;;  %4438 = vmatmul.bf16.vlgmr.msrb.gmra.mxu3 %v9939_v22  ;;  %v7723_v22 = vor.u32 %v9185_v43, %v7720_v31  ;;  %v7992_v43 = vld [vmem:[#allocation6 + $0xf58] sm:$0xf0]  ;;  %v8254_v47 = vld [vmem:[#allocation10 + $0x60] sm:$0xf] }
 0x331   :  { %4417 = vmatpush.bf16.msra.mxu0 %v8071_v39  ;;  %v3495_v32 = vpop.f32.mrf.mxu0  ;;  %4447 = vmatpush.bf16.msrb.mxu1 %v7755_v41  ;;  %v9269_v39 = vld [vmem:[#allocation6 + $0xfcc] sm:$0xf]  ;;  %v8056_v41 = vld [vmem:[#allocation6 + $0xfd8] sm:$0xf0]  ;;  %v7995_v31 = vor.u32 %v9253_v28, %v7992_v43 }
 0x332   :  { %4456 = vmatpush.bf16.msrb.mxu2 %v7947_v21  ;;  %v8059_v21 = vor.u32 %v9269_v39, %v8056_v41  ;;  %v9283_v32 = vld [vmem:[#allocation7 + $0x38] sm:$0xff]  ;;  %v9370_v41 = vld [vmem:[#allocation10 + $0x1ec] sm:$0xf0] }
 0x333   :  { %4412 = vmatmul.bf16.vlgmr.msra.gmra.mxu2 %v9968_v12  ;;  %4765 = vmatpush.bf16.msra.mxu3 %v9283_v32  ;;  %v9366_v32 = vld [vmem:[#allocation10 + $0x1cc] sm:$0xf0] }
 0x335   :  { %4418 = vmatpush.bf16.msra.mxu0 %v8055_v16  ;;  %4448 = vmatpush.bf16.msrb.mxu1 %v7739_v25  ;;  %v9257_v16 = vld [vmem:[#allocation6 + $0xf6c] sm:$0xf]  ;;  %v8008_v25 = vld [vmem:[#allocation6 + $0xf78] sm:$0xf0] }
 0x336   :  { %4457 = vmatpush.bf16.msrb.mxu2 %v7931_v26  ;;  %v9282_v26 = vld [vmem:[#allocation7 + $0x30] sm:$0xff]  ;;  %v8011_v49 = vor.u32 %v9257_v16, %v8008_v25 }
 0x337   :  { %4766 = vmatpush.bf16.msra.mxu3 %v9282_v26  ;;  %v9294_v25 = vld [vmem:[#allocation7 + $0x90] sm:$0xff]  ;;  %v8222_v26 = vld [vmem:[#allocation10 + $0x20] sm:$0xf] }
 0x339   :  { %4419 = vmatpush.bf16.msra.mxu0 %v8039_v37  ;;  %4449 = vmatpush.bf16.msrb.mxu1 %v7723_v22  ;;  %v9245_v22 = vld [vmem:[#allocation6 + $0xf0c] sm:$0xf] }
 0x33a   :  { %4458 = vmatpush.bf16.msrb.mxu2 %v7915_v38  ;;  %v7960_v38 = vld [vmem:[#allocation6 + $0xf18] sm:$0xf0] }
 0x33b   :  { %4767 = vmatpush.bf16.msra.mxu3 %v9281_v36  ;;  %v7963_v46 = vor.u32 %v9245_v22, %v7960_v38  ;;  %v8206_v22 = vld [vmem:[#allocation10] sm:$0xf]  ;;  %v9310_v38 = vld [vmem:[#allocation10 + $0xc] sm:$0xf0] }
 0x33d   :  { %4420 = vmatpush.bf16.msra.mxu0 %v8023_v10  ;;  %4450 = vmatpush.bf16.msrb.mxu1 %v7707_v48  ;;  %v9277_v10 = vld [vmem:[#allocation7 + $0x8] sm:$0xff] }
 0x33e   :  { %4459 = vmatpush.bf16.msrb.mxu2 %v7899_v4  ;;  %v9289_v48 = vld [vmem:[#allocation7 + $0x68] sm:$0xff]  ;;  %v9276_v4 = vld [vmem:[#allocation7] sm:$0xff] }
 0x33f   :  { %4768 = vmatpush.bf16.msra.mxu3 %v9280_v40  ;;  %v8207_v40 = vor.u32 %v9310_v38, %v8206_v22  ;;  %v9378_v22 = vld [vmem:[#allocation10 + $0x22c] sm:$0xf0] }
 0x340   :  { %4373 = vmatmul.bf16.vlgmr.msrb.gmra.mxu0 %v9985_v59  ;;  %4451 = vmatmul.bf16.vlgmr.msrb.gmra.mxu1 %v9956_v44  ;;  %v7835_v44 = vor.u32 %v9213_v58, %v7832_v63  ;;  %v8271_v58 = vor.u32 %v9326_v20, %v8270_v8  ;;  %v9284_v63 = vld [vmem:[#allocation7 + $0x40] sm:$0xff] }
 0x341   :  { %4421 = vmatpush.bf16.msra.mxu0 %v8007_v52  ;;  %4778 = vmatpush.bf16.msra.mxu1 %v9291_v35  ;;  %v8319_v52 = vor.u32 %v9338_v45, %v8318_v34  ;;  %v9402_v34 = vld [vmem:[#allocation10 + $0x2ec] sm:$0xf0]  ;;  %v8542_v20 = vld [vmem:[#allocation10 + $0x2a0] sm:$0xf] }
 0x342   :  { %4460 = vmatpush.bf16.msrb.mxu2 %v7883_v29  ;;  %v9287_v29 = vld [vmem:[#allocation7 + $0x58] sm:$0xff] }
 0x343   :  { %4769 = vmatpush.bf16.msra.mxu3 %v9279_v27  ;;  %v9358_v27 = vld [vmem:[#allocation10 + $0x18c] sm:$0xf0] }
 0x345   :  { %4422 = vmatpush.bf16.msra.mxu0 %v7991_v55  ;;  %4779 = vmatpush.bf16.msra.mxu1 %v9290_v30  ;;  %v9286_v55 = vld [vmem:[#allocation7 + $0x50] sm:$0xff]  ;;  %v9292_v30 = vld [vmem:[#allocation7 + $0x80] sm:$0xff] }
 0x346   :  { %4461 = vmatpush.bf16.msrb.mxu2 %v7867_v61  ;;  %v8286_v61 = vld [vmem:[#allocation10 + $0xa0] sm:$0xf] }
 0x347   :  { %4770 = vmatpush.bf16.msra.mxu3 %v9278_v3  ;;  %v8287_v50 = vor.u32 %v9330_v56, %v8286_v61  ;;  %v9307_v3 = vld [vmem:[#allocation7 + $0xf8] sm:$0xff]  ;;  %v9398_v61 = vld [vmem:[#allocation10 + $0x2cc] sm:$0xf0] }
 0x349   :  { %4423 = vmatpush.bf16.msra.mxu0 %v7975_v53  ;;  %4780 = vmatpush.bf16.msra.mxu1 %v9289_v48  ;;  %v9285_v53 = vld [vmem:[#allocation7 + $0x48] sm:$0xff] }
 0x34a   :  { %4462 = vmatpush.bf16.msrb.mxu2 %v7851_v7  ;;  %v9297_v7 = vld [vmem:[#allocation7 + $0xa8] sm:$0xff] }
 0x34b   :  { %4771 = vmatpush.bf16.msra.mxu3 %v9277_v10  ;;  %v8382_v10 = vld [vmem:[#allocation10 + $0x160] sm:$0xf] }
 0x34d   :  { %4424 = vmatpush.bf16.msra.mxu0 %v7959_v11  ;;  %4781 = vmatpush.bf16.msra.mxu1 %v9288_v60  ;;  %v9322_v11 = vld [vmem:[#allocation10 + $0x6c] sm:$0xf0]  ;;  %v8574_v60 = vld [vmem:[#allocation10 + $0x2e0] sm:$0xf] }
 0x34e   :  { %4463 = vmatpush.bf16.msrb.mxu2 %v7835_v44  ;;  %v8446_v44 = vld [vmem:[#allocation10 + $0x1e0] sm:$0xf]  ;;  %v8255_v39 = vor.u32 %v9322_v11, %v8254_v47 }
 0x34f   :  { %4772 = vmatpush.bf16.msra.mxu3 %v9276_v4  ;;  %v9354_v4 = vld [vmem:[#allocation10 + $0x16c] sm:$0xf0]  ;;  %v9304_v11 = vld [vmem:[#allocation7 + $0xe0] sm:$0xff] }
 0x350   :  { %4425 = vmatmul.bf16.vlgmr.msra.gmra.mxu0 %v9985_v59 }
 0x351   :  { %4469 = vmatpush.bf16.msrb.mxu0 %v8075_v2  ;;  %4464 = vmatmul.bf16.vlgmr.msrb.gmra.mxu2 %v9968_v12  ;;  %v7976_v12 = vld [vmem:[#allocation6 + $0xf38] sm:$0xf0] }
 0x352   :  { %v7979_v37 = vor.u32 %v9249_v15, %v7976_v12  ;;  %4791 = vmatpush.bf16.msra.mxu2 %v9299_v57  ;;  %4782 = vmatpush.bf16.msra.mxu1 %v9287_v29  ;;  %v9362_v15 = vld [vmem:[#allocation10 + $0x1ac] sm:$0xf0]  ;;  %v8575_v29 = vor.u32 %v9402_v34, %v8574_v60  ;;  %v8304_v60 = vld [vmem:[#allocation10 + $0xd0] sm:$0xf0] }
 0x353   :  { %5596 = vmatpush.bf16.msrb.mxu3 %v8319_v52  ;;  %v8383_v52 = vor.u32 %v9354_v4, %v8382_v10 }
 0x355   :  { %4470 = vmatpush.bf16.msrb.mxu0 %v8059_v21  ;;  %v8447_v21 = vor.u32 %v9370_v41, %v8446_v44  ;;  %v8334_v44 = vld [vmem:[#allocation10 + $0x100] sm:$0xf] }
 0x356   :  { %4792 = vmatpush.bf16.msra.mxu2 %v9298_v42  ;;  %4783 = vmatpush.bf16.msra.mxu1 %v9286_v55  ;;  %v8558_v55 = vld [vmem:[#allocation10 + $0x2c0] sm:$0xf] }
 0x357   :  { %v8559_v56 = vor.u32 %v9398_v61, %v8558_v55  ;;  %v8686_v55 = vld [vmem:[#allocation10 + $0x3c0] sm:$0xf]  ;;  %v9430_v61 = vld [vmem:[#allocation10 + $0x3cc] sm:$0xf0] }
 0x359   :  { %4471 = vmatpush.bf16.msrb.mxu0 %v8043_v18  ;;  %v8238_v18 = vld [vmem:[#allocation10 + $0x40] sm:$0xf] }
 0x35a   :  { %4784 = vmatpush.bf16.msra.mxu1 %v9285_v53  ;;  %4793 = vmatpush.bf16.msra.mxu2 %v9297_v7  ;;  %v8239_v0 = vor.u32 %v9318_v19, %v8238_v18  ;;  %v9346_v53 = vld [vmem:[#allocation10 + $0x12c] sm:$0xf0]  ;;  %v9303_v18 = vld [vmem:[#allocation7 + $0xd8] sm:$0xff]  ;;  %v8510_v19 = vld [vmem:[#allocation10 + $0x260] sm:$0xf] }
 0x35d   :  { %4472 = vmatpush.bf16.msrb.mxu0 %v8027_v54  ;;  %v8430_v54 = vld [vmem:[#allocation10 + $0x1c0] sm:$0xf] }
 0x35e   :  { %4785 = vmatpush.bf16.msra.mxu1 %v9284_v63  ;;  %4794 = vmatpush.bf16.msra.mxu2 %v9296_v33  ;;  %v8431_v16 = vor.u32 %v9366_v32, %v8430_v54 }
 0x361   :  { %4473 = vmatpush.bf16.msrb.mxu0 %v8011_v49  ;;  %v9314_v49 = vld [vmem:[#allocation10 + $0x2c] sm:$0xf0] }
 0x362   :  { %5609 = vmatpush.bf16.msrb.mxu1 %v8447_v21  ;;  %4795 = vmatpush.bf16.msra.mxu2 %v9295_v17  ;;  %v8223_v43 = vor.u32 %v9314_v49, %v8222_v26  ;;  %v8526_v21 = vld [vmem:[#allocation10 + $0x280] sm:$0xf]  ;;  %v9382_v49 = vld [vmem:[#allocation10 + $0x24c] sm:$0xf0] }
 0x363   :  { %v8494_v26 = vld [vmem:[#allocation10 + $0x240] sm:$0xf] }
 0x365   :  { %4474 = vmatpush.bf16.msrb.mxu0 %v7995_v31  ;;  %v8414_v31 = vld [vmem:[#allocation10 + $0x1a0] sm:$0xf] }
 0x366   :  { %5610 = vmatpush.bf16.msrb.mxu1 %v8431_v16  ;;  %4796 = vmatpush.bf16.msra.mxu2 %v9294_v25  ;;  %v8415_v12 = vor.u32 %v9362_v15, %v8414_v31  ;;  %v9302_v25 = vld [vmem:[#allocation7 + $0xd0] sm:$0xff] }
 0x369   :  { %4475 = vmatpush.bf16.msrb.mxu0 %v7979_v37  ;;  %v9293_v37 = vld [vmem:[#allocation7 + $0x88] sm:$0xff] }
 0x36a   :  { %5611 = vmatpush.bf16.msrb.mxu1 %v8415_v12  ;;  %4797 = vmatpush.bf16.msra.mxu2 %v9293_v37  ;;  %v9301_v12 = vld [vmem:[#allocation7 + $0xc8] sm:$0xff]  ;;  %v8478_v37 = vld [vmem:[#allocation10 + $0x220] sm:$0xf] }
 0x36d   :  { %4476 = vmatpush.bf16.msrb.mxu0 %v7963_v46  ;;  %v8398_v46 = vld [vmem:[#allocation10 + $0x180] sm:$0xf] }
 0x36e   :  { %v8399_v35 = vor.u32 %v9358_v27, %v8398_v46  ;;  %4798 = vmatpush.bf16.msra.mxu2 %v9292_v30  ;;  %v9336_v46 = vld [vmem:[#allocation10 + $0xe4] sm:$0xf]  ;;  %v8320_v27 = vld [vmem:[#allocation10 + $0xf0] sm:$0xf0] }
 0x36f   :  { %v8323_v10 = vor.u32 %v9336_v46, %v8320_v27  ;;  %v8224_v46 = vld [vmem:[#allocation10 + $0x30] sm:$0xf0]  ;;  %v9360_v27 = vld [vmem:[#allocation10 + $0x1a4] sm:$0xf] }
 0x370   :  { %4477 = vmatmul.bf16.vlgmr.msrb.gmra.mxu0 %v9985_v59  ;;  %v9334_v59 = vld [vmem:[#allocation10 + $0xcc] sm:$0xf0]  ;;  %5612 = vmatpush.bf16.msrb.mxu1 %v8399_v35  ;;  %v8479_v35 = vor.u32 %v9378_v22, %v8478_v37 }
 0x371   :  { %v8303_v23 = vor.u32 %v9334_v59, %v8302_v9  ;;  %4804 = vmatpush.bf16.msra.mxu0 %v9307_v3  ;;  %v9306_v9 = vld [vmem:[#allocation7 + $0xf0] sm:$0xff]  ;;  %v8366_v59 = vld [vmem:[#allocation10 + $0x140] sm:$0xf]  ;;  %v9332_v3 = vld [vmem:[#allocation10 + $0xc4] sm:$0xf] }
 0x372   :  { %5622 = vmatpush.bf16.msrb.mxu2 %v8575_v29  ;;  %v9434_v29 = vld [vmem:[#allocation10 + $0x3ec] sm:$0xf0] }
 0x373   :  { %v9995_v51 = vpop.f32.mrf.mxu3  ;;  %5597 = vmatpush.bf16.msrb.mxu3 %v8303_v23  ;;  %v9350_v23 = vld [vmem:[#allocation10 + $0x14c] sm:$0xf0] }
 0x374   :  { %5613 = vmatpush.bf16.msrb.mxu1 %v8383_v52  ;;  %v8367_v42 = vor.u32 %v9350_v23, %v8366_v59  ;;  %v8702_v52 = vld [vmem:[#allocation10 + $0x3e0] sm:$0xf]  ;;  %v8307_v59 = vor.u32 %v9332_v3, %v8304_v60  ;;  %v9328_v23 = vld [vmem:[#allocation10 + $0xa4] sm:$0xf]  ;;  %v8416_v3 = vld [vmem:[#allocation10 + $0x1b0] sm:$0xf0] }
 0x375   :  { %4805 = vmatpush.bf16.msra.mxu0 %v9306_v9  ;;  %v8703_v9 = vor.u32 %v9434_v29, %v8702_v52  ;;  %v8419_v60 = vor.u32 %v9360_v27, %v8416_v3  ;;  %v8208_v52 = vld [vmem:[#allocation10 + $0x10] sm:$0xf0]  ;;  %v9356_v29 = vld [vmem:[#allocation10 + $0x184] sm:$0xf] }
 0x376   :  { %5623 = vmatpush.bf16.msrb.mxu2 %v8559_v56  ;;  %v8336_v3 = vld [vmem:[#allocation10 + $0x110] sm:$0xf0] }
 0x377   :  { %5598 = vmatpush.bf16.msrb.mxu3 %v8287_v50  ;;  %v8350_v50 = vld [vmem:[#allocation10 + $0x120] sm:$0xf] }
 0x378   :  { %5614 = vmatpush.bf16.msrb.mxu1 %v8367_v42  ;;  %v8351_v8 = vor.u32 %v9346_v53, %v8350_v50  ;;  %v8288_v42 = vld [vmem:[#allocation10 + $0xb0] sm:$0xf0]  ;;  %v9324_v53 = vld [vmem:[#allocation10 + $0x84] sm:$0xf] }
 0x379   :  { %v8291_v50 = vor.u32 %v9328_v23, %v8288_v42  ;;  %v9410_v23 = vld [vmem:[#allocation10 + $0x32c] sm:$0xf0]  ;;  %v8326_v42 = vld [vmem:[#allocation10 + $0xe8] sm:$0xf] }
 0x37b   :  { %v4285_v24 = vpop.f32.mrf.mxu3  ;;  %5599 = vmatpush.bf16.msrb.mxu3 %v8271_v58  ;;  %v9394_v58 = vld [vmem:[#allocation10 + $0x2ac] sm:$0xf0] }
 0x37c   :  { %v9305_v24 = vld [vmem:[#allocation7 + $0xe8] sm:$0xff]  ;;  %v8543_v33 = vor.u32 %v9394_v58, %v8542_v20  ;;  %5615 = vmatpush.bf16.msrb.mxu1 %v8351_v8  ;;  %v8272_v8 = vld [vmem:[#allocation10 + $0x90] sm:$0xf0]  ;;  %v8670_v20 = vld [vmem:[#allocation10 + $0x3a0] sm:$0xf] }
 0x37d   :  { %v9997_v5 = vpop.f32.mrf.mxu1  ;;  %4806 = vmatpush.bf16.msra.mxu0 %v9305_v24  ;;  %v8687_v24 = vor.u32 %v9430_v61, %v8686_v55  ;;  %v9426_v58 = vld [vmem:[#allocation10 + $0x3ac] sm:$0xf0]  ;;  %v9339_v55 = vld [vmem:[#allocation10 + $0xf4] sm:$0xf0] }
 0x37e   :  { %5624 = vmatpush.bf16.msrb.mxu2 %v8543_v33  ;;  %v8671_v33 = vor.u32 %v9426_v58, %v8670_v20  ;;  %v8384_v20 = vld [vmem:[#allocation10 + $0x170] sm:$0xf0] }
 0x37f   :  { %5600 = vmatpush.bf16.msrb.mxu3 %v8255_v39  ;;  %v9342_v39 = vld [vmem:[#allocation10 + $0x10c] sm:$0xf0] }
 0x380   :  { %v8335_v41 = vor.u32 %v9342_v39, %v8334_v44  ;;  %v8275_v39 = vor.u32 %v9324_v53, %v8272_v8  ;;  %v9352_v8 = vld [vmem:[#allocation10 + $0x164] sm:$0xf] }
 0x381   :  { %4807 = vmatpush.bf16.msra.mxu0 %v9304_v11 }
 0x382   :  { %5616 = vmatpush.bf16.msrb.mxu1 %v8335_v41  ;;  %v9320_v41 = vld [vmem:[#allocation10 + $0x64] sm:$0xf] }
 0x383   :  { %v9999_v2 = vpop.f32.mrf.mxu3  ;;  %5601 = vmatpush.bf16.msrb.mxu3 %v8239_v0  ;;  %v9386_v0 = vld [vmem:[#allocation10 + $0x26c] sm:$0xf0] }
 0x384   :  { %v8511_v32 = vor.u32 %v9386_v0, %v8510_v19  ;;  %v8448_v19 = vld [vmem:[#allocation10 + $0x1f0] sm:$0xf0]  ;;  %v8654_v0 = vld [vmem:[#allocation10 + $0x380] sm:$0xf] }
 0x385   :  { %v4298_v6 = vpop.f32.mrf.mxu1  ;;  %4808 = vmatpush.bf16.msra.mxu0 %v9303_v18 }
 0x386   :  { %v9390_v6 = vld [vmem:[#allocation10 + $0x28c] sm:$0xf0] }
 0x387   :  { %5602 = vmatpush.bf16.msrb.mxu3 %v8223_v43  ;;  %v8527_v17 = vor.u32 %v9390_v6, %v8526_v21  ;;  %v8495_v43 = vor.u32 %v9382_v49, %v8494_v26  ;;  %v8256_v21 = vld [vmem:[#allocation10 + $0x70] sm:$0xf0]  ;;  %v9368_v6 = vld [vmem:[#allocation10 + $0x1e4] sm:$0xf] }
 0x388   :  { %v9316_v26 = vld [vmem:[#allocation10 + $0x44] sm:$0xf]  ;;  %v8240_v49 = vld [vmem:[#allocation10 + $0x50] sm:$0xf0] }
 0x389   :  { %5625 = vmatpush.bf16.msrb.mxu2 %v8527_v17  ;;  %4809 = vmatpush.bf16.msra.mxu0 %v9302_v25  ;;  %v8451_v25 = vor.u32 %v9368_v6, %v8448_v19  ;;  %v8243_v22 = vor.u32 %v9316_v26, %v8240_v49 }
 0x38b   :  { %v4337_v28 = vpop.f32.mrf.mxu3  ;;  %5603 = vmatpush.bf16.msrb.mxu3 %v8207_v40 }
 0x38c   :  { %v4297_v28 = vadd.f32 %v9997_v5, %v9995_v51  ;;  %v9300_v51 = vld [vmem:[#allocation7 + $0xc0] sm:$0xff] }
 0x38d   :  { %v10001_v36 = vpop.f32.mrf.mxu1  ;;  %5626 = vmatpush.bf16.msrb.mxu2 %v8511_v32  ;;  %4810 = vmatpush.bf16.msra.mxu0 %v9301_v12  ;;  %v8462_v5 = vld [vmem:[#allocation10 + $0x200] sm:$0xf]  ;;  %v9418_v12 = vld [vmem:[#allocation10 + $0x36c] sm:$0xf0] }
 0x391   :  { %5627 = vmatpush.bf16.msrb.mxu2 %v8495_v43  ;;  %4811 = vmatpush.bf16.msra.mxu0 %v9300_v51  ;;  %v9414_v51 = vld [vmem:[#allocation10 + $0x34c] sm:$0xf0] }
 0x393   :  { %v4309_v48 = vpop.f32.mrf.mxu2 }
 0x394   :  { %v4310_v31 = vadd.f32 %v4309_v48, %v4297_v28  ;;  %v9374_v48 = vld [vmem:[#allocation10 + $0x20c] sm:$0xf0]  ;;  %v9364_v28 = vld [vmem:[#allocation10 + $0x1c4] sm:$0xf] }
 0x395   :  { %v10003_v45 = vpop.f32.mrf.mxu3  ;;  %v4350_v57 = vpop.f32.mrf.mxu1  ;;  %5628 = vmatpush.bf16.msrb.mxu2 %v8479_v35  ;;  %v8463_v34 = vor.u32 %v9374_v48, %v8462_v5  ;;  %5635 = vmatpush.bf16.msrb.mxu0 %v8703_v9 }
 0x399   :  { %5629 = vmatpush.bf16.msrb.mxu2 %v8463_v34  ;;  %5636 = vmatpush.bf16.msrb.mxu0 %v8687_v24  ;;  %v9308_v34 = vld [vmem:[#allocation10 + $0x4] sm:$0xf] }
 0x39a   :  { %v8211_v53 = vor.u32 %v9308_v34, %v8208_v52  ;;  %v8454_v34 = vld [vmem:[#allocation10 + $0x1e8] sm:$0xf]  ;;  %v9371_v52 = vld [vmem:[#allocation10 + $0x1f4] sm:$0xf0] }
 0x39b   :  { %v4311_v7 = vpop.f32.mrf.mxu2 }
 0x39c   :  { %v4349_v7 = vadd.f32 %v10001_v36, %v9999_v2  ;;  %v9422_v2 = vld [vmem:[#allocation10 + $0x38c] sm:$0xf0] }
 0x39d   :  { %v4389_v63 = vpop.f32.mrf.mxu3  ;;  %v10005_v47 = vpop.f32.mrf.mxu1  ;;  %5637 = vmatpush.bf16.msrb.mxu0 %v8671_v33  ;;  %v8655_v32 = vor.u32 %v9422_v2, %v8654_v0  ;;  %v9400_v33 = vld [vmem:[#allocation10 + $0x2e4] sm:$0xf]  ;;  %v8368_v2 = vld [vmem:[#allocation10 + $0x150] sm:$0xf0] }
 0x39e   :  { %v4401_v9 = vadd.f32 %v10005_v47, %v10003_v45  ;;  %v8590_v45 = vld [vmem:[#allocation10 + $0x300] sm:$0xf]  ;;  %v9406_v47 = vld [vmem:[#allocation10 + $0x30c] sm:$0xf0]  ;;  %v9348_v0 = vld [vmem:[#allocation10 + $0x144] sm:$0xf] }
 0x39f   :  { %v8371_v49 = vor.u32 %v9348_v0, %v8368_v2  ;;  %v9311_v0 = vld [vmem:[#allocation10 + $0x14] sm:$0xf0]  ;;  %v8406_v2 = vld [vmem:[#allocation10 + $0x188] sm:$0xf] }
 0x3a1   :  { %5638 = vmatpush.bf16.msrb.mxu0 %v8655_v32  ;;  %v8560_v32 = vld [vmem:[#allocation10 + $0x2d0] sm:$0xf0] }
 0x3a3   :  { %v4361_v54 = vpop.f32.mrf.mxu2 }
 0x3a4   :  { %v4362_v11 = vadd.f32 %v4361_v54, %v4349_v7  ;;  %v8259_v54 = vor.u32 %v9320_v41, %v8256_v21  ;;  %v8591_v41 = vor.u32 %v9406_v47, %v8590_v45  ;;  %v8422_v45 = vld [vmem:[#allocation10 + $0x1a8] sm:$0xf]  ;;  %v9363_v47 = vld [vmem:[#allocation10 + $0x1b4] sm:$0xf0] }
 0x3a5   :  { %v4402_v16 = vpop.f32.mrf.mxu1 }
 0x3ab   :  { %v4363_v40 = vpop.f32.mrf.mxu2 }
 0x3ac   :  { %v9312_v40 = vld [vmem:[#allocation10 + $0x24] sm:$0xf] }
 0x3ad   :  { %v4322_v15 = vpop.f32.mrf.mxu0  ;;  %v8227_v48 = vor.u32 %v9312_v40, %v8224_v46 }
 0x3ae   :  { %v4323_v38 = vadd.f32 %v4322_v15, %v4310_v31  ;;  %v8432_v31 = vld [vmem:[#allocation10 + $0x1d0] sm:$0xf0]  ;;  %v8638_v15 = vld [vmem:[#allocation10 + $0x360] sm:$0xf] }
 0x3af   :  { %v8639_v37 = vor.u32 %v9418_v12, %v8638_v15  ;;  %v9344_v15 = vld [vmem:[#allocation10 + $0x124] sm:$0xf]  ;;  %v8352_v12 = vld [vmem:[#allocation10 + $0x130] sm:$0xf0] }
 0x3b0   :  { %v10010_v30 = vadd.f32 %v4323_v38, %v9935_v14  ;;  %v8435_v38 = vor.u32 %v9364_v28, %v8432_v31  ;;  %v8355_v40 = vor.u32 %v9344_v15, %v8352_v12  ;;  %v8464_v15 = vld [vmem:[#allocation10 + $0x210] sm:$0xf0]  ;;  %v9432_v12 = vld [vmem:[#allocation10 + $0x3e4] sm:$0xf] }
 0x3b1   :  { %5639 = vmatpush.bf16.msrb.mxu0 %v8639_v37  ;;  %v9392_v37 = vld [vmem:[#allocation10 + $0x2a4] sm:$0xf] }
 0x3b2   :  { %v10014_v4 = vpack.c.bf16 %v10010_v30, %v10010_v30 }
 0x3b3   :  { %v10016_v57 = vpop.f32.mrf.mxu3 }
 0x3b4   :  { %4773 = vmatmul.bf16.vlgmr.msra.gmra.mxu3 %v10014_v4 }
 0x3b5   :  { %5648 = vmatpush.bf16.msra.mxu3 %v8323_v10  ;;  %v4324_v14 = vpop.f32.mrf.mxu0  ;;  %v8622_v10 = vld [vmem:[#allocation10 + $0x340] sm:$0xf] }
 0x3b6   :  { %v10019_v56 = vpop.f32.mrf.mxu2  ;;  %v8623_v5 = vor.u32 %v9414_v51, %v8622_v10  ;;  %v8400_v14 = vld [vmem:[#allocation10 + $0x190] sm:$0xf0]  ;;  %v9388_v10 = vld [vmem:[#allocation10 + $0x284] sm:$0xf] }
 0x3b7   :  { %v4414_v24 = vadd.f32 %v10019_v56, %v4401_v9  ;;  %v8403_v7 = vor.u32 %v9356_v29, %v8400_v14  ;;  %v8387_v56 = vor.u32 %v9352_v8, %v8384_v20  ;;  %v8528_v51 = vld [vmem:[#allocation10 + $0x290] sm:$0xf0]  ;;  %v9380_v8 = vld [vmem:[#allocation10 + $0x244] sm:$0xf] }
 0x3b8   :  { %5640 = vmatpush.bf16.msrb.mxu0 %v8623_v5  ;;  %v8262_v5 = vld [vmem:[#allocation10 + $0x68] sm:$0xf]  ;;  %v8531_v9 = vor.u32 %v9388_v10, %v8528_v51  ;;  %v8312_v10 = vld [vmem:[#allocation10 + $0xd8] sm:$0xf0] }
 0x3b9   :  { %5649 = vmatpush.bf16.msra.mxu3 %v8307_v59  ;;  %v8606_v59 = vld [vmem:[#allocation10 + $0x320] sm:$0xf] }
 0x3ba   :  { %v8607_v61 = vor.u32 %v9410_v23, %v8606_v59  ;;  %v9384_v59 = vld [vmem:[#allocation10 + $0x264] sm:$0xf]  ;;  %v8455_v23 = vor.u32 %v9371_v52, %v8454_v34 }
 0x3bb   :  { %v4441_v63 = vpop.f32.mrf.mxu3 }
 0x3bc   :  { %v8327_v63 = vor.u32 %v9339_v55, %v8326_v42  ;;  %5641 = vmatpush.bf16.msrb.mxu0 %v8607_v61  ;;  %v8512_v42 = vld [vmem:[#allocation10 + $0x270] sm:$0xf0]  ;;  %v8246_v55 = vld [vmem:[#allocation10 + $0x48] sm:$0xf]  ;;  %v9319_v61 = vld [vmem:[#allocation10 + $0x54] sm:$0xf0] }
 0x3bd   :  { %5650 = vmatpush.bf16.msra.mxu3 %v8291_v50  ;;  %v4374_v44 = vpop.f32.mrf.mxu0  ;;  %v10023_v18 = vpop.f32.mrf.mxu1 }
 0x3be   :  { %v4375_v17 = vadd.f32 %v4374_v44, %v4362_v11  ;;  %v4415_v36 = vpop.f32.mrf.mxu2  ;;  %v8576_v11 = vld [vmem:[#allocation10 + $0x2f0] sm:$0xf0]  ;;  %v8310_v44 = vld [vmem:[#allocation10 + $0xc8] sm:$0xf] }
 0x3bf   :  { %v9396_v36 = vld [vmem:[#allocation10 + $0x2c4] sm:$0xf] }
 0x3c0   :  { %v10026_v16 = vadd.f32 %v4375_v17, %v9952_v1  ;;  %v8579_v17 = vor.u32 %v9400_v33, %v8576_v11  ;;  %5642 = vmatpush.bf16.msrb.mxu0 %v8591_v41  ;;  %v8563_v28 = vor.u32 %v9396_v36, %v8560_v32  ;;  %v9315_v33 = vld [vmem:[#allocation10 + $0x34] sm:$0xf0]  ;;  %v8480_v41 = vld [vmem:[#allocation10 + $0x230] sm:$0xf0]  ;;  %v9337_v32 = vld [vmem:[#allocation10 + $0xec] sm:$0xf] }
 0x3c1   :  { %5651 = vmatpush.bf16.msra.mxu3 %v8275_v39  ;;  %v9335_v39 = vld [vmem:[#allocation10 + $0xd4] sm:$0xf0] }
 0x3c2   :  { %v10030_v43 = vpack.c.bf16 %v10026_v16, %v10026_v16  ;;  %v8311_v19 = vor.u32 %v9335_v39, %v8310_v44  ;;  %v9376_v39 = vld [vmem:[#allocation10 + $0x224] sm:$0xf]  ;;  %v9359_v36 = vld [vmem:[#allocation10 + $0x194] sm:$0xf0] }
 0x3c4   :  { %4786 = vmatmul.bf16.vlgmr.msra.gmra.mxu1 %v10030_v43  ;;  %5604 = vmatmul.bf16.vlgmr.msrb.gmra.mxu3 %v10014_v4 }
 0x3c5   :  { %5652 = vmatpush.bf16.msra.mxu3 %v8259_v54  ;;  %5661 = vmatpush.bf16.msra.mxu1 %v8451_v25  ;;  %v4376_v1 = vpop.f32.mrf.mxu0  ;;  %v4454_v35 = vpop.f32.mrf.mxu1  ;;  %v8294_v54 = vld [vmem:[#allocation10 + $0xa8] sm:$0xf]  ;;  %v9331_v25 = vld [vmem:[#allocation10 + $0xb4] sm:$0xf0] }
 0x3c6   :  { %v8295_v31 = vor.u32 %v9331_v25, %v8294_v54  ;;  %v8544_v1 = vld [vmem:[#allocation10 + $0x2b0] sm:$0xf0]  ;;  %v9340_v35 = vld [vmem:[#allocation10 + $0x104] sm:$0xf]  ;;  %v8328_v54 = vld [vmem:[#allocation10 + $0xf8] sm:$0xf0] }
 0x3c7   :  { %v8547_v46 = vor.u32 %v9392_v37, %v8544_v1  ;;  %v8339_v29 = vor.u32 %v9340_v35, %v8336_v3  ;;  %v8704_v1 = vld [vmem:[#allocation10 + $0x3f0] sm:$0xf0]  ;;  %v9333_v3 = vld [vmem:[#allocation10 + $0xcc] sm:$0xf] }
 0x3c9   :  { %5653 = vmatpush.bf16.msra.mxu3 %v8243_v22  ;;  %5662 = vmatpush.bf16.msra.mxu1 %v8435_v38  ;;  %v8278_v22 = vld [vmem:[#allocation10 + $0x88] sm:$0xf]  ;;  %v9327_v38 = vld [vmem:[#allocation10 + $0x94] sm:$0xf0] }
 0x3ca   :  { %v8279_v27 = vor.u32 %v9327_v38, %v8278_v22  ;;  %v8390_v22 = vld [vmem:[#allocation10 + $0x168] sm:$0xf]  ;;  %v9355_v38 = vld [vmem:[#allocation10 + $0x174] sm:$0xf0] }
 0x3cd   :  { %5654 = vmatpush.bf16.msra.mxu3 %v8227_v48  ;;  %5663 = vmatpush.bf16.msra.mxu1 %v8419_v60  ;;  %v4426_v50 = vpop.f32.mrf.mxu0  ;;  %v9323_v48 = vld [vmem:[#allocation10 + $0x74] sm:$0xf0] }
 0x3ce   :  { %v4427_v58 = vadd.f32 %v4426_v50, %v4414_v24  ;;  %v8263_v14 = vor.u32 %v9323_v48, %v8262_v5  ;;  %v8438_v24 = vld [vmem:[#allocation10 + $0x1c8] sm:$0xf]  ;;  %v9367_v50 = vld [vmem:[#allocation10 + $0x1d4] sm:$0xf0]  ;;  %v8707_v5 = vor.u32 %v9432_v12, %v8704_v1  ;;  %v8391_v48 = vor.u32 %v9355_v38, %v8390_v22 }
 0x3cf   :  { %v8439_v20 = vor.u32 %v9367_v50, %v8438_v24  ;;  %v8518_v22 = vld [vmem:[#allocation10 + $0x268] sm:$0xf]  ;;  %v9387_v38 = vld [vmem:[#allocation10 + $0x274] sm:$0xf0] }
 0x3d0   :  { %v10038_v21 = vadd.f32 %v4427_v58, %v9964_v62  ;;  %v8496_v58 = vld [vmem:[#allocation10 + $0x250] sm:$0xf0] }
 0x3d1   :  { %5655 = vmatpush.bf16.msra.mxu3 %v8211_v53  ;;  %5664 = vmatpush.bf16.msra.mxu1 %v8403_v7  ;;  %v8515_v53 = vor.u32 %v9384_v59, %v8512_v42  ;;  %v8247_v7 = vor.u32 %v9319_v61, %v8246_v55  ;;  %v8499_v11 = vor.u32 %v9380_v8, %v8496_v58  ;;  %v8566_v59 = vld [vmem:[#allocation10 + $0x2c8] sm:$0xf]  ;;  %v8296_v42 = vld [vmem:[#allocation10 + $0xb8] sm:$0xf0]  ;;  %v8672_v58 = vld [vmem:[#allocation10 + $0x3b0] sm:$0xf0] }
 0x3d2   :  { %v10042_v6 = vpack.c.bf16 %v10038_v21, %v10038_v21  ;;  %v4491_v51 = vrot.slane %v10038_v21, 4  ;;  %v9329_v21 = vld [vmem:[#allocation10 + $0xac] sm:$0xf] }
 0x3d4   :  { %v10044_v26 = vpop.f32.mrf.mxu2  ;;  %4799 = vmatmul.bf16.vlgmr.msra.gmra.mxu2 %v10042_v6  ;;  %5617 = vmatmul.bf16.vlgmr.msrb.gmra.mxu1 %v10030_v43 }
 0x3d5   :  { %5700 = vmatpush.bf16.msrb.mxu3 %v8327_v63  ;;  %5665 = vmatpush.bf16.msra.mxu1 %v8387_v56  ;;  %v4428_v62 = vpop.f32.mrf.mxu0  ;;  %v8230_v63 = vld [vmem:[#allocation10 + $0x28] sm:$0xf]  ;;  %v4453_v56 = vadd.f32 %v10023_v18, %v10016_v57  ;;  %v8407_v57 = vor.u32 %v9359_v36, %v8406_v2  ;;  %v8331_v18 = vor.u32 %v9337_v32, %v8328_v54  ;;  %v9343_v2 = vld [vmem:[#allocation10 + $0x114] sm:$0xf0] }
 0x3d6   :  { %5656 = vmatmul.bf16.vlgmr.msra.gmra.mxu3 %v10014_v4  ;;  %5674 = vmatpush.bf16.msra.mxu2 %v8579_v17  ;;  %v8231_v44 = vor.u32 %v9315_v33, %v8230_v63  ;;  %v8423_v17 = vor.u32 %v9363_v47, %v8422_v45  ;;  %v8358_v63 = vld [vmem:[#allocation10 + $0x128] sm:$0xf]  ;;  %v9347_v33 = vld [vmem:[#allocation10 + $0x134] sm:$0xf0] }
 0x3d7   :  { %v4466_v25 = vadd.f32 %v10044_v26, %v4453_v56  ;;  %v8550_v45 = vld [vmem:[#allocation10 + $0x2a8] sm:$0xf]  ;;  %v9395_v47 = vld [vmem:[#allocation10 + $0x2b4] sm:$0xf0]  ;;  %v8359_v56 = vor.u32 %v9347_v33, %v8358_v63  ;;  %v9404_v63 = vld [vmem:[#allocation10 + $0x304] sm:$0xf] }
 0x3d8   :  { %v8534_v32 = vld [vmem:[#allocation10 + $0x288] sm:$0xf]  ;;  %v9391_v54 = vld [vmem:[#allocation10 + $0x294] sm:$0xf0] }
 0x3d9   :  { %5701 = vmatpush.bf16.msrb.mxu3 %v8311_v19  ;;  %5666 = vmatpush.bf16.msra.mxu1 %v8371_v49  ;;  %v8214_v19 = vld [vmem:[#allocation10 + $0x8] sm:$0xf]  ;;  %v8483_v49 = vor.u32 %v9376_v39, %v8480_v41  ;;  %v9420_v41 = vld [vmem:[#allocation10 + $0x384] sm:$0xf]  ;;  %v8535_v12 = vor.u32 %v9391_v54, %v8534_v32 }
 0x3da   :  { %5675 = vmatpush.bf16.msra.mxu2 %v8563_v28  ;;  %v8215_v28 = vor.u32 %v9311_v0, %v8214_v19  ;;  %v8656_v19 = vld [vmem:[#allocation10 + $0x390] sm:$0xf0]  ;;  %v8342_v0 = vld [vmem:[#allocation10 + $0x108] sm:$0xf] }
 0x3db   :  { %v8470_v33 = vld [vmem:[#allocation10 + $0x208] sm:$0xf] }
 0x3dc   :  { %v4467_v60 = vpop.f32.mrf.mxu2  ;;  %v8694_v54 = vld [vmem:[#allocation10 + $0x3c8] sm:$0xf] }
 0x3dd   :  { %5702 = vmatpush.bf16.msrb.mxu3 %v8295_v31  ;;  %5667 = vmatpush.bf16.msra.mxu1 %v8355_v40  ;;  %v9372_v31 = vld [vmem:[#allocation10 + $0x204] sm:$0xf]  ;;  %v8582_v40 = vld [vmem:[#allocation10 + $0x2e8] sm:$0xf] }
 0x3de   :  { %5676 = vmatpush.bf16.msra.mxu2 %v8547_v46  ;;  %v9403_v46 = vld [vmem:[#allocation10 + $0x2f4] sm:$0xf0]  ;;  %v8467_v35 = vor.u32 %v9372_v31, %v8464_v15  ;;  %v9428_v60 = vld [vmem:[#allocation10 + $0x3c4] sm:$0xf]  ;;  %v8659_v31 = vor.u32 %v9420_v41, %v8656_v19  ;;  %v8343_v15 = vor.u32 %v9343_v2, %v8342_v0  ;;  %v9353_v41 = vld [vmem:[#allocation10 + $0x16c] sm:$0xf] }
 0x3df   :  { %v9401_v19 = vld [vmem:[#allocation10 + $0x2ec] sm:$0xf]  ;;  %v8584_v0 = vld [vmem:[#allocation10 + $0x2f8] sm:$0xf0] }
 0x3e1   :  { %5703 = vmatpush.bf16.msrb.mxu3 %v8279_v27  ;;  %5668 = vmatpush.bf16.msra.mxu1 %v8339_v29  ;;  %v4490_v27 = vrot.slane %v10026_v16, 6  ;;  %v8583_v16 = vor.u32 %v9403_v46, %v8582_v40  ;;  %v8688_v29 = vld [vmem:[#allocation10 + $0x3d0] sm:$0xf0]  ;;  %v9317_v40 = vld [vmem:[#allocation10 + $0x4c] sm:$0xf] }
 0x3e2   :  { %5677 = vmatpush.bf16.msra.mxu2 %v8531_v9  ;;  %v8315_v9 = vor.u32 %v9333_v3, %v8312_v10  ;;  %v8691_v50 = vor.u32 %v9428_v60, %v8688_v29  ;;  %v8248_v46 = vld [vmem:[#allocation10 + $0x58] sm:$0xf0]  ;;  %v8519_v3 = vor.u32 %v9387_v38, %v8518_v22  ;;  %v9412_v10 = vld [vmem:[#allocation10 + $0x344] sm:$0xf]  ;;  %v8502_v60 = vld [vmem:[#allocation10 + $0x248] sm:$0xf] }
 0x3e3   :  { %v4494_v55 = vsel %vm4493_vm1, %v10010_v30, %v4490_v27  ;;  %v8299_v30 = vor.u32 %v9329_v21, %v8296_v42  ;;  %v9365_v27 = vld [vmem:[#allocation10 + $0x1cc] sm:$0xf]  ;;  %v8232_v29 = vld [vmem:[#allocation10 + $0x38] sm:$0xf0]  ;;  %v8608_v21 = vld [vmem:[#allocation10 + $0x330] sm:$0xf0] }
 0x3e4   :  { %5630 = vmatmul.bf16.vlgmr.msrb.gmra.mxu2 %v10042_v6  ;;  %5669 = vmatmul.bf16.vlgmr.msra.gmra.mxu1 %v10030_v43  ;;  %v9345_v22 = vld [vmem:[#allocation10 + $0x12c] sm:$0xf]  ;;  %v8360_v38 = vld [vmem:[#allocation10 + $0x138] sm:$0xf0] }
 0x3e5   :  { %5704 = vmatpush.bf16.msrb.mxu3 %v8263_v14  ;;  %5713 = vmatpush.bf16.msrb.mxu1 %v8455_v23  ;;  %v9351_v14 = vld [vmem:[#allocation10 + $0x154] sm:$0xf0] }
 0x3e6   :  { %5678 = vmatpush.bf16.msra.mxu2 %v8515_v53  ;;  %v9399_v23 = vld [vmem:[#allocation10 + $0x2d4] sm:$0xf0] }
 0x3e7   :  { %v8567_v8 = vor.u32 %v9399_v23, %v8566_v59  ;;  %v9408_v23 = vld [vmem:[#allocation10 + $0x324] sm:$0xf] }
 0x3e9   :  { %5705 = vmatpush.bf16.msrb.mxu3 %v8247_v7  ;;  %5714 = vmatpush.bf16.msrb.mxu1 %v8439_v20  ;;  %v9424_v20 = vld [vmem:[#allocation10 + $0x3a4] sm:$0xf] }
 0x3ea   :  { %5679 = vmatpush.bf16.msra.mxu2 %v8499_v11  ;;  %v9325_v11 = vld [vmem:[#allocation10 + $0x8c] sm:$0xf]  ;;  %v8675_v39 = vor.u32 %v9424_v20, %v8672_v58  ;;  %v8611_v20 = vor.u32 %v9408_v23, %v8608_v21  ;;  %v8630_v23 = vld [vmem:[#allocation10 + $0x348] sm:$0xf]  ;;  %v9415_v21 = vld [vmem:[#allocation10 + $0x354] sm:$0xf0] }
 0x3ed   :  { %v4478_v62 = vpop.f32.mrf.mxu0  ;;  %5706 = vmatpush.bf16.msrb.mxu3 %v8231_v44  ;;  %5715 = vmatpush.bf16.msrb.mxu1 %v8423_v17  ;;  %v8280_v44 = vld [vmem:[#allocation10 + $0x98] sm:$0xf0]  ;;  %v8551_v17 = vor.u32 %v9395_v47, %v8550_v45 }
 0x3ee   :  { %v4479_v37 = vadd.f32 %v4478_v62, %v4466_v25  ;;  %5680 = vmatpush.bf16.msra.mxu2 %v8483_v49  ;;  %v8283_v36 = vor.u32 %v9325_v11, %v8280_v44  ;;  %v9321_v25 = vld [vmem:[#allocation10 + $0x6c] sm:$0xf]  ;;  %v8264_v62 = vld [vmem:[#allocation10 + $0x78] sm:$0xf0]  ;;  %v9375_v11 = vld [vmem:[#allocation10 + $0x214] sm:$0xf0] }
 0x3ef   :  { %v9369_v49 = vld [vmem:[#allocation10 + $0x1ec] sm:$0xf]  ;;  %v8710_v44 = vld [vmem:[#allocation10 + $0x3e8] sm:$0xf]  ;;  %v8471_v2 = vor.u32 %v9375_v11, %v8470_v33 }
 0x3f0   :  { %v4485_v26 = vadd.f32 %v4479_v37, %v9981_v13  ;;  %v8374_v13 = vld [vmem:[#allocation10 + $0x148] sm:$0xf]  ;;  %v9416_v37 = vld [vmem:[#allocation10 + $0x364] sm:$0xf]  ;;  %v9373_v11 = vld [vmem:[#allocation10 + $0x20c] sm:$0xf] }
 0x3f1   :  { %5707 = vmatpush.bf16.msrb.mxu3 %v8215_v28  ;;  %5716 = vmatpush.bf16.msrb.mxu1 %v8407_v57  ;;  %v8375_v7 = vor.u32 %v9351_v14, %v8374_v13  ;;  %v8456_v28 = vld [vmem:[#allocation10 + $0x1f8] sm:$0xf0]  ;;  %v8640_v57 = vld [vmem:[#allocation10 + $0x370] sm:$0xf0]  ;;  %v9361_v13 = vld [vmem:[#allocation10 + $0x1ac] sm:$0xf] }
 0x3f2   :  { %v4492_v34 = vrot.slane %v4485_v26, 2  ;;  %v10057_v52 = vpack.c.bf16 %v4485_v26, %v4485_v26  ;;  %5681 = vmatpush.bf16.msra.mxu2 %v8467_v35  ;;  %v8459_v1 = vor.u32 %v9369_v49, %v8456_v28  ;;  %v8440_v26 = vld [vmem:[#allocation10 + $0x1d8] sm:$0xf0]  ;;  %v8643_v35 = vor.u32 %v9416_v37, %v8640_v57  ;;  %v9349_v49 = vld [vmem:[#allocation10 + $0x14c] sm:$0xf] }
 0x3f3   :  { %v8376_v28 = vld [vmem:[#allocation10 + $0x158] sm:$0xf0]  ;;  %v8678_v57 = vld [vmem:[#allocation10 + $0x3a8] sm:$0xf] }
 0x3f4   :  { %4812 = vmatmul.bf16.vlgmr.msra.gmra.mxu0 %v10057_v52  ;;  %5708 = vmatmul.bf16.vlgmr.msrb.gmra.mxu3 %v10014_v4  ;;  %v4496_v61 = vsel %vm4495_vm2, %v4491_v51, %v4492_v34  ;;  %v8624_v51 = vld [vmem:[#allocation10 + $0x350] sm:$0xf0]  ;;  %v9383_v34 = vld [vmem:[#allocation10 + $0x254] sm:$0xf0]  ;;  %v8379_v37 = vor.u32 %v9349_v49, %v8376_v28  ;;  %v8648_v49 = vld [vmem:[#allocation10 + $0x378] sm:$0xf0] }
 0x3f5   :  { %5752 = vmatpush.bf16.msra.mxu3 %v8331_v18  ;;  %5687 = vmatpush.bf16.msra.mxu0 %v8707_v5  ;;  %v4480_v24 = vpop.f32.mrf.mxu0  ;;  %v4498_v53 = vsel %vm4497_vm3, %v4494_v55, %v4496_v61  ;;  %v8267_v18 = vor.u32 %v9321_v25, %v8264_v62  ;;  %v8251_v5 = vor.u32 %v9317_v40, %v8248_v46  ;;  %v8486_v61 = vld [vmem:[#allocation10 + $0x228] sm:$0xf]  ;;  %v9431_v25 = vld [vmem:[#allocation10 + $0x3d4] sm:$0xf0]  ;;  %v9393_v40 = vld [vmem:[#allocation10 + $0x2ac] sm:$0xf] }
 0x3f6   :  { %5717 = vmatpush.bf16.msrb.mxu1 %v8391_v48  ;;  %5726 = vmatpush.bf16.msrb.mxu2 %v8583_v16  ;;  %4500 = vst [vmem:[%s10097_s10] sm:$0xff] %v4498_v53  ;;  %v8443_v48 = vor.u32 %v9365_v27, %v8440_v26  ;;  %v9313_v16 = vld [vmem:[#allocation10 + $0x2c] sm:$0xf]  ;;  %v8627_v14 = vor.u32 %v9412_v10, %v8624_v51  ;;  %v9379_v24 = vld [vmem:[#allocation10 + $0x234] sm:$0xf0]  ;;  %v8216_v53 = vld [vmem:[#allocation10 + $0x18] sm:$0xf0] }
 0x3f7   :  { %5682 = vmatmul.bf16.vlgmr.msra.gmra.mxu2 %v10042_v6  ;;  %v8503_v59 = vor.u32 %v9383_v34, %v8502_v60  ;;  %v8235_v42 = vor.u32 %v9313_v16, %v8232_v29  ;;  %v8487_v58 = vor.u32 %v9379_v24, %v8486_v61  ;;  %v8587_v62 = vor.u32 %v9401_v19, %v8584_v0  ;;  %v8552_v46 = vld [vmem:[#allocation10 + $0x2b8] sm:$0xf0]  ;;  %v9341_v10 = vld [vmem:[#allocation10 + $0x10c] sm:$0xf]  ;;  %v8646_v16 = vld [vmem:[#allocation10 + $0x368] sm:$0xf] }
 0x3f8   :  { %v8363_v26 = vor.u32 %v9345_v22, %v8360_v38  ;;  %v8344_v51 = vld [vmem:[#allocation10 + $0x118] sm:$0xf0]  ;;  %v9419_v29 = vld [vmem:[#allocation10 + $0x374] sm:$0xf0]  ;;  %v8631_v24 = vor.u32 %v9415_v21, %v8630_v23  ;;  %v9425_v0 = vld [vmem:[#allocation10 + $0x3ac] sm:$0xf] }
 0x3f9   :  { %5753 = vmatpush.bf16.msra.mxu3 %v8315_v9  ;;  %5688 = vmatpush.bf16.msra.mxu0 %v8691_v50  ;;  %v8424_v9 = vld [vmem:[#allocation10 + $0x1b8] sm:$0xf0]  ;;  %v9309_v50 = vld [vmem:[#allocation10 + $0xc] sm:$0xf]  ;;  %v8347_v34 = vor.u32 %v9341_v10, %v8344_v51 }
 0x3fa   :  { %5718 = vmatpush.bf16.msrb.mxu1 %v8375_v7  ;;  %5727 = vmatpush.bf16.msrb.mxu2 %v8567_v8  ;;  %v8427_v55 = vor.u32 %v9361_v13, %v8424_v9  ;;  %v9357_v7 = vld [vmem:[#allocation10 + $0x18c] sm:$0xf]  ;;  %v8408_v8 = vld [vmem:[#allocation10 + $0x198] sm:$0xf0]  ;;  %v8219_v45 = vor.u32 %v9309_v50, %v8216_v53  ;;  %v8614_v50 = vld [vmem:[#allocation10 + $0x328] sm:$0xf] }
 0x3fb   :  { %v8411_v47 = vor.u32 %v9357_v7, %v8408_v8  ;;  %v9385_v9 = vld [vmem:[#allocation10 + $0x26c] sm:$0xf]  ;;  %v8504_v61 = vld [vmem:[#allocation10 + $0x258] sm:$0xf0]  ;;  %v9411_v53 = vld [vmem:[#allocation10 + $0x334] sm:$0xf0] }
 0x3fc   :  { %v9377_v8 = vld [vmem:[#allocation10 + $0x22c] sm:$0xf]  ;;  %v9447_v23 = vld [vmem:[#allocation9] ss:$0 sm:$0xff] }
 0x3fd   :  { %5754 = vmatpush.bf16.msra.mxu3 %v8299_v30  ;;  %5689 = vmatpush.bf16.msra.mxu0 %v8675_v39  ;;  %v8592_v30 = vld [vmem:[#allocation10 + $0x310] sm:$0xf0]  ;;  %v9435_v39 = vld [vmem:[#allocation10 + $0x3f4] sm:$0xf0]  ;;  %v9405_v38 = vld [vmem:[#allocation10 + $0x30c] sm:$0xf] }
 0x3fe   :  { %5719 = vmatpush.bf16.msrb.mxu1 %v8359_v56  ;;  %5728 = vmatpush.bf16.msrb.mxu2 %v8551_v17  ;;  %v8392_v56 = vld [vmem:[#allocation10 + $0x178] sm:$0xf0]  ;;  %v8595_v17 = vor.u32 %v9404_v63, %v8592_v30  ;;  %v8598_v63 = vld [vmem:[#allocation10 + $0x308] sm:$0xf]  ;;  %v9407_v30 = vld [vmem:[#allocation10 + $0x314] sm:$0xf0] }
 0x3ff   :  { %v8395_v32 = vor.u32 %v9353_v41, %v8392_v56  ;;  %v9429_v56 = vld [vmem:[#allocation10 + $0x3cc] sm:$0xf] }
 0x401   :  { %5755 = vmatpush.bf16.msra.mxu3 %v8283_v36  ;;  %5690 = vmatpush.bf16.msra.mxu0 %v8659_v31  ;;  %v8711_v36 = vor.u32 %v9435_v39, %v8710_v44  ;;  %v9397_v31 = vld [vmem:[#allocation10 + $0x2cc] sm:$0xf]  ;;  %v8472_v44 = vld [vmem:[#allocation10 + $0x218] sm:$0xf0]  ;;  %v8599_v39 = vor.u32 %v9407_v30, %v8598_v63 }
 0x402   :  { %5720 = vmatpush.bf16.msrb.mxu1 %v8343_v15  ;;  %5729 = vmatpush.bf16.msrb.mxu2 %v8535_v12  ;;  %v8568_v15 = vld [vmem:[#allocation10 + $0x2d8] sm:$0xf0]  ;;  %v8695_v12 = vor.u32 %v9431_v25, %v8694_v54  ;;  %v8475_v41 = vor.u32 %v9373_v11, %v8472_v44 }
 0x403   :  { %v8664_v54 = vld [vmem:[#allocation10 + $0x398] sm:$0xf0] }
 0x404   :  { %5643 = vmatmul.bf16.vlgmr.msrb.gmra.mxu0 %v10057_v52 }
 0x405   :  { %5756 = vmatpush.bf16.msra.mxu3 %v8267_v18  ;;  %5691 = vmatpush.bf16.msra.mxu0 %v8643_v35  ;;  %v9427_v18 = vld [vmem:[#allocation10 + $0x3b4] sm:$0xf0]  ;;  %v8662_v35 = vld [vmem:[#allocation10 + $0x388] sm:$0xf] }
 0x406   :  { %5765 = vmatpush.bf16.msra.mxu1 %v8459_v1  ;;  %5730 = vmatpush.bf16.msrb.mxu2 %v8519_v3  ;;  %v8571_v1 = vor.u32 %v9397_v31, %v8568_v15  ;;  %v8679_v27 = vor.u32 %v9427_v18, %v8678_v57  ;;  %v8555_v3 = vor.u32 %v9393_v40, %v8552_v46  ;;  %v9413_v15 = vld [vmem:[#allocation10 + $0x34c] sm:$0xf]  ;;  %v8616_v18 = vld [vmem:[#allocation10 + $0x338] sm:$0xf0] }
 0x407   :  { %5721 = vmatmul.bf16.vlgmr.msrb.gmra.mxu1 %v10030_v43  ;;  %v9409_v57 = vld [vmem:[#allocation10 + $0x32c] sm:$0xf]  ;;  %v8600_v40 = vld [vmem:[#allocation10 + $0x318] sm:$0xf0] }
 0x408   :  { %v8603_v46 = vor.u32 %v9405_v38, %v8600_v40 }
 0x409   :  { %5757 = vmatpush.bf16.msra.mxu3 %v8251_v5  ;;  %5692 = vmatpush.bf16.msra.mxu0 %v8627_v14  ;;  %v9389_v5 = vld [vmem:[#allocation10 + $0x28c] sm:$0xf]  ;;  %v8520_v14 = vld [vmem:[#allocation10 + $0x278] sm:$0xf0] }
 0x40a   :  { %5766 = vmatpush.bf16.msra.mxu1 %v8443_v48  ;;  %5731 = vmatpush.bf16.msrb.mxu2 %v8503_v59  ;;  %v8536_v48 = vld [vmem:[#allocation10 + $0x298] sm:$0xf0]  ;;  %v8647_v59 = vor.u32 %v9419_v29, %v8646_v16 }
 0x40b   :  { %v8539_v13 = vor.u32 %v9389_v5, %v8536_v48 }
 0x40d   :  { %5758 = vmatpush.bf16.msra.mxu3 %v8235_v42  ;;  %5693 = vmatpush.bf16.msra.mxu0 %v8611_v20  ;;  %v8523_v42 = vor.u32 %v9385_v9, %v8520_v14  ;;  %v8488_v20 = vld [vmem:[#allocation10 + $0x238] sm:$0xf0] }
 0x40e   :  { %5767 = vmatpush.bf16.msra.mxu1 %v8427_v55  ;;  %5732 = vmatpush.bf16.msrb.mxu2 %v8487_v58  ;;  %v9381_v55 = vld [vmem:[#allocation10 + $0x24c] sm:$0xf]  ;;  %v8615_v58 = vor.u32 %v9411_v53, %v8614_v50  ;;  %v8491_v33 = vor.u32 %v9377_v8, %v8488_v20 }
 0x40f   :  { %v8507_v7 = vor.u32 %v9381_v55, %v8504_v61 }
 0x411   :  { %5759 = vmatpush.bf16.msra.mxu3 %v8219_v45  ;;  %5694 = vmatpush.bf16.msra.mxu0 %v8595_v17  ;;  %v9433_v45 = vld [vmem:[#allocation10 + $0x3ec] sm:$0xf]  ;;  %v8696_v17 = vld [vmem:[#allocation10 + $0x3d8] sm:$0xf0] }
 0x412   :  { %5768 = vmatpush.bf16.msra.mxu1 %v8411_v47  ;;  %5733 = vmatpush.bf16.msrb.mxu2 %v8471_v2  ;;  %v8712_v47 = vld [vmem:[#allocation10 + $0x3f8] sm:$0xf0]  ;;  %v8699_v19 = vor.u32 %v9429_v56, %v8696_v17 }
 0x413   :  { %v8680_v2 = vld [vmem:[#allocation10 + $0x3b8] sm:$0xf0] }
 0x414   :  { %5760 = vmatmul.bf16.vlgmr.msra.gmra.mxu3 %v10014_v4  ;;  %5695 = vmatmul.bf16.vlgmr.msra.gmra.mxu0 %v10057_v52  ;;  %v9423_v4 = vld [vmem:[#allocation10 + $0x394] sm:$0xf0] }
 0x415   :  { %5739 = vmatpush.bf16.msrb.mxu0 %v8711_v36  ;;  %5734 = vmatmul.bf16.vlgmr.msrb.gmra.mxu2 %v10042_v6  ;;  %v8663_v60 = vor.u32 %v9423_v4, %v8662_v35  ;;  %v8683_v36 = vor.u32 %v9425_v0, %v8680_v2 }
 0x416   :  { %5769 = vmatpush.bf16.msra.mxu1 %v8395_v32  ;;  %5778 = vmatpush.bf16.msra.mxu2 %v8587_v62  ;;  %v9421_v32 = vld [vmem:[#allocation10 + $0x38c] sm:$0xf] }
 0x417   :  { %v8667_v25 = vor.u32 %v9421_v32, %v8664_v54  ;;  %v9417_v62 = vld [vmem:[#allocation10 + $0x36c] sm:$0xf] }
 0x418   :  { %v8651_v31 = vor.u32 %v9417_v62, %v8648_v49 }
 0x419   :  { %5740 = vmatpush.bf16.msrb.mxu0 %v8695_v12  ;;  %v8632_v12 = vld [vmem:[#allocation10 + $0x358] sm:$0xf0] }
 0x41a   :  { %5770 = vmatpush.bf16.msra.mxu1 %v8379_v37  ;;  %5779 = vmatpush.bf16.msra.mxu2 %v8571_v1  ;;  %v8635_v37 = vor.u32 %v9413_v15, %v8632_v12 }
 0x41d   :  { %5741 = vmatpush.bf16.msrb.mxu0 %v8679_v27 }
 0x41e   :  { %5771 = vmatpush.bf16.msra.mxu1 %v8363_v26  ;;  %5780 = vmatpush.bf16.msra.mxu2 %v8555_v3  ;;  %v4946_v26 = vld [vmem:[#allocation12] sm:$0xf] }
 0x41f   :  { %v4948_v4 = vperm.slane %v4946_v26, 0  ;;  %v4949_v16 = vperm.slane %v4946_v26, 1  ;;  %v4950_v30 = vperm.slane %v4946_v26, 2 }
 0x421   :  { %5742 = vmatpush.bf16.msrb.mxu0 %v8663_v60 }
 0x422   :  { %5772 = vmatpush.bf16.msra.mxu1 %v8347_v34  ;;  %5781 = vmatpush.bf16.msra.mxu2 %v8539_v13 }
 0x425   :  { %5743 = vmatpush.bf16.msrb.mxu0 %v8647_v59  ;;  %5773 = vmatmul.bf16.vlgmr.msra.gmra.mxu1 %v10030_v43  ;;  %v8715_v43 = vor.u32 %v9433_v45, %v8712_v47 }
 0x426   :  { %5782 = vmatpush.bf16.msra.mxu2 %v8523_v42 }
 0x429   :  { %5744 = vmatpush.bf16.msrb.mxu0 %v8631_v24 }
 0x42a   :  { %5783 = vmatpush.bf16.msra.mxu2 %v8507_v7 }
 0x42d   :  { %5745 = vmatpush.bf16.msrb.mxu0 %v8615_v58 }
 0x42e   :  { %5784 = vmatpush.bf16.msra.mxu2 %v8491_v33 }
 0x431   :  { %5746 = vmatpush.bf16.msrb.mxu0 %v8599_v39 }
 0x432   :  { %5785 = vmatpush.bf16.msra.mxu2 %v8475_v41 }
 0x434   :  { %5747 = vmatmul.bf16.vlgmr.msrb.gmra.mxu0 %v10057_v52 }
 0x435   :  { %5791 = vmatpush.bf16.msra.mxu0 %v8715_v43  ;;  %5786 = vmatmul.bf16.vlgmr.msra.gmra.mxu2 %v10042_v6  ;;  %v8619_v6 = vor.u32 %v9409_v57, %v8616_v18  ;;  %v4951_v57 = vperm.slane %v4946_v26, 3 }
 0x437   :  { %v4774_v28 = vpop.f32.mrf.mxu3 }
 0x438   :  { %v4775_v55 = vadd.f32 %v9447_v23, %v4774_v28 }
 0x439   :  { %5792 = vmatpush.bf16.msra.mxu0 %v8699_v19 }
 0x43d   :  { %5793 = vmatpush.bf16.msra.mxu0 %v8683_v36 }
 0x43f   :  { %v4776_v1 = vpop.f32.mrf.mxu3 }
 0x441   :  { %5794 = vmatpush.bf16.msra.mxu0 %v8667_v25  ;;  %v4787_v22 = vpop.f32.mrf.mxu1 }
 0x445   :  { %5795 = vmatpush.bf16.msra.mxu0 %v8651_v31 }
 0x447   :  { %v5605_v27 = vpop.f32.mrf.mxu3 }
 0x448   :  { %v5606_v10 = vadd.f32 %v5605_v27, %v4948_v4 }
 0x449   :  { %5796 = vmatpush.bf16.msra.mxu0 %v8635_v37  ;;  %v4789_v35 = vpop.f32.mrf.mxu1 }
 0x44d   :  { %5797 = vmatpush.bf16.msra.mxu0 %v8619_v6 }
 0x44f   :  { %v5607_v3 = vpop.f32.mrf.mxu3 }
 0x451   :  { %5798 = vmatpush.bf16.msra.mxu0 %v8603_v46  ;;  %v5618_v51 = vpop.f32.mrf.mxu1 }
 0x452   :  { %v5619_v5 = vadd.f32 %v5618_v51, %v5606_v10 }
 0x454   :  { %5799 = vmatmul.bf16.vlgmr.msra.gmra.mxu0 %v10057_v52  ;;  %v4788_v52 = vadd.f32 %v4787_v22, %v4775_v55 }
 0x457   :  { %v4800_v48 = vpop.f32.mrf.mxu2 }
 0x458   :  { %v4801_v24 = vadd.f32 %v4800_v48, %v4788_v52 }
 0x459   :  { %v5657_v60 = vpop.f32.mrf.mxu3  ;;  %v5620_v34 = vpop.f32.mrf.mxu1 }
 0x45a   :  { %v5658_v13 = vadd.f32 %v5657_v60, %v4949_v16 }
 0x45f   :  { %v4802_v29 = vpop.f32.mrf.mxu2 }
 0x461   :  { %v5659_v9 = vpop.f32.mrf.mxu3  ;;  %v5670_v14 = vpop.f32.mrf.mxu1 }
 0x462   :  { %v5671_v59 = vadd.f32 %v5670_v14, %v5658_v13 }
 0x467   :  { %v5631_v21 = vpop.f32.mrf.mxu2 }
 0x468   :  { %v5632_v42 = vadd.f32 %v5631_v21, %v5619_v5 }
 0x469   :  { %v5672_v61 = vpop.f32.mrf.mxu1 }
 0x46f   :  { %v5633_v7 = vpop.f32.mrf.mxu2 }
 0x471   :  { %v4813_v50 = vpop.f32.mrf.mxu0 }
 0x472   :  { %v4814_v53 = vadd.f32 %v4813_v50, %v4801_v24 }
 0x474   :  { %4817 = vst [vmem:[%s10095_s8] sm:$0x3] %v4814_v53 }
 0x477   :  { %v5709_v8 = vpop.f32.mrf.mxu3 }
 0x478   :  { %v5710_v45 = vadd.f32 %v5709_v8, %v4950_v30 }
 0x479   :  { %v4815_v20 = vpop.f32.mrf.mxu0 }
 0x47a   :  { %v5683_v58 = vpop.f32.mrf.mxu2 }
 0x47b   :  { %v5684_v63 = vadd.f32 %v5683_v58, %v5671_v59 }
 0x47f   :  { %v5711_v33 = vpop.f32.mrf.mxu3 }
 0x481   :  { %v5644_v47 = vpop.f32.mrf.mxu0 }
 0x482   :  { %v5645_v11 = vadd.f32 %v5644_v47, %v5632_v42  ;;  %v5685_v43 = vpop.f32.mrf.mxu2 }
 0x484   :  { %v5722_v44 = vpop.f32.mrf.mxu1 }
 0x485   :  { %v5723_v39 = vadd.f32 %v5722_v44, %v5710_v45 }
 0x489   :  { %v5646_v41 = vpop.f32.mrf.mxu0 }
 0x48c   :  { %v5724_v56 = vpop.f32.mrf.mxu1 }
 0x491   :  { %v5696_v17 = vpop.f32.mrf.mxu0 }
 0x492   :  { %v5697_v19 = vadd.f32 %v5696_v17, %v5684_v63 }
 0x494   :  { %v5808_v0 = vrot.slane %v5697_v19, 6 }
 0x496   :  { %v5811_v2 = vsel %vm4493_vm1, %v5645_v11, %v5808_v0 }
 0x497   :  { %v5761_v36 = vpop.f32.mrf.mxu3 }
 0x498   :  { %v5735_v32 = vpop.f32.mrf.mxu2  ;;  %v5762_v18 = vadd.f32 %v5761_v36, %v4951_v57 }
 0x499   :  { %v5698_v54 = vpop.f32.mrf.mxu0  ;;  %v5736_v1 = vadd.f32 %v5735_v32, %v5723_v39 }
 0x49f   :  { %v5763_v25 = vpop.f32.mrf.mxu3 }
 0x4a0   :  { %v5737_v49 = vpop.f32.mrf.mxu2 }
 0x4a2   :  { %v5774_v62 = vpop.f32.mrf.mxu1 }
 0x4a3   :  { %v5775_v6 = vadd.f32 %v5774_v62, %v5762_v18 }
 0x4aa   :  { %v5776_v28 = vpop.f32.mrf.mxu1 }
 0x4b1   :  { %v5748_v31 = vpop.f32.mrf.mxu0 }
 0x4b2   :  { %v5749_v22 = vadd.f32 %v5748_v31, %v5736_v1 }
 0x4b4   :  { %v5809_v27 = vrot.slane %v5749_v22, 4 }
 0x4b8   :  { %v5787_v15 = vpop.f32.mrf.mxu2 }
 0x4b9   :  { %v5750_v12 = vpop.f32.mrf.mxu0  ;;  %v5788_v38 = vadd.f32 %v5787_v15, %v5775_v6 }
 0x4c0   :  { %v5789_v37 = vpop.f32.mrf.mxu2 }
 0x4d1   :  { %v5800_v40 = vpop.f32.mrf.mxu0 }
 0x4d2   :  { %v5801_v46 = vadd.f32 %v5800_v40, %v5788_v38 }
 0x4d4   :  { %v5810_v35 = vrot.slane %v5801_v46, 2 }
 0x4d6   :  { %v5812_v4 = vsel %vm4495_vm2, %v5809_v27, %v5810_v35 }
 0x4d7   :  { %v5813_v3 = vsel %vm4497_vm3, %v5811_v2, %v5812_v4 }
 0x4d8   :  { %5815 = vst [vmem:[%s10096_s9] sm:$0xff] %v5813_v3 }
 0x4d9   :  { %v5802_v10 = vpop.f32.mrf.mxu0 }
 0x4da   :  { %5828 = vsyncpa [#allocation3], 1 }
 0x4db   :  { %5829 = vsyncpa [#allocation5], 1 }
 0x4dc   :  { %5830 = vsyncpa [#allocation8], 1 }
 0x4dd   :  { %5831 = vsyncpa [#allocation11], 1 }

</bundles_post_ra>
